<compile_context>
chip_gen: v5e
topology: v5e:2x2
jax: 0.10.0
libtpu: 0.0.40
codegen_flags: <defaults>
</compile_context>

<pallas_src>
import math
from functools import partial

import jax
import jax.numpy as jnp
from jax.experimental import pallas as pl
from jax.experimental.pallas import tpu as pltpu

# ----------------------------- configuration -------------------------------
HIDDEN = 32          # config.hidden_size
INTERMEDIATE = 64    # config.intermediate_size
NUM_HEADS = 4        # config.num_attention_heads
SEQ_LEN = 16         # example sequence length
BATCH = 2
MAX_POS = 64         # config.max_position_embeddings
LN_EPS = 1e-5        # nn.LayerNorm default eps
MM_DTYPE = jnp.bfloat16   # MXU operand dtype (f32 accumulation everywhere)


# ----------------------------- kernel helpers ------------------------------
def _layernorm(x, g, b):
    mu = jnp.mean(x, axis=-1, keepdims=True)
    var = jnp.mean((x - mu) ** 2, axis=-1, keepdims=True)
    return (x - mu) * jax.lax.rsqrt(var + LN_EPS) * g + b


def _proj(x, w, b):
    # bf16 MXU inputs, f32 accumulation.
    return jnp.dot(x.astype(w.dtype), w, preferred_element_type=jnp.float32) + b


def _causal_shift(x, k, pos_l):
    # Row r receives row r-k of the SAME batch; rows whose within-batch
    # position is < k get zero (the roll wraps, the mask kills the wrap).
    shifted = pltpu.roll(x, shift=k, axis=0)
    return jnp.where(pos_l >= k, shifted, 0.0)


# --------------------------- fused forward kernel ---------------------------
def fused_hyena_glt_kernel(
    x_ref, pe_ref, orig_ref,
    ln1_g_ref, ln1_b_ref,
    w_in_ref, b_in_ref, sf_w_ref, sf_b_ref,
    lf_w_ref, lf_b_ref, w_out_ref, b_out_ref,
    ln2_g_ref, ln2_b_ref, w1_ref, b1_ref, w2_ref, b2_ref,
    cn_g_ref, cn_b_ref,
    wq_ref, bq_ref, wk_ref, bk_ref, wv_ref, bv_ref, wo_ref, bo_ref,
    o_ref,
    *, batch, seq_len, orig_len, num_heads,
):
    BL = batch * seq_len
    D = x_ref.shape[1]
    hd = D // num_heads

    # Per-row position inside its own batch segment (for causal masking).
    pos_l = jax.lax.broadcasted_iota(jnp.int32, (BL, 1), 0) % seq_len

    # BLTPositionManager.encode_positions
    # TODO(synk): BLTPositionManager source not provided; additive sinusoidal
    # position encoding is used as a stand-in.
    x = x_ref[...] + pe_ref[...]

    # ---- norm1 + HyenaOperator + residual ----------------------------------
    res1 = x
    h = _layernorm(x, ln1_g_ref[...], ln1_b_ref[...])

    # TODO(synk): HyenaOperator source not provided; representative order-2
    # operator: in_proj -> short depthwise causal conv (k=3) -> gated long
    # depthwise causal conv (explicit filters) -> out_proj.  The in_proj is
    # pre-split wrapper-side into the x1 / x2 / v column groups so no 96-lane
    # slicing is needed in-kernel.
    h_mm = h.astype(MM_DTYPE)
    branches = []
    for j in range(3):                         # static: 3 hyena branches
        u = jnp.dot(h_mm, w_in_ref[j],
                    preferred_element_type=jnp.float32) + b_in_ref[j]
        filt = sf_w_ref[j]                     # (3, D) short-conv taps
        c = u * filt[0:1, :]
        for k in (1, 2):
            c = c + _causal_shift(u, k, pos_l) * filt[k:k + 1, :]
        branches.append(c + sf_b_ref[j])
    x1, x2, v = branches

    v = v * x1
    # Long depthwise causal conv (filter length = seq_len), roll + causal mask.
    lf = lf_w_ref[...]                         # (seq_len, D) filter, loaded once
    acc = v * lf[0:1, :]
    for k in range(1, seq_len):                # static unroll, seq_len = 16
        acc = acc + _causal_shift(v, k, pos_l) * lf[k:k + 1, :]
    v = acc + v * lf_b_ref[...]

    y = v * x2
    y = _proj(y, w_out_ref[...], b_out_ref[...])
    h = y + res1

    # ---- norm2 + FFN + residual (Dropout = identity in eval mode) ----------
    res2 = h
    f = _layernorm(h, ln2_g_ref[...], ln2_b_ref[...])
    f = _proj(f, w1_ref[...], b1_ref[...])
    # TODO(synk): nn.GELU() default is erf-exact; tanh approximation used here.
    f = jax.nn.gelu(f, approximate=True)
    f = _proj(f, w2_ref[...], b2_ref[...])
    h = f + res2

    # ---- cross_norm + cross-attention (to original sequence) + residual ----
    res3 = h
    hn = _layernorm(h, cn_g_ref[...], cn_b_ref[...])
    q = _proj(hn, wq_ref[...], bq_ref[...])          # (B*L,  D)
    k_all = _proj(orig_ref[...], wk_ref[...], bk_ref[...])   # (B*L0, D)
    v_all = _proj(orig_ref[...], wv_ref[...], bv_ref[...])   # (B*L0, D)

    scale = 1.0 / math.sqrt(hd)
    outs = []
    for b in range(batch):                     # static loops: B=2, H=4
        qb = q[b * seq_len:(b + 1) * seq_len, :]
        kb = k_all[b * orig_len:(b + 1) * orig_len, :]
        vb = v_all[b * orig_len:(b + 1) * orig_len, :]
        out_b = None
        for hh in range(num_heads):
            sl = slice(hh * hd, (hh + 1) * hd)
            s = jnp.dot(qb[:, sl], kb[:, sl].T,
                        preferred_element_type=jnp.float32) * scale
            s = s - jnp.max(s, axis=-1, keepdims=True)
            p = jnp.exp(s)
            p = p / jnp.sum(p, axis=-1, keepdims=True)
            o_h = jnp.dot(p, vb[:, sl], preferred_element_type=jnp.float32)
            # out_proj folded per head: concat_h(o_h) @ Wo == sum_h o_h @ Wo[h]
            # (removes the lane-axis concatenate of head outputs).
            contrib = jnp.dot(o_h.astype(MM_DTYPE), wo_ref[hh],
                              preferred_element_type=jnp.float32)
            out_b = contrib if out_b is None else out_b + contrib
        outs.append(out_b)
    attn = jnp.concatenate(outs, axis=0)       # sublane concat, 8-aligned
    o_ref[...] = attn + bo_ref[...] + res3


# ------------------------------- wrapper -----------------------------------
def hyena_glt_block_forward(hidden_states, original_sequence, params):
    """Forward of HyenaGLTBlock (dynamic_patching=False, cross-attn active)."""
    B, L, D = hidden_states.shape
    L0 = original_sequence.shape[1]
    H = NUM_HEADS
    hd = D // H

    # ---- wrapper-side layout plumbing (cheap XLA ops, outside the kernel) ---
    x2d = hidden_states.reshape(B * L, D)          # fold batch into matmul M
    orig2d = original_sequence.reshape(B * L0, D)
    pe2d = jnp.tile(params["pe"][:L], (B, 1))      # per-row position encodings

    w_in = params["w_in"]                          # (D, 3D): columns [x1|x2|v]
    w_in_s = jnp.stack([w_in[:, j * D:(j + 1) * D] for j in range(3)]).astype(MM_DTYPE)
    b_in_s = jnp.stack([params["b_in"][:, j * D:(j + 1) * D] for j in range(3)])
    sf_w_s = jnp.stack([params["sf_w"][:, j * D:(j + 1) * D] for j in range(3)])
    sf_b_s = jnp.stack([params["sf_b"][:, j * D:(j + 1) * D] for j in range(3)])
    wo_heads = params["wo"].reshape(H, hd, D).astype(MM_DTYPE)   # per-head rows

    args = [
        x2d, pe2d, orig2d,
        params["ln1_g"], params["ln1_b"],
        w_in_s, b_in_s, sf_w_s, sf_b_s,
        params["lf_w"], params["lf_b"],
        params["w_out"].astype(MM_DTYPE), params["b_out"],
        params["ln2_g"], params["ln2_b"],
        params["w1"].astype(MM_DTYPE), params["b1"],
        params["w2"].astype(MM_DTYPE), params["b2"],
        params["cn_g"], params["cn_b"],
        params["wq"].astype(MM_DTYPE), params["bq"],
        params["wk"].astype(MM_DTYPE), params["bk"],
        params["wv"].astype(MM_DTYPE), params["bv"],
        wo_heads, params["bo"],
    ]

    kernel = partial(fused_hyena_glt_kernel,
                     batch=B, seq_len=L, orig_len=L0, num_heads=H)

    # Single fused call, no grid: every operand is mapped whole into VMEM
    # (total footprint is a few tens of KiB), giving exactly one launch and no
    # HBM round-trip of intermediates.  A per-batch "parallel" grid would only
    # help on v7x (2 TCs); on v5e/v6e it is pure per-step overhead, so the grid
    # is collapsed entirely.
    out2d = pl.pallas_call(
        kernel,
        out_shape=jax.ShapeDtypeStruct((B * L, D), jnp.float32),
    )(*args)

    merge_info = None  # dynamic_patching=False -> no AdaptiveTokenMerger stats
    return out2d.reshape(B, L, D), merge_info


# ---------------------- deterministic parameter init ------------------------
def _sinusoidal_pe(max_len, d_model):
    pos = jnp.arange(max_len, dtype=jnp.float32)[:, None]
    i = jnp.arange(0, d_model, 2, dtype=jnp.float32)[None, :]
    div = jnp.exp(-i * (math.log(10000.0) / d_model))
    pe = jnp.zeros((max_len, d_model), jnp.float32)
    pe = pe.at[:, 0::2].set(jnp.sin(pos * div))
    pe = pe.at[:, 1::2].set(jnp.cos(pos * div))
    return pe


def init_params(key):
    D, I, L = HIDDEN, INTERMEDIATE, SEQ_LEN
    keys = jax.random.split(key, 12)

    def w(k, shape, scale=0.05):
        return (scale * jax.random.normal(k, shape)).astype(jnp.float32)

    return {
        # LayerNorms (norm1, norm2, cross_norm)
        "ln1_g": jnp.ones((1, D), jnp.float32), "ln1_b": jnp.zeros((1, D), jnp.float32),
        "ln2_g": jnp.ones((1, D), jnp.float32), "ln2_b": jnp.zeros((1, D), jnp.float32),
        "cn_g": jnp.ones((1, D), jnp.float32), "cn_b": jnp.zeros((1, D), jnp.float32),
        # Hyena operator (order 2): in_proj, short filter (k=3), long filter, out_proj
        "w_in": w(keys[0], (D, 3 * D)), "b_in": jnp.zeros((1, 3 * D), jnp.float32),
        "sf_w": w(keys[1], (3, 3 * D), 0.2), "sf_b": jnp.zeros((1, 3 * D), jnp.float32),
        "lf_w": w(keys[2], (L, D), 0.1), "lf_b": w(keys[3], (1, D), 0.1),
        "w_out": w(keys[4], (D, D)), "b_out": jnp.zeros((1, D), jnp.float32),
        # FFN
        "w1": w(keys[5], (D, I)), "b1": jnp.zeros((1, I), jnp.float32),
        "w2": w(keys[6], (I, D)), "b2": jnp.zeros((1, D), jnp.float32),
        # Cross-attention (weights stored as (in, out), i.e. already transposed
        # relative to PyTorch's (out, in) Linear convention)
        "wq": w(keys[7], (D, D)), "bq": jnp.zeros((1, D), jnp.float32),
        "wk": w(keys[8], (D, D)), "bk": jnp.zeros((1, D), jnp.float32),
        "wv": w(keys[9], (D, D)), "bv": jnp.zeros((1, D), jnp.float32),
        "wo": w(keys[10], (D, D)), "bo": jnp.zeros((1, D), jnp.float32),
        # Position-encoding table
        "pe": _sinusoidal_pe(MAX_POS, D),
    }


# --------------------------------- main --------------------------------------
if __name__ == "__main__":
    key = jax.random.PRNGKey(0)
    kx, ko, kp = jax.random.split(key, 3)
    hidden_states = jax.random.normal(kx, (BATCH, SEQ_LEN, HIDDEN), jnp.float32)
    original_sequence = jax.random.normal(ko, (BATCH, SEQ_LEN, HIDDEN), jnp.float32)
    params = init_params(kp)

    fwd = jax.jit(hyena_glt_block_forward)
    out, merge_info = fwd(hidden_states, original_sequence, params)
    out = jax.block_until_ready(out)

    assert out.shape == (BATCH, SEQ_LEN, HIDDEN)
    assert bool(jnp.all(jnp.isfinite(out)))
    print("KERNEL_OK")
</pallas_src>

<mosaic_0001>
module attributes {stable_mosaic.version = 11 : i64} {
  func.func @fused_hyena_glt_kernel(%arg0: memref<32x32xf32, #tpu.memory_space<vmem>>, %arg1: memref<32x32xf32, #tpu.memory_space<vmem>>, %arg2: memref<32x32xf32, #tpu.memory_space<vmem>>, %arg3: memref<1x32xf32, #tpu.memory_space<vmem>>, %arg4: memref<1x32xf32, #tpu.memory_space<vmem>>, %arg5: memref<3x32x32xbf16, #tpu.memory_space<vmem>>, %arg6: memref<3x1x32xf32, #tpu.memory_space<vmem>>, %arg7: memref<3x3x32xf32, #tpu.memory_space<vmem>>, %arg8: memref<3x1x32xf32, #tpu.memory_space<vmem>>, %arg9: memref<16x32xf32, #tpu.memory_space<vmem>>, %arg10: memref<1x32xf32, #tpu.memory_space<vmem>>, %arg11: memref<32x32xbf16, #tpu.memory_space<vmem>>, %arg12: memref<1x32xf32, #tpu.memory_space<vmem>>, %arg13: memref<1x32xf32, #tpu.memory_space<vmem>>, %arg14: memref<1x32xf32, #tpu.memory_space<vmem>>, %arg15: memref<32x64xbf16, #tpu.memory_space<vmem>>, %arg16: memref<1x64xf32, #tpu.memory_space<vmem>>, %arg17: memref<64x32xbf16, #tpu.memory_space<vmem>>, %arg18: memref<1x32xf32, #tpu.memory_space<vmem>>, %arg19: memref<1x32xf32, #tpu.memory_space<vmem>>, %arg20: memref<1x32xf32, #tpu.memory_space<vmem>>, %arg21: memref<32x32xbf16, #tpu.memory_space<vmem>>, %arg22: memref<1x32xf32, #tpu.memory_space<vmem>>, %arg23: memref<32x32xbf16, #tpu.memory_space<vmem>>, %arg24: memref<1x32xf32, #tpu.memory_space<vmem>>, %arg25: memref<32x32xbf16, #tpu.memory_space<vmem>>, %arg26: memref<1x32xf32, #tpu.memory_space<vmem>>, %arg27: memref<4x8x32xbf16, #tpu.memory_space<vmem>>, %arg28: memref<1x32xf32, #tpu.memory_space<vmem>>, %arg29: memref<32x32xf32, #tpu.memory_space<vmem>>) attributes {dimension_semantics = [], scalar_prefetch = 0 : i64, scratch_operands = 0 : i64, tpu.core_type = #tpu.core_type<tc>} {
    %0 = tpu.iota {dimensions = array<i32: 0>} : vector<32x1xi32>
    %c16_i32 = arith.constant 16 : i32
    %c0_i32 = arith.constant 0 : i32
    %1 = arith.cmpi eq, %c16_i32, %c0_i32 : i32
    %c1_i32 = arith.constant 1 : i32
    %2 = arith.select %1, %c1_i32, %c16_i32 : i32
    %3 = vector.broadcast %2 : i32 to vector<32x1xi32>
    %4 = arith.remsi %0, %3 : vector<32x1xi32>
    %c0_i32_0 = arith.constant 0 : i32
    %5 = vector.broadcast %c0_i32_0 : i32 to vector<32x1xi32>
    %6 = arith.cmpi ne, %4, %5 : vector<32x1xi32>
    %c0_i32_1 = arith.constant 0 : i32
    %7 = vector.broadcast %c0_i32_1 : i32 to vector<32x1xi32>
    %8 = arith.cmpi slt, %4, %7 : vector<32x1xi32>
    %c0_i32_2 = arith.constant 0 : i32
    %9 = arith.cmpi slt, %2, %c0_i32_2 : i32
    %10 = vector.broadcast %9 : i1 to vector<32x1xi1>
    %11 = vector.broadcast %10 : vector<32x1xi1> to vector<32x1xi1>
    %12 = arith.xori %8, %11 : vector<32x1xi1>
    %13 = arith.andi %12, %6 : vector<32x1xi1>
    %14 = vector.broadcast %2 : i32 to vector<32x1xi32>
    %15 = arith.addi %4, %14 : vector<32x1xi32>
    %16 = arith.select %13, %15, %4 : vector<32x1xi1>, vector<32x1xi32>
    %c0 = arith.constant 0 : index
    %c0_3 = arith.constant 0 : index
    %17 = vector.load %arg0[%c0, %c0_3] : memref<32x32xf32, #tpu.memory_space<vmem>>, vector<32x32xf32>
    %c0_4 = arith.constant 0 : index
    %c0_5 = arith.constant 0 : index
    %18 = vector.load %arg1[%c0_4, %c0_5] : memref<32x32xf32, #tpu.memory_space<vmem>>, vector<32x32xf32>
    %19 = arith.addf %17, %18 : vector<32x32xf32>
    %c0_6 = arith.constant 0 : index
    %c0_7 = arith.constant 0 : index
    %20 = vector.load %arg3[%c0_6, %c0_7] : memref<1x32xf32, #tpu.memory_space<vmem>>, vector<1x32xf32>
    %c0_8 = arith.constant 0 : index
    %c0_9 = arith.constant 0 : index
    %21 = vector.load %arg4[%c0_8, %c0_9] : memref<1x32xf32, #tpu.memory_space<vmem>>, vector<1x32xf32>
    %cst = arith.constant dense<0.000000e+00> : vector<32xf32>
    %22 = vector.multi_reduction <add>, %19, %cst [1] : vector<32x32xf32> to vector<32xf32>
    %23 = vector.shape_cast %22 : vector<32xf32> to vector<32x1xf32>
    %cst_10 = arith.constant 3.200000e+01 : f32
    %24 = vector.broadcast %cst_10 : f32 to vector<32x1xf32>
    %25 = arith.divf %23, %24 : vector<32x1xf32>
    %26 = vector.broadcast %25 : vector<32x1xf32> to vector<32x32xf32>
    %27 = arith.subf %19, %26 : vector<32x32xf32>
    %28 = arith.mulf %27, %27 : vector<32x32xf32>
    %cst_11 = arith.constant dense<0.000000e+00> : vector<32xf32>
    %29 = vector.multi_reduction <add>, %28, %cst_11 [1] : vector<32x32xf32> to vector<32xf32>
    %30 = vector.shape_cast %29 : vector<32xf32> to vector<32x1xf32>
    %cst_12 = arith.constant 3.200000e+01 : f32
    %31 = vector.broadcast %cst_12 : f32 to vector<32x1xf32>
    %32 = arith.divf %30, %31 : vector<32x1xf32>
    %33 = vector.broadcast %25 : vector<32x1xf32> to vector<32x32xf32>
    %34 = arith.subf %19, %33 : vector<32x32xf32>
    %cst_13 = arith.constant 9.99999974E-6 : f32
    %35 = vector.broadcast %cst_13 : f32 to vector<32x1xf32>
    %36 = arith.addf %32, %35 : vector<32x1xf32>
    %37 = math.rsqrt %36 : vector<32x1xf32>
    %38 = vector.broadcast %37 : vector<32x1xf32> to vector<32x32xf32>
    %39 = arith.mulf %34, %38 : vector<32x32xf32>
    %40 = vector.broadcast %20 : vector<1x32xf32> to vector<32x32xf32>
    %41 = arith.mulf %39, %40 : vector<32x32xf32>
    %42 = vector.broadcast %21 : vector<1x32xf32> to vector<32x32xf32>
    %43 = arith.addf %41, %42 : vector<32x32xf32>
    %44 = arith.truncf %43 : vector<32x32xf32> to vector<32x32xbf16>
    %c0_14 = arith.constant 0 : index
    %c0_15 = arith.constant 0 : index
    %c0_16 = arith.constant 0 : index
    %45 = vector.load %arg5[%c0_14, %c0_15, %c0_16] : memref<3x32x32xbf16, #tpu.memory_space<vmem>>, vector<1x32x32xbf16>
    %46 = vector.shape_cast %45 : vector<1x32x32xbf16> to vector<32x32xbf16>
    %cst_17 = arith.constant dense<0.000000e+00> : vector<32x32xf32>
    %47 = tpu.matmul %44, %46, %cst_17 {dimension_numbers = #tpu.dot_dimension_numbers<[1], [0], [0], [1], [0, 0, 1, 1], [], []>} : vector<32x32xbf16>, vector<32x32xbf16>, vector<32x32xf32> -> vector<32x32xf32>
    %c0_18 = arith.constant 0 : index
    %c0_19 = arith.constant 0 : index
    %c0_20 = arith.constant 0 : index
    %48 = vector.load %arg6[%c0_18, %c0_19, %c0_20] : memref<3x1x32xf32, #tpu.memory_space<vmem>>, vector<1x1x32xf32>
    %49 = vector.shape_cast %48 : vector<1x1x32xf32> to vector<1x32xf32>
    %50 = vector.broadcast %49 : vector<1x32xf32> to vector<32x32xf32>
    %51 = arith.addf %47, %50 : vector<32x32xf32>
    %c0_21 = arith.constant 0 : index
    %c0_22 = arith.constant 0 : index
    %c0_23 = arith.constant 0 : index
    %52 = vector.load %arg7[%c0_21, %c0_22, %c0_23] : memref<3x3x32xf32, #tpu.memory_space<vmem>>, vector<1x3x32xf32>
    %53 = vector.shape_cast %52 : vector<1x3x32xf32> to vector<3x32xf32>
    %54 = vector.extract_strided_slice %53 {offsets = [0, 0], sizes = [1, 32], strides = [1, 1]} : vector<3x32xf32> to vector<1x32xf32>
    %55 = vector.broadcast %54 : vector<1x32xf32> to vector<32x32xf32>
    %56 = arith.mulf %51, %55 : vector<32x32xf32>
    %c1_i32_24 = arith.constant 1 : i32
    %57 = tpu.dynamic_rotate %51 by %c1_i32_24 dim 0 : vector<32x32xf32>, i32 -> vector<32x32xf32>
    %c1_i32_25 = arith.constant 1 : i32
    %58 = vector.broadcast %c1_i32_25 : i32 to vector<32x1xi32>
    %59 = arith.cmpi sge, %16, %58 : vector<32x1xi32>
    %cst_26 = arith.constant 0.000000e+00 : f32
    %60 = vector.shape_cast %59 : vector<32x1xi1> to vector<32x1xi1>
    %61 = vector.broadcast %60 : vector<32x1xi1> to vector<32x32xi1>
    %62 = vector.broadcast %cst_26 : f32 to vector<32x32xf32>
    %63 = arith.select %61, %57, %62 : vector<32x32xi1>, vector<32x32xf32>
    %64 = vector.extract_strided_slice %53 {offsets = [1, 0], sizes = [1, 32], strides = [1, 1]} : vector<3x32xf32> to vector<1x32xf32>
    %65 = vector.broadcast %64 : vector<1x32xf32> to vector<32x32xf32>
    %66 = arith.mulf %63, %65 : vector<32x32xf32>
    %67 = arith.addf %56, %66 : vector<32x32xf32>
    %c2_i32 = arith.constant 2 : i32
    %68 = tpu.dynamic_rotate %51 by %c2_i32 dim 0 : vector<32x32xf32>, i32 -> vector<32x32xf32>
    %c2_i32_27 = arith.constant 2 : i32
    %69 = vector.broadcast %c2_i32_27 : i32 to vector<32x1xi32>
    %70 = arith.cmpi sge, %16, %69 : vector<32x1xi32>
    %cst_28 = arith.constant 0.000000e+00 : f32
    %71 = vector.shape_cast %70 : vector<32x1xi1> to vector<32x1xi1>
    %72 = vector.broadcast %71 : vector<32x1xi1> to vector<32x32xi1>
    %73 = vector.broadcast %cst_28 : f32 to vector<32x32xf32>
    %74 = arith.select %72, %68, %73 : vector<32x32xi1>, vector<32x32xf32>
    %75 = vector.extract_strided_slice %53 {offsets = [2, 0], sizes = [1, 32], strides = [1, 1]} : vector<3x32xf32> to vector<1x32xf32>
    %76 = vector.broadcast %75 : vector<1x32xf32> to vector<32x32xf32>
    %77 = arith.mulf %74, %76 : vector<32x32xf32>
    %78 = arith.addf %67, %77 : vector<32x32xf32>
    %c0_29 = arith.constant 0 : index
    %c0_30 = arith.constant 0 : index
    %c0_31 = arith.constant 0 : index
    %79 = vector.load %arg8[%c0_29, %c0_30, %c0_31] : memref<3x1x32xf32, #tpu.memory_space<vmem>>, vector<1x1x32xf32>
    %80 = vector.shape_cast %79 : vector<1x1x32xf32> to vector<1x32xf32>
    %81 = vector.broadcast %80 : vector<1x32xf32> to vector<32x32xf32>
    %82 = arith.addf %78, %81 : vector<32x32xf32>
    %c1 = arith.constant 1 : index
    %c0_32 = arith.constant 0 : index
    %c0_33 = arith.constant 0 : index
    %83 = vector.load %arg5[%c1, %c0_32, %c0_33] : memref<3x32x32xbf16, #tpu.memory_space<vmem>>, vector<1x32x32xbf16>
    %84 = vector.shape_cast %83 : vector<1x32x32xbf16> to vector<32x32xbf16>
    %cst_34 = arith.constant dense<0.000000e+00> : vector<32x32xf32>
    %85 = tpu.matmul %44, %84, %cst_34 {dimension_numbers = #tpu.dot_dimension_numbers<[1], [0], [0], [1], [0, 0, 1, 1], [], []>} : vector<32x32xbf16>, vector<32x32xbf16>, vector<32x32xf32> -> vector<32x32xf32>
    %c1_35 = arith.constant 1 : index
    %c0_36 = arith.constant 0 : index
    %c0_37 = arith.constant 0 : index
    %86 = vector.load %arg6[%c1_35, %c0_36, %c0_37] : memref<3x1x32xf32, #tpu.memory_space<vmem>>, vector<1x1x32xf32>
    %87 = vector.shape_cast %86 : vector<1x1x32xf32> to vector<1x32xf32>
    %88 = vector.broadcast %87 : vector<1x32xf32> to vector<32x32xf32>
    %89 = arith.addf %85, %88 : vector<32x32xf32>
    %c1_38 = arith.constant 1 : index
    %c0_39 = arith.constant 0 : index
    %c0_40 = arith.constant 0 : index
    %90 = vector.load %arg7[%c1_38, %c0_39, %c0_40] : memref<3x3x32xf32, #tpu.memory_space<vmem>>, vector<1x3x32xf32>
    %91 = vector.shape_cast %90 : vector<1x3x32xf32> to vector<3x32xf32>
    %92 = vector.extract_strided_slice %91 {offsets = [0, 0], sizes = [1, 32], strides = [1, 1]} : vector<3x32xf32> to vector<1x32xf32>
    %93 = vector.broadcast %92 : vector<1x32xf32> to vector<32x32xf32>
    %94 = arith.mulf %89, %93 : vector<32x32xf32>
    %c1_i32_41 = arith.constant 1 : i32
    %95 = tpu.dynamic_rotate %89 by %c1_i32_41 dim 0 : vector<32x32xf32>, i32 -> vector<32x32xf32>
    %c1_i32_42 = arith.constant 1 : i32
    %96 = vector.broadcast %c1_i32_42 : i32 to vector<32x1xi32>
    %97 = arith.cmpi sge, %16, %96 : vector<32x1xi32>
    %cst_43 = arith.constant 0.000000e+00 : f32
    %98 = vector.shape_cast %97 : vector<32x1xi1> to vector<32x1xi1>
    %99 = vector.broadcast %98 : vector<32x1xi1> to vector<32x32xi1>
    %100 = vector.broadcast %cst_43 : f32 to vector<32x32xf32>
    %101 = arith.select %99, %95, %100 : vector<32x32xi1>, vector<32x32xf32>
    %102 = vector.extract_strided_slice %91 {offsets = [1, 0], sizes = [1, 32], strides = [1, 1]} : vector<3x32xf32> to vector<1x32xf32>
    %103 = vector.broadcast %102 : vector<1x32xf32> to vector<32x32xf32>
    %104 = arith.mulf %101, %103 : vector<32x32xf32>
    %105 = arith.addf %94, %104 : vector<32x32xf32>
    %c2_i32_44 = arith.constant 2 : i32
    %106 = tpu.dynamic_rotate %89 by %c2_i32_44 dim 0 : vector<32x32xf32>, i32 -> vector<32x32xf32>
    %c2_i32_45 = arith.constant 2 : i32
    %107 = vector.broadcast %c2_i32_45 : i32 to vector<32x1xi32>
    %108 = arith.cmpi sge, %16, %107 : vector<32x1xi32>
    %cst_46 = arith.constant 0.000000e+00 : f32
    %109 = vector.shape_cast %108 : vector<32x1xi1> to vector<32x1xi1>
    %110 = vector.broadcast %109 : vector<32x1xi1> to vector<32x32xi1>
    %111 = vector.broadcast %cst_46 : f32 to vector<32x32xf32>
    %112 = arith.select %110, %106, %111 : vector<32x32xi1>, vector<32x32xf32>
    %113 = vector.extract_strided_slice %91 {offsets = [2, 0], sizes = [1, 32], strides = [1, 1]} : vector<3x32xf32> to vector<1x32xf32>
    %114 = vector.broadcast %113 : vector<1x32xf32> to vector<32x32xf32>
    %115 = arith.mulf %112, %114 : vector<32x32xf32>
    %116 = arith.addf %105, %115 : vector<32x32xf32>
    %c1_47 = arith.constant 1 : index
    %c0_48 = arith.constant 0 : index
    %c0_49 = arith.constant 0 : index
    %117 = vector.load %arg8[%c1_47, %c0_48, %c0_49] : memref<3x1x32xf32, #tpu.memory_space<vmem>>, vector<1x1x32xf32>
    %118 = vector.shape_cast %117 : vector<1x1x32xf32> to vector<1x32xf32>
    %119 = vector.broadcast %118 : vector<1x32xf32> to vector<32x32xf32>
    %120 = arith.addf %116, %119 : vector<32x32xf32>
    %c2 = arith.constant 2 : index
    %c0_50 = arith.constant 0 : index
    %c0_51 = arith.constant 0 : index
    %121 = vector.load %arg5[%c2, %c0_50, %c0_51] : memref<3x32x32xbf16, #tpu.memory_space<vmem>>, vector<1x32x32xbf16>
    %122 = vector.shape_cast %121 : vector<1x32x32xbf16> to vector<32x32xbf16>
    %cst_52 = arith.constant dense<0.000000e+00> : vector<32x32xf32>
    %123 = tpu.matmul %44, %122, %cst_52 {dimension_numbers = #tpu.dot_dimension_numbers<[1], [0], [0], [1], [0, 0, 1, 1], [], []>} : vector<32x32xbf16>, vector<32x32xbf16>, vector<32x32xf32> -> vector<32x32xf32>
    %c2_53 = arith.constant 2 : index
    %c0_54 = arith.constant 0 : index
    %c0_55 = arith.constant 0 : index
    %124 = vector.load %arg6[%c2_53, %c0_54, %c0_55] : memref<3x1x32xf32, #tpu.memory_space<vmem>>, vector<1x1x32xf32>
    %125 = vector.shape_cast %124 : vector<1x1x32xf32> to vector<1x32xf32>
    %126 = vector.broadcast %125 : vector<1x32xf32> to vector<32x32xf32>
    %127 = arith.addf %123, %126 : vector<32x32xf32>
    %c2_56 = arith.constant 2 : index
    %c0_57 = arith.constant 0 : index
    %c0_58 = arith.constant 0 : index
    %128 = vector.load %arg7[%c2_56, %c0_57, %c0_58] : memref<3x3x32xf32, #tpu.memory_space<vmem>>, vector<1x3x32xf32>
    %129 = vector.shape_cast %128 : vector<1x3x32xf32> to vector<3x32xf32>
    %130 = vector.extract_strided_slice %129 {offsets = [0, 0], sizes = [1, 32], strides = [1, 1]} : vector<3x32xf32> to vector<1x32xf32>
    %131 = vector.broadcast %130 : vector<1x32xf32> to vector<32x32xf32>
    %132 = arith.mulf %127, %131 : vector<32x32xf32>
    %c1_i32_59 = arith.constant 1 : i32
    %133 = tpu.dynamic_rotate %127 by %c1_i32_59 dim 0 : vector<32x32xf32>, i32 -> vector<32x32xf32>
    %c1_i32_60 = arith.constant 1 : i32
    %134 = vector.broadcast %c1_i32_60 : i32 to vector<32x1xi32>
    %135 = arith.cmpi sge, %16, %134 : vector<32x1xi32>
    %cst_61 = arith.constant 0.000000e+00 : f32
    %136 = vector.shape_cast %135 : vector<32x1xi1> to vector<32x1xi1>
    %137 = vector.broadcast %136 : vector<32x1xi1> to vector<32x32xi1>
    %138 = vector.broadcast %cst_61 : f32 to vector<32x32xf32>
    %139 = arith.select %137, %133, %138 : vector<32x32xi1>, vector<32x32xf32>
    %140 = vector.extract_strided_slice %129 {offsets = [1, 0], sizes = [1, 32], strides = [1, 1]} : vector<3x32xf32> to vector<1x32xf32>
    %141 = vector.broadcast %140 : vector<1x32xf32> to vector<32x32xf32>
    %142 = arith.mulf %139, %141 : vector<32x32xf32>
    %143 = arith.addf %132, %142 : vector<32x32xf32>
    %c2_i32_62 = arith.constant 2 : i32
    %144 = tpu.dynamic_rotate %127 by %c2_i32_62 dim 0 : vector<32x32xf32>, i32 -> vector<32x32xf32>
    %c2_i32_63 = arith.constant 2 : i32
    %145 = vector.broadcast %c2_i32_63 : i32 to vector<32x1xi32>
    %146 = arith.cmpi sge, %16, %145 : vector<32x1xi32>
    %cst_64 = arith.constant 0.000000e+00 : f32
    %147 = vector.shape_cast %146 : vector<32x1xi1> to vector<32x1xi1>
    %148 = vector.broadcast %147 : vector<32x1xi1> to vector<32x32xi1>
    %149 = vector.broadcast %cst_64 : f32 to vector<32x32xf32>
    %150 = arith.select %148, %144, %149 : vector<32x32xi1>, vector<32x32xf32>
    %151 = vector.extract_strided_slice %129 {offsets = [2, 0], sizes = [1, 32], strides = [1, 1]} : vector<3x32xf32> to vector<1x32xf32>
    %152 = vector.broadcast %151 : vector<1x32xf32> to vector<32x32xf32>
    %153 = arith.mulf %150, %152 : vector<32x32xf32>
    %154 = arith.addf %143, %153 : vector<32x32xf32>
    %c2_65 = arith.constant 2 : index
    %c0_66 = arith.constant 0 : index
    %c0_67 = arith.constant 0 : index
    %155 = vector.load %arg8[%c2_65, %c0_66, %c0_67] : memref<3x1x32xf32, #tpu.memory_space<vmem>>, vector<1x1x32xf32>
    %156 = vector.shape_cast %155 : vector<1x1x32xf32> to vector<1x32xf32>
    %157 = vector.broadcast %156 : vector<1x32xf32> to vector<32x32xf32>
    %158 = arith.addf %154, %157 : vector<32x32xf32>
    %159 = arith.mulf %158, %82 : vector<32x32xf32>
    %c0_68 = arith.constant 0 : index
    %c0_69 = arith.constant 0 : index
    %160 = vector.load %arg9[%c0_68, %c0_69] : memref<16x32xf32, #tpu.memory_space<vmem>>, vector<16x32xf32>
    %161 = vector.extract_strided_slice %160 {offsets = [0, 0], sizes = [1, 32], strides = [1, 1]} : vector<16x32xf32> to vector<1x32xf32>
    %162 = vector.broadcast %161 : vector<1x32xf32> to vector<32x32xf32>
    %163 = arith.mulf %159, %162 : vector<32x32xf32>
    %c1_i32_70 = arith.constant 1 : i32
    %164 = tpu.dynamic_rotate %159 by %c1_i32_70 dim 0 : vector<32x32xf32>, i32 -> vector<32x32xf32>
    %c1_i32_71 = arith.constant 1 : i32
    %165 = vector.broadcast %c1_i32_71 : i32 to vector<32x1xi32>
    %166 = arith.cmpi sge, %16, %165 : vector<32x1xi32>
    %cst_72 = arith.constant 0.000000e+00 : f32
    %167 = vector.shape_cast %166 : vector<32x1xi1> to vector<32x1xi1>
    %168 = vector.broadcast %167 : vector<32x1xi1> to vector<32x32xi1>
    %169 = vector.broadcast %cst_72 : f32 to vector<32x32xf32>
    %170 = arith.select %168, %164, %169 : vector<32x32xi1>, vector<32x32xf32>
    %171 = vector.extract_strided_slice %160 {offsets = [1, 0], sizes = [1, 32], strides = [1, 1]} : vector<16x32xf32> to vector<1x32xf32>
    %172 = vector.broadcast %171 : vector<1x32xf32> to vector<32x32xf32>
    %173 = arith.mulf %170, %172 : vector<32x32xf32>
    %174 = arith.addf %163, %173 : vector<32x32xf32>
    %c2_i32_73 = arith.constant 2 : i32
    %175 = tpu.dynamic_rotate %159 by %c2_i32_73 dim 0 : vector<32x32xf32>, i32 -> vector<32x32xf32>
    %c2_i32_74 = arith.constant 2 : i32
    %176 = vector.broadcast %c2_i32_74 : i32 to vector<32x1xi32>
    %177 = arith.cmpi sge, %16, %176 : vector<32x1xi32>
    %cst_75 = arith.constant 0.000000e+00 : f32
    %178 = vector.shape_cast %177 : vector<32x1xi1> to vector<32x1xi1>
    %179 = vector.broadcast %178 : vector<32x1xi1> to vector<32x32xi1>
    %180 = vector.broadcast %cst_75 : f32 to vector<32x32xf32>
    %181 = arith.select %179, %175, %180 : vector<32x32xi1>, vector<32x32xf32>
    %182 = vector.extract_strided_slice %160 {offsets = [2, 0], sizes = [1, 32], strides = [1, 1]} : vector<16x32xf32> to vector<1x32xf32>
    %183 = vector.broadcast %182 : vector<1x32xf32> to vector<32x32xf32>
    %184 = arith.mulf %181, %183 : vector<32x32xf32>
    %185 = arith.addf %174, %184 : vector<32x32xf32>
    %c3_i32 = arith.constant 3 : i32
    %186 = tpu.dynamic_rotate %159 by %c3_i32 dim 0 : vector<32x32xf32>, i32 -> vector<32x32xf32>
    %c3_i32_76 = arith.constant 3 : i32
    %187 = vector.broadcast %c3_i32_76 : i32 to vector<32x1xi32>
    %188 = arith.cmpi sge, %16, %187 : vector<32x1xi32>
    %cst_77 = arith.constant 0.000000e+00 : f32
    %189 = vector.shape_cast %188 : vector<32x1xi1> to vector<32x1xi1>
    %190 = vector.broadcast %189 : vector<32x1xi1> to vector<32x32xi1>
    %191 = vector.broadcast %cst_77 : f32 to vector<32x32xf32>
    %192 = arith.select %190, %186, %191 : vector<32x32xi1>, vector<32x32xf32>
    %193 = vector.extract_strided_slice %160 {offsets = [3, 0], sizes = [1, 32], strides = [1, 1]} : vector<16x32xf32> to vector<1x32xf32>
    %194 = vector.broadcast %193 : vector<1x32xf32> to vector<32x32xf32>
    %195 = arith.mulf %192, %194 : vector<32x32xf32>
    %196 = arith.addf %185, %195 : vector<32x32xf32>
    %c4_i32 = arith.constant 4 : i32
    %197 = tpu.dynamic_rotate %159 by %c4_i32 dim 0 : vector<32x32xf32>, i32 -> vector<32x32xf32>
    %c4_i32_78 = arith.constant 4 : i32
    %198 = vector.broadcast %c4_i32_78 : i32 to vector<32x1xi32>
    %199 = arith.cmpi sge, %16, %198 : vector<32x1xi32>
    %cst_79 = arith.constant 0.000000e+00 : f32
    %200 = vector.shape_cast %199 : vector<32x1xi1> to vector<32x1xi1>
    %201 = vector.broadcast %200 : vector<32x1xi1> to vector<32x32xi1>
    %202 = vector.broadcast %cst_79 : f32 to vector<32x32xf32>
    %203 = arith.select %201, %197, %202 : vector<32x32xi1>, vector<32x32xf32>
    %204 = vector.extract_strided_slice %160 {offsets = [4, 0], sizes = [1, 32], strides = [1, 1]} : vector<16x32xf32> to vector<1x32xf32>
    %205 = vector.broadcast %204 : vector<1x32xf32> to vector<32x32xf32>
    %206 = arith.mulf %203, %205 : vector<32x32xf32>
    %207 = arith.addf %196, %206 : vector<32x32xf32>
    %c5_i32 = arith.constant 5 : i32
    %208 = tpu.dynamic_rotate %159 by %c5_i32 dim 0 : vector<32x32xf32>, i32 -> vector<32x32xf32>
    %c5_i32_80 = arith.constant 5 : i32
    %209 = vector.broadcast %c5_i32_80 : i32 to vector<32x1xi32>
    %210 = arith.cmpi sge, %16, %209 : vector<32x1xi32>
    %cst_81 = arith.constant 0.000000e+00 : f32
    %211 = vector.shape_cast %210 : vector<32x1xi1> to vector<32x1xi1>
    %212 = vector.broadcast %211 : vector<32x1xi1> to vector<32x32xi1>
    %213 = vector.broadcast %cst_81 : f32 to vector<32x32xf32>
    %214 = arith.select %212, %208, %213 : vector<32x32xi1>, vector<32x32xf32>
    %215 = vector.extract_strided_slice %160 {offsets = [5, 0], sizes = [1, 32], strides = [1, 1]} : vector<16x32xf32> to vector<1x32xf32>
    %216 = vector.broadcast %215 : vector<1x32xf32> to vector<32x32xf32>
    %217 = arith.mulf %214, %216 : vector<32x32xf32>
    %218 = arith.addf %207, %217 : vector<32x32xf32>
    %c6_i32 = arith.constant 6 : i32
    %219 = tpu.dynamic_rotate %159 by %c6_i32 dim 0 : vector<32x32xf32>, i32 -> vector<32x32xf32>
    %c6_i32_82 = arith.constant 6 : i32
    %220 = vector.broadcast %c6_i32_82 : i32 to vector<32x1xi32>
    %221 = arith.cmpi sge, %16, %220 : vector<32x1xi32>
    %cst_83 = arith.constant 0.000000e+00 : f32
    %222 = vector.shape_cast %221 : vector<32x1xi1> to vector<32x1xi1>
    %223 = vector.broadcast %222 : vector<32x1xi1> to vector<32x32xi1>
    %224 = vector.broadcast %cst_83 : f32 to vector<32x32xf32>
    %225 = arith.select %223, %219, %224 : vector<32x32xi1>, vector<32x32xf32>
    %226 = vector.extract_strided_slice %160 {offsets = [6, 0], sizes = [1, 32], strides = [1, 1]} : vector<16x32xf32> to vector<1x32xf32>
    %227 = vector.broadcast %226 : vector<1x32xf32> to vector<32x32xf32>
    %228 = arith.mulf %225, %227 : vector<32x32xf32>
    %229 = arith.addf %218, %228 : vector<32x32xf32>
    %c7_i32 = arith.constant 7 : i32
    %230 = tpu.dynamic_rotate %159 by %c7_i32 dim 0 : vector<32x32xf32>, i32 -> vector<32x32xf32>
    %c7_i32_84 = arith.constant 7 : i32
    %231 = vector.broadcast %c7_i32_84 : i32 to vector<32x1xi32>
    %232 = arith.cmpi sge, %16, %231 : vector<32x1xi32>
    %cst_85 = arith.constant 0.000000e+00 : f32
    %233 = vector.shape_cast %232 : vector<32x1xi1> to vector<32x1xi1>
    %234 = vector.broadcast %233 : vector<32x1xi1> to vector<32x32xi1>
    %235 = vector.broadcast %cst_85 : f32 to vector<32x32xf32>
    %236 = arith.select %234, %230, %235 : vector<32x32xi1>, vector<32x32xf32>
    %237 = vector.extract_strided_slice %160 {offsets = [7, 0], sizes = [1, 32], strides = [1, 1]} : vector<16x32xf32> to vector<1x32xf32>
    %238 = vector.broadcast %237 : vector<1x32xf32> to vector<32x32xf32>
    %239 = arith.mulf %236, %238 : vector<32x32xf32>
    %240 = arith.addf %229, %239 : vector<32x32xf32>
    %c8_i32 = arith.constant 8 : i32
    %241 = tpu.dynamic_rotate %159 by %c8_i32 dim 0 : vector<32x32xf32>, i32 -> vector<32x32xf32>
    %c8_i32_86 = arith.constant 8 : i32
    %242 = vector.broadcast %c8_i32_86 : i32 to vector<32x1xi32>
    %243 = arith.cmpi sge, %16, %242 : vector<32x1xi32>
    %cst_87 = arith.constant 0.000000e+00 : f32
    %244 = vector.shape_cast %243 : vector<32x1xi1> to vector<32x1xi1>
    %245 = vector.broadcast %244 : vector<32x1xi1> to vector<32x32xi1>
    %246 = vector.broadcast %cst_87 : f32 to vector<32x32xf32>
    %247 = arith.select %245, %241, %246 : vector<32x32xi1>, vector<32x32xf32>
    %248 = vector.extract_strided_slice %160 {offsets = [8, 0], sizes = [1, 32], strides = [1, 1]} : vector<16x32xf32> to vector<1x32xf32>
    %249 = vector.broadcast %248 : vector<1x32xf32> to vector<32x32xf32>
    %250 = arith.mulf %247, %249 : vector<32x32xf32>
    %251 = arith.addf %240, %250 : vector<32x32xf32>
    %c9_i32 = arith.constant 9 : i32
    %252 = tpu.dynamic_rotate %159 by %c9_i32 dim 0 : vector<32x32xf32>, i32 -> vector<32x32xf32>
    %c9_i32_88 = arith.constant 9 : i32
    %253 = vector.broadcast %c9_i32_88 : i32 to vector<32x1xi32>
    %254 = arith.cmpi sge, %16, %253 : vector<32x1xi32>
    %cst_89 = arith.constant 0.000000e+00 : f32
    %255 = vector.shape_cast %254 : vector<32x1xi1> to vector<32x1xi1>
    %256 = vector.broadcast %255 : vector<32x1xi1> to vector<32x32xi1>
    %257 = vector.broadcast %cst_89 : f32 to vector<32x32xf32>
    %258 = arith.select %256, %252, %257 : vector<32x32xi1>, vector<32x32xf32>
    %259 = vector.extract_strided_slice %160 {offsets = [9, 0], sizes = [1, 32], strides = [1, 1]} : vector<16x32xf32> to vector<1x32xf32>
    %260 = vector.broadcast %259 : vector<1x32xf32> to vector<32x32xf32>
    %261 = arith.mulf %258, %260 : vector<32x32xf32>
    %262 = arith.addf %251, %261 : vector<32x32xf32>
    %c10_i32 = arith.constant 10 : i32
    %263 = tpu.dynamic_rotate %159 by %c10_i32 dim 0 : vector<32x32xf32>, i32 -> vector<32x32xf32>
    %c10_i32_90 = arith.constant 10 : i32
    %264 = vector.broadcast %c10_i32_90 : i32 to vector<32x1xi32>
    %265 = arith.cmpi sge, %16, %264 : vector<32x1xi32>
    %cst_91 = arith.constant 0.000000e+00 : f32
    %266 = vector.shape_cast %265 : vector<32x1xi1> to vector<32x1xi1>
    %267 = vector.broadcast %266 : vector<32x1xi1> to vector<32x32xi1>
    %268 = vector.broadcast %cst_91 : f32 to vector<32x32xf32>
    %269 = arith.select %267, %263, %268 : vector<32x32xi1>, vector<32x32xf32>
    %270 = vector.extract_strided_slice %160 {offsets = [10, 0], sizes = [1, 32], strides = [1, 1]} : vector<16x32xf32> to vector<1x32xf32>
    %271 = vector.broadcast %270 : vector<1x32xf32> to vector<32x32xf32>
    %272 = arith.mulf %269, %271 : vector<32x32xf32>
    %273 = arith.addf %262, %272 : vector<32x32xf32>
    %c11_i32 = arith.constant 11 : i32
    %274 = tpu.dynamic_rotate %159 by %c11_i32 dim 0 : vector<32x32xf32>, i32 -> vector<32x32xf32>
    %c11_i32_92 = arith.constant 11 : i32
    %275 = vector.broadcast %c11_i32_92 : i32 to vector<32x1xi32>
    %276 = arith.cmpi sge, %16, %275 : vector<32x1xi32>
    %cst_93 = arith.constant 0.000000e+00 : f32
    %277 = vector.shape_cast %276 : vector<32x1xi1> to vector<32x1xi1>
    %278 = vector.broadcast %277 : vector<32x1xi1> to vector<32x32xi1>
    %279 = vector.broadcast %cst_93 : f32 to vector<32x32xf32>
    %280 = arith.select %278, %274, %279 : vector<32x32xi1>, vector<32x32xf32>
    %281 = vector.extract_strided_slice %160 {offsets = [11, 0], sizes = [1, 32], strides = [1, 1]} : vector<16x32xf32> to vector<1x32xf32>
    %282 = vector.broadcast %281 : vector<1x32xf32> to vector<32x32xf32>
    %283 = arith.mulf %280, %282 : vector<32x32xf32>
    %284 = arith.addf %273, %283 : vector<32x32xf32>
    %c12_i32 = arith.constant 12 : i32
    %285 = tpu.dynamic_rotate %159 by %c12_i32 dim 0 : vector<32x32xf32>, i32 -> vector<32x32xf32>
    %c12_i32_94 = arith.constant 12 : i32
    %286 = vector.broadcast %c12_i32_94 : i32 to vector<32x1xi32>
    %287 = arith.cmpi sge, %16, %286 : vector<32x1xi32>
    %cst_95 = arith.constant 0.000000e+00 : f32
    %288 = vector.shape_cast %287 : vector<32x1xi1> to vector<32x1xi1>
    %289 = vector.broadcast %288 : vector<32x1xi1> to vector<32x32xi1>
    %290 = vector.broadcast %cst_95 : f32 to vector<32x32xf32>
    %291 = arith.select %289, %285, %290 : vector<32x32xi1>, vector<32x32xf32>
    %292 = vector.extract_strided_slice %160 {offsets = [12, 0], sizes = [1, 32], strides = [1, 1]} : vector<16x32xf32> to vector<1x32xf32>
    %293 = vector.broadcast %292 : vector<1x32xf32> to vector<32x32xf32>
    %294 = arith.mulf %291, %293 : vector<32x32xf32>
    %295 = arith.addf %284, %294 : vector<32x32xf32>
    %c13_i32 = arith.constant 13 : i32
    %296 = tpu.dynamic_rotate %159 by %c13_i32 dim 0 : vector<32x32xf32>, i32 -> vector<32x32xf32>
    %c13_i32_96 = arith.constant 13 : i32
    %297 = vector.broadcast %c13_i32_96 : i32 to vector<32x1xi32>
    %298 = arith.cmpi sge, %16, %297 : vector<32x1xi32>
    %cst_97 = arith.constant 0.000000e+00 : f32
    %299 = vector.shape_cast %298 : vector<32x1xi1> to vector<32x1xi1>
    %300 = vector.broadcast %299 : vector<32x1xi1> to vector<32x32xi1>
    %301 = vector.broadcast %cst_97 : f32 to vector<32x32xf32>
    %302 = arith.select %300, %296, %301 : vector<32x32xi1>, vector<32x32xf32>
    %303 = vector.extract_strided_slice %160 {offsets = [13, 0], sizes = [1, 32], strides = [1, 1]} : vector<16x32xf32> to vector<1x32xf32>
    %304 = vector.broadcast %303 : vector<1x32xf32> to vector<32x32xf32>
    %305 = arith.mulf %302, %304 : vector<32x32xf32>
    %306 = arith.addf %295, %305 : vector<32x32xf32>
    %c14_i32 = arith.constant 14 : i32
    %307 = tpu.dynamic_rotate %159 by %c14_i32 dim 0 : vector<32x32xf32>, i32 -> vector<32x32xf32>
    %c14_i32_98 = arith.constant 14 : i32
    %308 = vector.broadcast %c14_i32_98 : i32 to vector<32x1xi32>
    %309 = arith.cmpi sge, %16, %308 : vector<32x1xi32>
    %cst_99 = arith.constant 0.000000e+00 : f32
    %310 = vector.shape_cast %309 : vector<32x1xi1> to vector<32x1xi1>
    %311 = vector.broadcast %310 : vector<32x1xi1> to vector<32x32xi1>
    %312 = vector.broadcast %cst_99 : f32 to vector<32x32xf32>
    %313 = arith.select %311, %307, %312 : vector<32x32xi1>, vector<32x32xf32>
    %314 = vector.extract_strided_slice %160 {offsets = [14, 0], sizes = [1, 32], strides = [1, 1]} : vector<16x32xf32> to vector<1x32xf32>
    %315 = vector.broadcast %314 : vector<1x32xf32> to vector<32x32xf32>
    %316 = arith.mulf %313, %315 : vector<32x32xf32>
    %317 = arith.addf %306, %316 : vector<32x32xf32>
    %c15_i32 = arith.constant 15 : i32
    %318 = tpu.dynamic_rotate %159 by %c15_i32 dim 0 : vector<32x32xf32>, i32 -> vector<32x32xf32>
    %c15_i32_100 = arith.constant 15 : i32
    %319 = vector.broadcast %c15_i32_100 : i32 to vector<32x1xi32>
    %320 = arith.cmpi sge, %16, %319 : vector<32x1xi32>
    %cst_101 = arith.constant 0.000000e+00 : f32
    %321 = vector.shape_cast %320 : vector<32x1xi1> to vector<32x1xi1>
    %322 = vector.broadcast %321 : vector<32x1xi1> to vector<32x32xi1>
    %323 = vector.broadcast %cst_101 : f32 to vector<32x32xf32>
    %324 = arith.select %322, %318, %323 : vector<32x32xi1>, vector<32x32xf32>
    %325 = vector.extract_strided_slice %160 {offsets = [15, 0], sizes = [1, 32], strides = [1, 1]} : vector<16x32xf32> to vector<1x32xf32>
    %326 = vector.broadcast %325 : vector<1x32xf32> to vector<32x32xf32>
    %327 = arith.mulf %324, %326 : vector<32x32xf32>
    %328 = arith.addf %317, %327 : vector<32x32xf32>
    %c0_102 = arith.constant 0 : index
    %c0_103 = arith.constant 0 : index
    %329 = vector.load %arg10[%c0_102, %c0_103] : memref<1x32xf32, #tpu.memory_space<vmem>>, vector<1x32xf32>
    %330 = vector.broadcast %329 : vector<1x32xf32> to vector<32x32xf32>
    %331 = arith.mulf %159, %330 : vector<32x32xf32>
    %332 = arith.addf %328, %331 : vector<32x32xf32>
    %333 = arith.mulf %332, %120 : vector<32x32xf32>
    %c0_104 = arith.constant 0 : index
    %c0_105 = arith.constant 0 : index
    %334 = vector.load %arg11[%c0_104, %c0_105] : memref<32x32xbf16, #tpu.memory_space<vmem>>, vector<32x32xbf16>
    %c0_106 = arith.constant 0 : index
    %c0_107 = arith.constant 0 : index
    %335 = vector.load %arg12[%c0_106, %c0_107] : memref<1x32xf32, #tpu.memory_space<vmem>>, vector<1x32xf32>
    %336 = arith.truncf %333 : vector<32x32xf32> to vector<32x32xbf16>
    %cst_108 = arith.constant dense<0.000000e+00> : vector<32x32xf32>
    %337 = tpu.matmul %336, %334, %cst_108 {dimension_numbers = #tpu.dot_dimension_numbers<[1], [0], [0], [1], [0, 0, 1, 1], [], []>} : vector<32x32xbf16>, vector<32x32xbf16>, vector<32x32xf32> -> vector<32x32xf32>
    %338 = vector.broadcast %335 : vector<1x32xf32> to vector<32x32xf32>
    %339 = arith.addf %337, %338 : vector<32x32xf32>
    %340 = arith.addf %339, %19 : vector<32x32xf32>
    %c0_109 = arith.constant 0 : index
    %c0_110 = arith.constant 0 : index
    %341 = vector.load %arg13[%c0_109, %c0_110] : memref<1x32xf32, #tpu.memory_space<vmem>>, vector<1x32xf32>
    %c0_111 = arith.constant 0 : index
    %c0_112 = arith.constant 0 : index
    %342 = vector.load %arg14[%c0_111, %c0_112] : memref<1x32xf32, #tpu.memory_space<vmem>>, vector<1x32xf32>
    %cst_113 = arith.constant dense<0.000000e+00> : vector<32xf32>
    %343 = vector.multi_reduction <add>, %340, %cst_113 [1] : vector<32x32xf32> to vector<32xf32>
    %344 = vector.shape_cast %343 : vector<32xf32> to vector<32x1xf32>
    %cst_114 = arith.constant 3.200000e+01 : f32
    %345 = vector.broadcast %cst_114 : f32 to vector<32x1xf32>
    %346 = arith.divf %344, %345 : vector<32x1xf32>
    %347 = vector.broadcast %346 : vector<32x1xf32> to vector<32x32xf32>
    %348 = arith.subf %340, %347 : vector<32x32xf32>
    %349 = arith.mulf %348, %348 : vector<32x32xf32>
    %cst_115 = arith.constant dense<0.000000e+00> : vector<32xf32>
    %350 = vector.multi_reduction <add>, %349, %cst_115 [1] : vector<32x32xf32> to vector<32xf32>
    %351 = vector.shape_cast %350 : vector<32xf32> to vector<32x1xf32>
    %cst_116 = arith.constant 3.200000e+01 : f32
    %352 = vector.broadcast %cst_116 : f32 to vector<32x1xf32>
    %353 = arith.divf %351, %352 : vector<32x1xf32>
    %354 = vector.broadcast %346 : vector<32x1xf32> to vector<32x32xf32>
    %355 = arith.subf %340, %354 : vector<32x32xf32>
    %cst_117 = arith.constant 9.99999974E-6 : f32
    %356 = vector.broadcast %cst_117 : f32 to vector<32x1xf32>
    %357 = arith.addf %353, %356 : vector<32x1xf32>
    %358 = math.rsqrt %357 : vector<32x1xf32>
    %359 = vector.broadcast %358 : vector<32x1xf32> to vector<32x32xf32>
    %360 = arith.mulf %355, %359 : vector<32x32xf32>
    %361 = vector.broadcast %341 : vector<1x32xf32> to vector<32x32xf32>
    %362 = arith.mulf %360, %361 : vector<32x32xf32>
    %363 = vector.broadcast %342 : vector<1x32xf32> to vector<32x32xf32>
    %364 = arith.addf %362, %363 : vector<32x32xf32>
    %c0_118 = arith.constant 0 : index
    %c0_119 = arith.constant 0 : index
    %365 = vector.load %arg15[%c0_118, %c0_119] : memref<32x64xbf16, #tpu.memory_space<vmem>>, vector<32x64xbf16>
    %c0_120 = arith.constant 0 : index
    %c0_121 = arith.constant 0 : index
    %366 = vector.load %arg16[%c0_120, %c0_121] : memref<1x64xf32, #tpu.memory_space<vmem>>, vector<1x64xf32>
    %367 = arith.truncf %364 : vector<32x32xf32> to vector<32x32xbf16>
    %cst_122 = arith.constant dense<0.000000e+00> : vector<32x64xf32>
    %368 = tpu.matmul %367, %365, %cst_122 {dimension_numbers = #tpu.dot_dimension_numbers<[1], [0], [0], [1], [0, 0, 1, 1], [], []>} : vector<32x32xbf16>, vector<32x64xbf16>, vector<32x64xf32> -> vector<32x64xf32>
    %369 = vector.broadcast %366 : vector<1x64xf32> to vector<32x64xf32>
    %370 = arith.addf %368, %369 : vector<32x64xf32>
    %371 = arith.mulf %370, %370 : vector<32x64xf32>
    %372 = arith.mulf %370, %371 : vector<32x64xf32>
    %cst_123 = arith.constant 4.471500e-02 : f32
    %373 = vector.broadcast %cst_123 : f32 to vector<32x64xf32>
    %374 = arith.mulf %373, %372 : vector<32x64xf32>
    %375 = arith.addf %370, %374 : vector<32x64xf32>
    %cst_124 = arith.constant 0.797884583 : f32
    %376 = vector.broadcast %cst_124 : f32 to vector<32x64xf32>
    %377 = arith.mulf %376, %375 : vector<32x64xf32>
    %378 = math.tanh %377 : vector<32x64xf32>
    %cst_125 = arith.constant 1.000000e+00 : f32
    %379 = vector.broadcast %cst_125 : f32 to vector<32x64xf32>
    %380 = arith.addf %379, %378 : vector<32x64xf32>
    %cst_126 = arith.constant 5.000000e-01 : f32
    %381 = vector.broadcast %cst_126 : f32 to vector<32x64xf32>
    %382 = arith.mulf %381, %380 : vector<32x64xf32>
    %383 = arith.mulf %370, %382 : vector<32x64xf32>
    %c0_127 = arith.constant 0 : index
    %c0_128 = arith.constant 0 : index
    %384 = vector.load %arg17[%c0_127, %c0_128] : memref<64x32xbf16, #tpu.memory_space<vmem>>, vector<64x32xbf16>
    %c0_129 = arith.constant 0 : index
    %c0_130 = arith.constant 0 : index
    %385 = vector.load %arg18[%c0_129, %c0_130] : memref<1x32xf32, #tpu.memory_space<vmem>>, vector<1x32xf32>
    %386 = arith.truncf %383 : vector<32x64xf32> to vector<32x64xbf16>
    %cst_131 = arith.constant dense<0.000000e+00> : vector<32x32xf32>
    %387 = tpu.matmul %386, %384, %cst_131 {dimension_numbers = #tpu.dot_dimension_numbers<[1], [0], [0], [1], [0, 0, 1, 1], [], []>} : vector<32x64xbf16>, vector<64x32xbf16>, vector<32x32xf32> -> vector<32x32xf32>
    %388 = vector.broadcast %385 : vector<1x32xf32> to vector<32x32xf32>
    %389 = arith.addf %387, %388 : vector<32x32xf32>
    %390 = arith.addf %389, %340 : vector<32x32xf32>
    %c0_132 = arith.constant 0 : index
    %c0_133 = arith.constant 0 : index
    %391 = vector.load %arg19[%c0_132, %c0_133] : memref<1x32xf32, #tpu.memory_space<vmem>>, vector<1x32xf32>
    %c0_134 = arith.constant 0 : index
    %c0_135 = arith.constant 0 : index
    %392 = vector.load %arg20[%c0_134, %c0_135] : memref<1x32xf32, #tpu.memory_space<vmem>>, vector<1x32xf32>
    %cst_136 = arith.constant dense<0.000000e+00> : vector<32xf32>
    %393 = vector.multi_reduction <add>, %390, %cst_136 [1] : vector<32x32xf32> to vector<32xf32>
    %394 = vector.shape_cast %393 : vector<32xf32> to vector<32x1xf32>
    %cst_137 = arith.constant 3.200000e+01 : f32
    %395 = vector.broadcast %cst_137 : f32 to vector<32x1xf32>
    %396 = arith.divf %394, %395 : vector<32x1xf32>
    %397 = vector.broadcast %396 : vector<32x1xf32> to vector<32x32xf32>
    %398 = arith.subf %390, %397 : vector<32x32xf32>
    %399 = arith.mulf %398, %398 : vector<32x32xf32>
    %cst_138 = arith.constant dense<0.000000e+00> : vector<32xf32>
    %400 = vector.multi_reduction <add>, %399, %cst_138 [1] : vector<32x32xf32> to vector<32xf32>
    %401 = vector.shape_cast %400 : vector<32xf32> to vector<32x1xf32>
    %cst_139 = arith.constant 3.200000e+01 : f32
    %402 = vector.broadcast %cst_139 : f32 to vector<32x1xf32>
    %403 = arith.divf %401, %402 : vector<32x1xf32>
    %404 = vector.broadcast %396 : vector<32x1xf32> to vector<32x32xf32>
    %405 = arith.subf %390, %404 : vector<32x32xf32>
    %cst_140 = arith.constant 9.99999974E-6 : f32
    %406 = vector.broadcast %cst_140 : f32 to vector<32x1xf32>
    %407 = arith.addf %403, %406 : vector<32x1xf32>
    %408 = math.rsqrt %407 : vector<32x1xf32>
    %409 = vector.broadcast %408 : vector<32x1xf32> to vector<32x32xf32>
    %410 = arith.mulf %405, %409 : vector<32x32xf32>
    %411 = vector.broadcast %391 : vector<1x32xf32> to vector<32x32xf32>
    %412 = arith.mulf %410, %411 : vector<32x32xf32>
    %413 = vector.broadcast %392 : vector<1x32xf32> to vector<32x32xf32>
    %414 = arith.addf %412, %413 : vector<32x32xf32>
    %c0_141 = arith.constant 0 : index
    %c0_142 = arith.constant 0 : index
    %415 = vector.load %arg21[%c0_141, %c0_142] : memref<32x32xbf16, #tpu.memory_space<vmem>>, vector<32x32xbf16>
    %c0_143 = arith.constant 0 : index
    %c0_144 = arith.constant 0 : index
    %416 = vector.load %arg22[%c0_143, %c0_144] : memref<1x32xf32, #tpu.memory_space<vmem>>, vector<1x32xf32>
    %417 = arith.truncf %414 : vector<32x32xf32> to vector<32x32xbf16>
    %cst_145 = arith.constant dense<0.000000e+00> : vector<32x32xf32>
    %418 = tpu.matmul %417, %415, %cst_145 {dimension_numbers = #tpu.dot_dimension_numbers<[1], [0], [0], [1], [0, 0, 1, 1], [], []>} : vector<32x32xbf16>, vector<32x32xbf16>, vector<32x32xf32> -> vector<32x32xf32>
    %419 = vector.broadcast %416 : vector<1x32xf32> to vector<32x32xf32>
    %420 = arith.addf %418, %419 : vector<32x32xf32>
    %c0_146 = arith.constant 0 : index
    %c0_147 = arith.constant 0 : index
    %421 = vector.load %arg2[%c0_146, %c0_147] : memref<32x32xf32, #tpu.memory_space<vmem>>, vector<32x32xf32>
    %c0_148 = arith.constant 0 : index
    %c0_149 = arith.constant 0 : index
    %422 = vector.load %arg23[%c0_148, %c0_149] : memref<32x32xbf16, #tpu.memory_space<vmem>>, vector<32x32xbf16>
    %c0_150 = arith.constant 0 : index
    %c0_151 = arith.constant 0 : index
    %423 = vector.load %arg24[%c0_150, %c0_151] : memref<1x32xf32, #tpu.memory_space<vmem>>, vector<1x32xf32>
    %424 = arith.truncf %421 : vector<32x32xf32> to vector<32x32xbf16>
    %cst_152 = arith.constant dense<0.000000e+00> : vector<32x32xf32>
    %425 = tpu.matmul %424, %422, %cst_152 {dimension_numbers = #tpu.dot_dimension_numbers<[1], [0], [0], [1], [0, 0, 1, 1], [], []>} : vector<32x32xbf16>, vector<32x32xbf16>, vector<32x32xf32> -> vector<32x32xf32>
    %426 = vector.broadcast %423 : vector<1x32xf32> to vector<32x32xf32>
    %427 = arith.addf %425, %426 : vector<32x32xf32>
    %c0_153 = arith.constant 0 : index
    %c0_154 = arith.constant 0 : index
    %428 = vector.load %arg2[%c0_153, %c0_154] : memref<32x32xf32, #tpu.memory_space<vmem>>, vector<32x32xf32>
    %c0_155 = arith.constant 0 : index
    %c0_156 = arith.constant 0 : index
    %429 = vector.load %arg25[%c0_155, %c0_156] : memref<32x32xbf16, #tpu.memory_space<vmem>>, vector<32x32xbf16>
    %c0_157 = arith.constant 0 : index
    %c0_158 = arith.constant 0 : index
    %430 = vector.load %arg26[%c0_157, %c0_158] : memref<1x32xf32, #tpu.memory_space<vmem>>, vector<1x32xf32>
    %431 = arith.truncf %428 : vector<32x32xf32> to vector<32x32xbf16>
    %cst_159 = arith.constant dense<0.000000e+00> : vector<32x32xf32>
    %432 = tpu.matmul %431, %429, %cst_159 {dimension_numbers = #tpu.dot_dimension_numbers<[1], [0], [0], [1], [0, 0, 1, 1], [], []>} : vector<32x32xbf16>, vector<32x32xbf16>, vector<32x32xf32> -> vector<32x32xf32>
    %433 = vector.broadcast %430 : vector<1x32xf32> to vector<32x32xf32>
    %434 = arith.addf %432, %433 : vector<32x32xf32>
    %435 = vector.extract_strided_slice %420 {offsets = [0, 0], sizes = [16, 32], strides = [1, 1]} : vector<32x32xf32> to vector<16x32xf32>
    %436 = vector.extract_strided_slice %427 {offsets = [0, 0], sizes = [16, 32], strides = [1, 1]} : vector<32x32xf32> to vector<16x32xf32>
    %437 = vector.extract_strided_slice %434 {offsets = [0, 0], sizes = [16, 32], strides = [1, 1]} : vector<32x32xf32> to vector<16x32xf32>
    %438 = vector.extract_strided_slice %435 {offsets = [0, 0], sizes = [16, 8], strides = [1, 1]} : vector<16x32xf32> to vector<16x8xf32>
    %439 = vector.extract_strided_slice %436 {offsets = [0, 0], sizes = [16, 8], strides = [1, 1]} : vector<16x32xf32> to vector<16x8xf32>
    %440 = tpu.transpose %439, [1, 0] : vector<16x8xf32> -> vector<8x16xf32>
    %cst_160 = arith.constant dense<0.000000e+00> : vector<16x16xf32>
    %441 = tpu.matmul %438, %440, %cst_160 {dimension_numbers = #tpu.dot_dimension_numbers<[1], [0], [0], [1], [0, 0, 1, 1], [], []>} : vector<16x8xf32>, vector<8x16xf32>, vector<16x16xf32> -> vector<16x16xf32>
    %cst_161 = arith.constant 0.353553385 : f32
    %442 = vector.broadcast %cst_161 : f32 to vector<16x16xf32>
    %443 = arith.mulf %441, %442 : vector<16x16xf32>
    %cst_162 = arith.constant dense<0xFF800000> : vector<16xf32>
    %444 = vector.multi_reduction <maximumf>, %443, %cst_162 [1] : vector<16x16xf32> to vector<16xf32>
    %445 = vector.shape_cast %444 : vector<16xf32> to vector<16x1xf32>
    %446 = vector.broadcast %445 : vector<16x1xf32> to vector<16x16xf32>
    %447 = arith.subf %443, %446 : vector<16x16xf32>
    %448 = math.exp %447 : vector<16x16xf32>
    %cst_163 = arith.constant dense<0.000000e+00> : vector<16xf32>
    %449 = vector.multi_reduction <add>, %448, %cst_163 [1] : vector<16x16xf32> to vector<16xf32>
    %450 = vector.shape_cast %449 : vector<16xf32> to vector<16x1xf32>
    %451 = vector.broadcast %450 : vector<16x1xf32> to vector<16x16xf32>
    %452 = arith.divf %448, %451 : vector<16x16xf32>
    %453 = vector.extract_strided_slice %437 {offsets = [0, 0], sizes = [16, 8], strides = [1, 1]} : vector<16x32xf32> to vector<16x8xf32>
    %cst_164 = arith.constant dense<0.000000e+00> : vector<16x8xf32>
    %454 = tpu.matmul %452, %453, %cst_164 {dimension_numbers = #tpu.dot_dimension_numbers<[1], [0], [0], [1], [0, 0, 1, 1], [], []>} : vector<16x16xf32>, vector<16x8xf32>, vector<16x8xf32> -> vector<16x8xf32>
    %455 = arith.truncf %454 : vector<16x8xf32> to vector<16x8xbf16>
    %c0_165 = arith.constant 0 : index
    %c0_166 = arith.constant 0 : index
    %c0_167 = arith.constant 0 : index
    %456 = vector.load %arg27[%c0_165, %c0_166, %c0_167] : memref<4x8x32xbf16, #tpu.memory_space<vmem>>, vector<1x8x32xbf16>
    %457 = vector.shape_cast %456 : vector<1x8x32xbf16> to vector<8x32xbf16>
    %cst_168 = arith.constant dense<0.000000e+00> : vector<16x32xf32>
    %458 = tpu.matmul %455, %457, %cst_168 {dimension_numbers = #tpu.dot_dimension_numbers<[1], [0], [0], [1], [0, 0, 1, 1], [], []>} : vector<16x8xbf16>, vector<8x32xbf16>, vector<16x32xf32> -> vector<16x32xf32>
    %459 = vector.extract_strided_slice %435 {offsets = [0, 8], sizes = [16, 8], strides = [1, 1]} : vector<16x32xf32> to vector<16x8xf32>
    %460 = vector.extract_strided_slice %436 {offsets = [0, 8], sizes = [16, 8], strides = [1, 1]} : vector<16x32xf32> to vector<16x8xf32>
    %461 = tpu.transpose %460, [1, 0] : vector<16x8xf32> -> vector<8x16xf32>
    %cst_169 = arith.constant dense<0.000000e+00> : vector<16x16xf32>
    %462 = tpu.matmul %459, %461, %cst_169 {dimension_numbers = #tpu.dot_dimension_numbers<[1], [0], [0], [1], [0, 0, 1, 1], [], []>} : vector<16x8xf32>, vector<8x16xf32>, vector<16x16xf32> -> vector<16x16xf32>
    %cst_170 = arith.constant 0.353553385 : f32
    %463 = vector.broadcast %cst_170 : f32 to vector<16x16xf32>
    %464 = arith.mulf %462, %463 : vector<16x16xf32>
    %cst_171 = arith.constant dense<0xFF800000> : vector<16xf32>
    %465 = vector.multi_reduction <maximumf>, %464, %cst_171 [1] : vector<16x16xf32> to vector<16xf32>
    %466 = vector.shape_cast %465 : vector<16xf32> to vector<16x1xf32>
    %467 = vector.broadcast %466 : vector<16x1xf32> to vector<16x16xf32>
    %468 = arith.subf %464, %467 : vector<16x16xf32>
    %469 = math.exp %468 : vector<16x16xf32>
    %cst_172 = arith.constant dense<0.000000e+00> : vector<16xf32>
    %470 = vector.multi_reduction <add>, %469, %cst_172 [1] : vector<16x16xf32> to vector<16xf32>
    %471 = vector.shape_cast %470 : vector<16xf32> to vector<16x1xf32>
    %472 = vector.broadcast %471 : vector<16x1xf32> to vector<16x16xf32>
    %473 = arith.divf %469, %472 : vector<16x16xf32>
    %474 = vector.extract_strided_slice %437 {offsets = [0, 8], sizes = [16, 8], strides = [1, 1]} : vector<16x32xf32> to vector<16x8xf32>
    %cst_173 = arith.constant dense<0.000000e+00> : vector<16x8xf32>
    %475 = tpu.matmul %473, %474, %cst_173 {dimension_numbers = #tpu.dot_dimension_numbers<[1], [0], [0], [1], [0, 0, 1, 1], [], []>} : vector<16x16xf32>, vector<16x8xf32>, vector<16x8xf32> -> vector<16x8xf32>
    %476 = arith.truncf %475 : vector<16x8xf32> to vector<16x8xbf16>
    %c1_174 = arith.constant 1 : index
    %c0_175 = arith.constant 0 : index
    %c0_176 = arith.constant 0 : index
    %477 = vector.load %arg27[%c1_174, %c0_175, %c0_176] : memref<4x8x32xbf16, #tpu.memory_space<vmem>>, vector<1x8x32xbf16>
    %478 = vector.shape_cast %477 : vector<1x8x32xbf16> to vector<8x32xbf16>
    %cst_177 = arith.constant dense<0.000000e+00> : vector<16x32xf32>
    %479 = tpu.matmul %476, %478, %cst_177 {dimension_numbers = #tpu.dot_dimension_numbers<[1], [0], [0], [1], [0, 0, 1, 1], [], []>} : vector<16x8xbf16>, vector<8x32xbf16>, vector<16x32xf32> -> vector<16x32xf32>
    %480 = arith.addf %458, %479 : vector<16x32xf32>
    %481 = vector.extract_strided_slice %435 {offsets = [0, 16], sizes = [16, 8], strides = [1, 1]} : vector<16x32xf32> to vector<16x8xf32>
    %482 = vector.extract_strided_slice %436 {offsets = [0, 16], sizes = [16, 8], strides = [1, 1]} : vector<16x32xf32> to vector<16x8xf32>
    %483 = tpu.transpose %482, [1, 0] : vector<16x8xf32> -> vector<8x16xf32>
    %cst_178 = arith.constant dense<0.000000e+00> : vector<16x16xf32>
    %484 = tpu.matmul %481, %483, %cst_178 {dimension_numbers = #tpu.dot_dimension_numbers<[1], [0], [0], [1], [0, 0, 1, 1], [], []>} : vector<16x8xf32>, vector<8x16xf32>, vector<16x16xf32> -> vector<16x16xf32>
    %cst_179 = arith.constant 0.353553385 : f32
    %485 = vector.broadcast %cst_179 : f32 to vector<16x16xf32>
    %486 = arith.mulf %484, %485 : vector<16x16xf32>
    %cst_180 = arith.constant dense<0xFF800000> : vector<16xf32>
    %487 = vector.multi_reduction <maximumf>, %486, %cst_180 [1] : vector<16x16xf32> to vector<16xf32>
    %488 = vector.shape_cast %487 : vector<16xf32> to vector<16x1xf32>
    %489 = vector.broadcast %488 : vector<16x1xf32> to vector<16x16xf32>
    %490 = arith.subf %486, %489 : vector<16x16xf32>
    %491 = math.exp %490 : vector<16x16xf32>
    %cst_181 = arith.constant dense<0.000000e+00> : vector<16xf32>
    %492 = vector.multi_reduction <add>, %491, %cst_181 [1] : vector<16x16xf32> to vector<16xf32>
    %493 = vector.shape_cast %492 : vector<16xf32> to vector<16x1xf32>
    %494 = vector.broadcast %493 : vector<16x1xf32> to vector<16x16xf32>
    %495 = arith.divf %491, %494 : vector<16x16xf32>
    %496 = vector.extract_strided_slice %437 {offsets = [0, 16], sizes = [16, 8], strides = [1, 1]} : vector<16x32xf32> to vector<16x8xf32>
    %cst_182 = arith.constant dense<0.000000e+00> : vector<16x8xf32>
    %497 = tpu.matmul %495, %496, %cst_182 {dimension_numbers = #tpu.dot_dimension_numbers<[1], [0], [0], [1], [0, 0, 1, 1], [], []>} : vector<16x16xf32>, vector<16x8xf32>, vector<16x8xf32> -> vector<16x8xf32>
    %498 = arith.truncf %497 : vector<16x8xf32> to vector<16x8xbf16>
    %c2_183 = arith.constant 2 : index
    %c0_184 = arith.constant 0 : index
    %c0_185 = arith.constant 0 : index
    %499 = vector.load %arg27[%c2_183, %c0_184, %c0_185] : memref<4x8x32xbf16, #tpu.memory_space<vmem>>, vector<1x8x32xbf16>
    %500 = vector.shape_cast %499 : vector<1x8x32xbf16> to vector<8x32xbf16>
    %cst_186 = arith.constant dense<0.000000e+00> : vector<16x32xf32>
    %501 = tpu.matmul %498, %500, %cst_186 {dimension_numbers = #tpu.dot_dimension_numbers<[1], [0], [0], [1], [0, 0, 1, 1], [], []>} : vector<16x8xbf16>, vector<8x32xbf16>, vector<16x32xf32> -> vector<16x32xf32>
    %502 = arith.addf %480, %501 : vector<16x32xf32>
    %503 = vector.extract_strided_slice %435 {offsets = [0, 24], sizes = [16, 8], strides = [1, 1]} : vector<16x32xf32> to vector<16x8xf32>
    %504 = vector.extract_strided_slice %436 {offsets = [0, 24], sizes = [16, 8], strides = [1, 1]} : vector<16x32xf32> to vector<16x8xf32>
    %505 = tpu.transpose %504, [1, 0] : vector<16x8xf32> -> vector<8x16xf32>
    %cst_187 = arith.constant dense<0.000000e+00> : vector<16x16xf32>
    %506 = tpu.matmul %503, %505, %cst_187 {dimension_numbers = #tpu.dot_dimension_numbers<[1], [0], [0], [1], [0, 0, 1, 1], [], []>} : vector<16x8xf32>, vector<8x16xf32>, vector<16x16xf32> -> vector<16x16xf32>
    %cst_188 = arith.constant 0.353553385 : f32
    %507 = vector.broadcast %cst_188 : f32 to vector<16x16xf32>
    %508 = arith.mulf %506, %507 : vector<16x16xf32>
    %cst_189 = arith.constant dense<0xFF800000> : vector<16xf32>
    %509 = vector.multi_reduction <maximumf>, %508, %cst_189 [1] : vector<16x16xf32> to vector<16xf32>
    %510 = vector.shape_cast %509 : vector<16xf32> to vector<16x1xf32>
    %511 = vector.broadcast %510 : vector<16x1xf32> to vector<16x16xf32>
    %512 = arith.subf %508, %511 : vector<16x16xf32>
    %513 = math.exp %512 : vector<16x16xf32>
    %cst_190 = arith.constant dense<0.000000e+00> : vector<16xf32>
    %514 = vector.multi_reduction <add>, %513, %cst_190 [1] : vector<16x16xf32> to vector<16xf32>
    %515 = vector.shape_cast %514 : vector<16xf32> to vector<16x1xf32>
    %516 = vector.broadcast %515 : vector<16x1xf32> to vector<16x16xf32>
    %517 = arith.divf %513, %516 : vector<16x16xf32>
    %518 = vector.extract_strided_slice %437 {offsets = [0, 24], sizes = [16, 8], strides = [1, 1]} : vector<16x32xf32> to vector<16x8xf32>
    %cst_191 = arith.constant dense<0.000000e+00> : vector<16x8xf32>
    %519 = tpu.matmul %517, %518, %cst_191 {dimension_numbers = #tpu.dot_dimension_numbers<[1], [0], [0], [1], [0, 0, 1, 1], [], []>} : vector<16x16xf32>, vector<16x8xf32>, vector<16x8xf32> -> vector<16x8xf32>
    %520 = arith.truncf %519 : vector<16x8xf32> to vector<16x8xbf16>
    %c3 = arith.constant 3 : index
    %c0_192 = arith.constant 0 : index
    %c0_193 = arith.constant 0 : index
    %521 = vector.load %arg27[%c3, %c0_192, %c0_193] : memref<4x8x32xbf16, #tpu.memory_space<vmem>>, vector<1x8x32xbf16>
    %522 = vector.shape_cast %521 : vector<1x8x32xbf16> to vector<8x32xbf16>
    %cst_194 = arith.constant dense<0.000000e+00> : vector<16x32xf32>
    %523 = tpu.matmul %520, %522, %cst_194 {dimension_numbers = #tpu.dot_dimension_numbers<[1], [0], [0], [1], [0, 0, 1, 1], [], []>} : vector<16x8xbf16>, vector<8x32xbf16>, vector<16x32xf32> -> vector<16x32xf32>
    %524 = arith.addf %502, %523 : vector<16x32xf32>
    %525 = vector.extract_strided_slice %420 {offsets = [16, 0], sizes = [16, 32], strides = [1, 1]} : vector<32x32xf32> to vector<16x32xf32>
    %526 = vector.extract_strided_slice %427 {offsets = [16, 0], sizes = [16, 32], strides = [1, 1]} : vector<32x32xf32> to vector<16x32xf32>
    %527 = vector.extract_strided_slice %434 {offsets = [16, 0], sizes = [16, 32], strides = [1, 1]} : vector<32x32xf32> to vector<16x32xf32>
    %528 = vector.extract_strided_slice %525 {offsets = [0, 0], sizes = [16, 8], strides = [1, 1]} : vector<16x32xf32> to vector<16x8xf32>
    %529 = vector.extract_strided_slice %526 {offsets = [0, 0], sizes = [16, 8], strides = [1, 1]} : vector<16x32xf32> to vector<16x8xf32>
    %530 = tpu.transpose %529, [1, 0] : vector<16x8xf32> -> vector<8x16xf32>
    %cst_195 = arith.constant dense<0.000000e+00> : vector<16x16xf32>
    %531 = tpu.matmul %528, %530, %cst_195 {dimension_numbers = #tpu.dot_dimension_numbers<[1], [0], [0], [1], [0, 0, 1, 1], [], []>} : vector<16x8xf32>, vector<8x16xf32>, vector<16x16xf32> -> vector<16x16xf32>
    %cst_196 = arith.constant 0.353553385 : f32
    %532 = vector.broadcast %cst_196 : f32 to vector<16x16xf32>
    %533 = arith.mulf %531, %532 : vector<16x16xf32>
    %cst_197 = arith.constant dense<0xFF800000> : vector<16xf32>
    %534 = vector.multi_reduction <maximumf>, %533, %cst_197 [1] : vector<16x16xf32> to vector<16xf32>
    %535 = vector.shape_cast %534 : vector<16xf32> to vector<16x1xf32>
    %536 = vector.broadcast %535 : vector<16x1xf32> to vector<16x16xf32>
    %537 = arith.subf %533, %536 : vector<16x16xf32>
    %538 = math.exp %537 : vector<16x16xf32>
    %cst_198 = arith.constant dense<0.000000e+00> : vector<16xf32>
    %539 = vector.multi_reduction <add>, %538, %cst_198 [1] : vector<16x16xf32> to vector<16xf32>
    %540 = vector.shape_cast %539 : vector<16xf32> to vector<16x1xf32>
    %541 = vector.broadcast %540 : vector<16x1xf32> to vector<16x16xf32>
    %542 = arith.divf %538, %541 : vector<16x16xf32>
    %543 = vector.extract_strided_slice %527 {offsets = [0, 0], sizes = [16, 8], strides = [1, 1]} : vector<16x32xf32> to vector<16x8xf32>
    %cst_199 = arith.constant dense<0.000000e+00> : vector<16x8xf32>
    %544 = tpu.matmul %542, %543, %cst_199 {dimension_numbers = #tpu.dot_dimension_numbers<[1], [0], [0], [1], [0, 0, 1, 1], [], []>} : vector<16x16xf32>, vector<16x8xf32>, vector<16x8xf32> -> vector<16x8xf32>
    %545 = arith.truncf %544 : vector<16x8xf32> to vector<16x8xbf16>
    %c0_200 = arith.constant 0 : index
    %c0_201 = arith.constant 0 : index
    %c0_202 = arith.constant 0 : index
    %546 = vector.load %arg27[%c0_200, %c0_201, %c0_202] : memref<4x8x32xbf16, #tpu.memory_space<vmem>>, vector<1x8x32xbf16>
    %547 = vector.shape_cast %546 : vector<1x8x32xbf16> to vector<8x32xbf16>
    %cst_203 = arith.constant dense<0.000000e+00> : vector<16x32xf32>
    %548 = tpu.matmul %545, %547, %cst_203 {dimension_numbers = #tpu.dot_dimension_numbers<[1], [0], [0], [1], [0, 0, 1, 1], [], []>} : vector<16x8xbf16>, vector<8x32xbf16>, vector<16x32xf32> -> vector<16x32xf32>
    %549 = vector.extract_strided_slice %525 {offsets = [0, 8], sizes = [16, 8], strides = [1, 1]} : vector<16x32xf32> to vector<16x8xf32>
    %550 = vector.extract_strided_slice %526 {offsets = [0, 8], sizes = [16, 8], strides = [1, 1]} : vector<16x32xf32> to vector<16x8xf32>
    %551 = tpu.transpose %550, [1, 0] : vector<16x8xf32> -> vector<8x16xf32>
    %cst_204 = arith.constant dense<0.000000e+00> : vector<16x16xf32>
    %552 = tpu.matmul %549, %551, %cst_204 {dimension_numbers = #tpu.dot_dimension_numbers<[1], [0], [0], [1], [0, 0, 1, 1], [], []>} : vector<16x8xf32>, vector<8x16xf32>, vector<16x16xf32> -> vector<16x16xf32>
    %cst_205 = arith.constant 0.353553385 : f32
    %553 = vector.broadcast %cst_205 : f32 to vector<16x16xf32>
    %554 = arith.mulf %552, %553 : vector<16x16xf32>
    %cst_206 = arith.constant dense<0xFF800000> : vector<16xf32>
    %555 = vector.multi_reduction <maximumf>, %554, %cst_206 [1] : vector<16x16xf32> to vector<16xf32>
    %556 = vector.shape_cast %555 : vector<16xf32> to vector<16x1xf32>
    %557 = vector.broadcast %556 : vector<16x1xf32> to vector<16x16xf32>
    %558 = arith.subf %554, %557 : vector<16x16xf32>
    %559 = math.exp %558 : vector<16x16xf32>
    %cst_207 = arith.constant dense<0.000000e+00> : vector<16xf32>
    %560 = vector.multi_reduction <add>, %559, %cst_207 [1] : vector<16x16xf32> to vector<16xf32>
    %561 = vector.shape_cast %560 : vector<16xf32> to vector<16x1xf32>
    %562 = vector.broadcast %561 : vector<16x1xf32> to vector<16x16xf32>
    %563 = arith.divf %559, %562 : vector<16x16xf32>
    %564 = vector.extract_strided_slice %527 {offsets = [0, 8], sizes = [16, 8], strides = [1, 1]} : vector<16x32xf32> to vector<16x8xf32>
    %cst_208 = arith.constant dense<0.000000e+00> : vector<16x8xf32>
    %565 = tpu.matmul %563, %564, %cst_208 {dimension_numbers = #tpu.dot_dimension_numbers<[1], [0], [0], [1], [0, 0, 1, 1], [], []>} : vector<16x16xf32>, vector<16x8xf32>, vector<16x8xf32> -> vector<16x8xf32>
    %566 = arith.truncf %565 : vector<16x8xf32> to vector<16x8xbf16>
    %c1_209 = arith.constant 1 : index
    %c0_210 = arith.constant 0 : index
    %c0_211 = arith.constant 0 : index
    %567 = vector.load %arg27[%c1_209, %c0_210, %c0_211] : memref<4x8x32xbf16, #tpu.memory_space<vmem>>, vector<1x8x32xbf16>
    %568 = vector.shape_cast %567 : vector<1x8x32xbf16> to vector<8x32xbf16>
    %cst_212 = arith.constant dense<0.000000e+00> : vector<16x32xf32>
    %569 = tpu.matmul %566, %568, %cst_212 {dimension_numbers = #tpu.dot_dimension_numbers<[1], [0], [0], [1], [0, 0, 1, 1], [], []>} : vector<16x8xbf16>, vector<8x32xbf16>, vector<16x32xf32> -> vector<16x32xf32>
    %570 = arith.addf %548, %569 : vector<16x32xf32>
    %571 = vector.extract_strided_slice %525 {offsets = [0, 16], sizes = [16, 8], strides = [1, 1]} : vector<16x32xf32> to vector<16x8xf32>
    %572 = vector.extract_strided_slice %526 {offsets = [0, 16], sizes = [16, 8], strides = [1, 1]} : vector<16x32xf32> to vector<16x8xf32>
    %573 = tpu.transpose %572, [1, 0] : vector<16x8xf32> -> vector<8x16xf32>
    %cst_213 = arith.constant dense<0.000000e+00> : vector<16x16xf32>
    %574 = tpu.matmul %571, %573, %cst_213 {dimension_numbers = #tpu.dot_dimension_numbers<[1], [0], [0], [1], [0, 0, 1, 1], [], []>} : vector<16x8xf32>, vector<8x16xf32>, vector<16x16xf32> -> vector<16x16xf32>
    %cst_214 = arith.constant 0.353553385 : f32
    %575 = vector.broadcast %cst_214 : f32 to vector<16x16xf32>
    %576 = arith.mulf %574, %575 : vector<16x16xf32>
    %cst_215 = arith.constant dense<0xFF800000> : vector<16xf32>
    %577 = vector.multi_reduction <maximumf>, %576, %cst_215 [1] : vector<16x16xf32> to vector<16xf32>
    %578 = vector.shape_cast %577 : vector<16xf32> to vector<16x1xf32>
    %579 = vector.broadcast %578 : vector<16x1xf32> to vector<16x16xf32>
    %580 = arith.subf %576, %579 : vector<16x16xf32>
    %581 = math.exp %580 : vector<16x16xf32>
    %cst_216 = arith.constant dense<0.000000e+00> : vector<16xf32>
    %582 = vector.multi_reduction <add>, %581, %cst_216 [1] : vector<16x16xf32> to vector<16xf32>
    %583 = vector.shape_cast %582 : vector<16xf32> to vector<16x1xf32>
    %584 = vector.broadcast %583 : vector<16x1xf32> to vector<16x16xf32>
    %585 = arith.divf %581, %584 : vector<16x16xf32>
    %586 = vector.extract_strided_slice %527 {offsets = [0, 16], sizes = [16, 8], strides = [1, 1]} : vector<16x32xf32> to vector<16x8xf32>
    %cst_217 = arith.constant dense<0.000000e+00> : vector<16x8xf32>
    %587 = tpu.matmul %585, %586, %cst_217 {dimension_numbers = #tpu.dot_dimension_numbers<[1], [0], [0], [1], [0, 0, 1, 1], [], []>} : vector<16x16xf32>, vector<16x8xf32>, vector<16x8xf32> -> vector<16x8xf32>
    %588 = arith.truncf %587 : vector<16x8xf32> to vector<16x8xbf16>
    %c2_218 = arith.constant 2 : index
    %c0_219 = arith.constant 0 : index
    %c0_220 = arith.constant 0 : index
    %589 = vector.load %arg27[%c2_218, %c0_219, %c0_220] : memref<4x8x32xbf16, #tpu.memory_space<vmem>>, vector<1x8x32xbf16>
    %590 = vector.shape_cast %589 : vector<1x8x32xbf16> to vector<8x32xbf16>
    %cst_221 = arith.constant dense<0.000000e+00> : vector<16x32xf32>
    %591 = tpu.matmul %588, %590, %cst_221 {dimension_numbers = #tpu.dot_dimension_numbers<[1], [0], [0], [1], [0, 0, 1, 1], [], []>} : vector<16x8xbf16>, vector<8x32xbf16>, vector<16x32xf32> -> vector<16x32xf32>
    %592 = arith.addf %570, %591 : vector<16x32xf32>
    %593 = vector.extract_strided_slice %525 {offsets = [0, 24], sizes = [16, 8], strides = [1, 1]} : vector<16x32xf32> to vector<16x8xf32>
    %594 = vector.extract_strided_slice %526 {offsets = [0, 24], sizes = [16, 8], strides = [1, 1]} : vector<16x32xf32> to vector<16x8xf32>
    %595 = tpu.transpose %594, [1, 0] : vector<16x8xf32> -> vector<8x16xf32>
    %cst_222 = arith.constant dense<0.000000e+00> : vector<16x16xf32>
    %596 = tpu.matmul %593, %595, %cst_222 {dimension_numbers = #tpu.dot_dimension_numbers<[1], [0], [0], [1], [0, 0, 1, 1], [], []>} : vector<16x8xf32>, vector<8x16xf32>, vector<16x16xf32> -> vector<16x16xf32>
    %cst_223 = arith.constant 0.353553385 : f32
    %597 = vector.broadcast %cst_223 : f32 to vector<16x16xf32>
    %598 = arith.mulf %596, %597 : vector<16x16xf32>
    %cst_224 = arith.constant dense<0xFF800000> : vector<16xf32>
    %599 = vector.multi_reduction <maximumf>, %598, %cst_224 [1] : vector<16x16xf32> to vector<16xf32>
    %600 = vector.shape_cast %599 : vector<16xf32> to vector<16x1xf32>
    %601 = vector.broadcast %600 : vector<16x1xf32> to vector<16x16xf32>
    %602 = arith.subf %598, %601 : vector<16x16xf32>
    %603 = math.exp %602 : vector<16x16xf32>
    %cst_225 = arith.constant dense<0.000000e+00> : vector<16xf32>
    %604 = vector.multi_reduction <add>, %603, %cst_225 [1] : vector<16x16xf32> to vector<16xf32>
    %605 = vector.shape_cast %604 : vector<16xf32> to vector<16x1xf32>
    %606 = vector.broadcast %605 : vector<16x1xf32> to vector<16x16xf32>
    %607 = arith.divf %603, %606 : vector<16x16xf32>
    %608 = vector.extract_strided_slice %527 {offsets = [0, 24], sizes = [16, 8], strides = [1, 1]} : vector<16x32xf32> to vector<16x8xf32>
    %cst_226 = arith.constant dense<0.000000e+00> : vector<16x8xf32>
    %609 = tpu.matmul %607, %608, %cst_226 {dimension_numbers = #tpu.dot_dimension_numbers<[1], [0], [0], [1], [0, 0, 1, 1], [], []>} : vector<16x16xf32>, vector<16x8xf32>, vector<16x8xf32> -> vector<16x8xf32>
    %610 = arith.truncf %609 : vector<16x8xf32> to vector<16x8xbf16>
    %c3_227 = arith.constant 3 : index
    %c0_228 = arith.constant 0 : index
    %c0_229 = arith.constant 0 : index
    %611 = vector.load %arg27[%c3_227, %c0_228, %c0_229] : memref<4x8x32xbf16, #tpu.memory_space<vmem>>, vector<1x8x32xbf16>
    %612 = vector.shape_cast %611 : vector<1x8x32xbf16> to vector<8x32xbf16>
    %cst_230 = arith.constant dense<0.000000e+00> : vector<16x32xf32>
    %613 = tpu.matmul %610, %612, %cst_230 {dimension_numbers = #tpu.dot_dimension_numbers<[1], [0], [0], [1], [0, 0, 1, 1], [], []>} : vector<16x8xbf16>, vector<8x32xbf16>, vector<16x32xf32> -> vector<16x32xf32>
    %614 = arith.addf %592, %613 : vector<16x32xf32>
    %615 = tpu.concatenate %524, %614 in 0 : vector<16x32xf32>, vector<16x32xf32> -> vector<32x32xf32>
    %c0_231 = arith.constant 0 : index
    %c0_232 = arith.constant 0 : index
    %616 = vector.load %arg28[%c0_231, %c0_232] : memref<1x32xf32, #tpu.memory_space<vmem>>, vector<1x32xf32>
    %617 = vector.broadcast %616 : vector<1x32xf32> to vector<32x32xf32>
    %618 = arith.addf %615, %617 : vector<32x32xf32>
    %619 = arith.addf %618, %390 : vector<32x32xf32>
    %c0_233 = arith.constant 0 : index
    %c0_234 = arith.constant 0 : index
    %620 = vector.load %arg29[%c0_233, %c0_234] : memref<32x32xf32, #tpu.memory_space<vmem>>, vector<32x32xf32>
    tpu.vector_store %arg29[%c0_233, %c0_234], %619 {strides = array<i32>} : memref<32x32xf32, #tpu.memory_space<vmem>>, vector<32x32xf32>,
    return
  }
}

</mosaic_0001>

<bundles_post_ra>
// kernel: hyena_glt_block_forward.1
= control target key start
LH: loop header
LB: loop body
LE: loop exit
PB: predicated region body
PF: predicated region fallthrough
CT: control target
= control target key end

     0   :  { %s3232_s6 = smov 1   ;;  %s3233_s10 = smov 2   ;;  %s4725_s0 = inlined_call_operand.smem [shape: u32[30], index: -1, kind: input, shape index: {}] }
   0x1   :  { %s3276_s5 = sld [smem:[%s4725_s0]]   ;;  %s3234_s14 = smov 3  }
   0x2   :  { %s3281_s9 = sld [smem:[%s4725_s0 + %s3232_s6]]   ;;  %s3235_s18 = smov 4  }
   0x3   :  { %s3286_s13 = sld [smem:[%s4725_s0 + %s3233_s10]]   ;;  %s3236_s22 = smov 5  }
   0x4   :  { %s3291_s17 = sld [smem:[%s4725_s0 + %s3234_s14]]   ;;  %s3237_s26 = smov 6  }
   0x5   :  { %s3296_s21 = sld [smem:[%s4725_s0 + %s3235_s18]]   ;;  %s3238_s30 = smov 7  }
   0x6   :  { %s3301_s25 = sld [smem:[%s4725_s0 + %s3236_s22]]   ;;  %s3239_s4 = smov 8  }
   0x7   :  { %s3306_s29 = sld [smem:[%s4725_s0 + %s3237_s26]]   ;;  %s3240_s10 = smov 9  }
   0x8   :  { %s3311_s3 = sld [smem:[%s4725_s0 + %s3238_s30]]   ;;  %s3241_s15 = smov 10  }
   0x9   :  { %4754 = sst [smem:[#allocation5_spill]] %s3286_s13  ;;  %s3242_s20 = smov 11  }
   0xa   :  { %s3316_s8 = sld [smem:[%s4725_s0 + %s3239_s4]]   ;;  %s3243_s26 = smov 12  }
   0xb   :  { %s3321_s14 = sld [smem:[%s4725_s0 + %s3240_s10]]   ;;  %s3244_s1 = smov 13  }
   0xc   :  { %s3326_s19 = sld [smem:[%s4725_s0 + %s3241_s15]]   ;;  %s3245_s7 = smov 14  }
   0xd   :  { %s3331_s24 = sld [smem:[%s4725_s0 + %s3242_s20]]   ;;  %s3246_s15 = smov 15  }
   0xe   :  { %s3336_s30 = sld [smem:[%s4725_s0 + %s3243_s26]]   ;;  %s3247_s22 = smov 16  }
   0xf   :  { %s3341_s6 = sld [smem:[%s4725_s0 + %s3244_s1]]   ;;  %s3248_s28 = smov 17  }
  0x10   :  { %s3346_s12 = sld [smem:[%s4725_s0 + %s3245_s7]]   ;;  %s3249_s7 = smov 18  }
  0x11   :  { %s3351_s20 = sld [smem:[%s4725_s0 + %s3246_s15]]   ;;  %s3250_s15 = smov 19  }
  0x12   :  { %s3356_s27 = sld [smem:[%s4725_s0 + %s3247_s22]]   ;;  %s3251_s22 = smov 20  }
  0x13   :  { %s3361_s4 = sld [smem:[%s4725_s0 + %s3248_s28]]   ;;  %s3252_s28 = smov 21  }
  0x14   :  { %s3366_s13 = sld [smem:[%s4725_s0 + %s3249_s7]]   ;;  %s3253_s7 = smov 22  }
  0x16   :  { %4755 = sst [smem:[#allocation6_spill]] %s3346_s12 }
  0x17   :  { %s3371_s12 = sld [smem:[%s4725_s0 + %s3250_s15]]   ;;  %s3254_s15 = smov 23  }
  0x18   :  { %4756 = sst [smem:[#allocation7_spill]] %s3356_s27 }
  0x19   :  { %4757 = sst [smem:[#allocation8_spill]] %s3361_s4 }
  0x1a   :  { %4758 = sst [smem:[#allocation9_spill]] %s3366_s13 }
  0x1b   :  { %s3376_s27 = sld [smem:[%s4725_s0 + %s3251_s22]]   ;;  %s3255_s22 = smov 24  }
  0x1c   :  { %s3381_s4 = sld [smem:[%s4725_s0 + %s3252_s28]]   ;;  %s3256_s28 = smov 25  }
  0x1d   :  { %4759 = sst [smem:[#allocation10_spill]] %s3371_s12 }
  0x1e   :  { %s3386_s13 = sld [smem:[%s4725_s0 + %s3253_s7]]   ;;  %s3257_s7 = smov 26  }
  0x1f   :  { %s3391_s12 = sld [smem:[%s4725_s0 + %s3254_s15]]   ;;  %s3258_s15 = smov 27  }
  0x21   :  { %4760 = sst [smem:[#allocation11_spill]] %s3376_s27 }
  0x22   :  { %4761 = sst [smem:[#allocation12_spill]] %s3381_s4 }
  0x23   :  { %s3396_s27 = sld [smem:[%s4725_s0 + %s3255_s22]]   ;;  %s3259_s22 = smov 28  }
  0x24   :  { %4762 = sst [smem:[#allocation13_spill]] %s3386_s13 }
  0x25   :  { %4763 = sst [smem:[#allocation14_spill]] %s3391_s12 }
  0x26   :  { %s3401_s4 = sld [smem:[%s4725_s0 + %s3256_s28]]   ;;  %s3260_s28 = smov 29  }
  0x27   :  { %s3406_s13 = sld [smem:[%s4725_s0 + %s3257_s7]]  }
  0x28   :  { %s3411_s12 = sld [smem:[%s4725_s0 + %s3258_s15]]  }
  0x29   :  { %4764 = sst [smem:[#allocation15_spill]] %s3396_s27 }
  0x2a   :  { %s3416_s27 = sld [smem:[%s4725_s0 + %s3259_s22]]  }
  0x2c   :  { %4765 = sst [smem:[#allocation16_spill]] %s3401_s4 }
  0x2d   :  { %s3421_s4 = sld [smem:[%s4725_s0 + %s3260_s28]]  }
  0x2e   :  { %v179_v0 = vld [vmem:[%s3276_s5 + $0x10] sm:$0xff]  ;;  %vm4736_vm0 = vcmask 261120   ;;  %v177_v2 = vld [vmem:[%s3276_s5] sm:$0xff]  ;;  %v180_v5 = vld [vmem:[%s3276_s5 + $0x18] sm:$0xff] }
  0x2f   :  { %v183_v1 = vld [vmem:[%s3281_s9 + $0x10] sm:$0xff]  ;;  %v181_v4 = vld [vmem:[%s3281_s9] sm:$0xff]  ;;  %v184_v6 = vld [vmem:[%s3281_s9 + $0x18] sm:$0xff] }
  0x30   :  { %v3426_v3 = vadd.f32 %v183_v1, %v179_v0  ;;  %v3431_v7 = vadd.f32 %v181_v4, %v177_v2  ;;  %v178_v8 = vld [vmem:[%s3276_s5 + $0x8] sm:$0xff]  ;;  %v3439_v12 = vadd.f32 %v184_v6, %v180_v5 }
  0x31   :  { %v182_v10 = vld [vmem:[%s3281_s9 + $0x8] sm:$0xff] }
  0x32   :  { %4766 = vst [vmem:[#allocation17_spill] sm:$0xff] %v3426_v3  ;;  %v198_v9 = vsel %vm4736_vm0, %v3426_v3, 0.0  ;;  %v192_v11 = vsel %vm4736_vm0, %v3431_v7, 0.0  ;;  %v3441_v13 = vadd.f32 %v182_v10, %v178_v8  ;;  %v201_v14 = vsel %vm4736_vm0, %v3439_v12, 0.0 }
  0x33   :  { %199 = vadd.xlane.f32.xlu1 %v198_v9  ;;  %4767 = vst [vmem:[#allocation18_spill] sm:$0xff] %v3439_v12  ;;  %193 = vadd.xlane.f32.xlu0 %v192_v11 }
  0x34   :  { %v195_v15 = vsel %vm4736_vm0, %v3441_v13, 0.0 }
  0x35   :  { %64 = vsyncpa [#allocation3], 0  ;;  %v3261_v16 = vmov 32.0   ;;  %v2999_v43 = vld [vmem:[%s3301_s25 + $0x8] sm:$0xff]  ;;  %v3001_v44 = vld [vmem:[%s3301_s25 + $0x18] sm:$0xff]  ;;  %s4794_s0 = sld [smem:[#allocation6_spill]] }
  0x36   :  { %3108 = vrcp.f32 %v3261_v16  ;;  %v3003_v45 = vld [vmem:[%s3301_s25 + $0x28] sm:$0xff]  ;;  %335 = vmatpush.bf16.msra.mxu0 %v2999_v43  ;;  %458 = vmatpush.bf16.msra.mxu1 %v3001_v44  ;;  %v2998_v48 = vld [vmem:[%s3301_s25] sm:$0xff]  ;;  %v3000_v49 = vld [vmem:[%s3301_s25 + $0x10] sm:$0xff]  ;;  %s4795_s5 = sld [smem:[#allocation7_spill]]  ;;  %s3222_s11 = scalar_lea.hbm %s3421_s4, 32 }
  0x37   :  { %557 = vmatpush.bf16.msra.mxu2 %v3003_v45  ;;  %v3002_v51 = vld [vmem:[%s3301_s25 + $0x20] sm:$0xff]  ;;  %s4796_s9 = sld [smem:[#allocation8_spill]] }
  0x38   :  { %s4807_s25 = sld [smem:[#allocation12_spill]] }
  0x3a   :  { %336 = vmatpush.bf16.msra.mxu0 %v2998_v48  ;;  %459 = vmatpush.bf16.msra.mxu1 %v3000_v49  ;;  %v124_v49 = vlaneseq }
  0x3b   :  { %202 = vadd.xlane.f32.xlu1 %v201_v14  ;;  %196 = vadd.xlane.f32.xlu0 %v195_v15 }
  0x3c   :  { %v3109_v17 = vpop.eup %3108  ;;  %558 = vmatpush.bf16.msra.mxu2 %v3002_v51  ;;  %v3502_v51 = vshrl.u32 %v124_v49, 7 }
  0x3d   :  { %v205_v18 = vmul.f32 32.0, %v3109_v17  ;;  %vm209_vm1 = vweird.f32 %v3109_v17 }
  0x3e   :  { %vm358_vm14 = vcmp.lt.s32.totalorder %v3502_v51, 1  ;;  %vm392_vm15 = vcmp.lt.s32.totalorder %v3502_v51, 2 }
  0x3f   :  { %v206_v19 = vsub.f32 1.0, %v205_v18 }
  0x41   :  { %v207_v20 = vmul.f32 %v3109_v17, %v206_v19 }
  0x43   :  { %v208_v21 = vadd.f32 %v3109_v17, %v207_v20 }
  0x45   :  { %v3447_v22 = vsel %vm209_vm1, %v3109_v17, %v208_v21  ;;  %v3088_v21 = vld [vmem:[%s3291_s17] ss:$0 sm:$0xff]  ;;  %s4798_s17 = sld [smem:[#allocation9_spill]] }
  0x46   :  { %4768 = vst [vmem:[#allocation19_spill] sm:$0xff] %v3447_v22 }
  0xa6   :  { %v200_v23 = vpop.xlane.xlu1 %199  ;;  %v194_v25 = vpop.xlane.xlu0 %193 }
  0xa7   :  { %v213_v24 = vmul.f32 %v3447_v22, %v200_v23  ;;  %v211_v26 = vmul.f32 %v3447_v22, %v194_v25 }
  0xa9   :  { %v3452_v27 = vsub.f32 %v3426_v3, %v213_v24  ;;  %v3455_v28 = vsub.f32 %v3431_v7, %v211_v26 }
  0xab   :  { %v221_v29 = vmul.f32 %v3452_v27, %v3452_v27  ;;  %v219_v30 = vmul.f32 %v3455_v28, %v3455_v28 }
  0xad   :  { %v229_v31 = vsel %vm4736_vm0, %v221_v29, 0.0  ;;  %v223_v33 = vsel %vm4736_vm0, %v219_v30, 0.0 }
  0xae   :  { %v203_v32 = vpop.xlane.xlu1 %202  ;;  %230 = vadd.xlane.f32.xlu0 %v229_v31  ;;  %224 = vadd.xlane.f32.xlu2 %v223_v33  ;;  %v197_v35 = vpop.xlane.xlu0 %196  ;;  %v3089_v31 = vld [vmem:[%s3296_s21] ss:$0 sm:$0xff]  ;;  %s4805_s21 = sld [smem:[#allocation14_spill]] }
  0xaf   :  { %v214_v34 = vmul.f32 %v3447_v22, %v203_v32  ;;  %v212_v36 = vmul.f32 %v3447_v22, %v197_v35 }
  0xb1   :  { %v3466_v37 = vsub.f32 %v3439_v12, %v214_v34  ;;  %v3469_v38 = vsub.f32 %v3441_v13, %v212_v36 }
  0xb3   :  { %v222_v39 = vmul.f32 %v3466_v37, %v3466_v37  ;;  %v220_v40 = vmul.f32 %v3469_v38, %v3469_v38 }
  0xb5   :  { %v232_v41 = vsel %vm4736_vm0, %v222_v39, 0.0  ;;  %v226_v42 = vsel %vm4736_vm0, %v220_v40, 0.0 }
  0xb6   :  { %233 = vadd.xlane.f32.xlu1 %v232_v41  ;;  %227 = vadd.xlane.f32.xlu2 %v226_v42 }
 0x121   :  { %v225_v46 = vpop.xlane.xlu2 %224  ;;  %v231_v47 = vpop.xlane.xlu0 %230 }
 0x122   :  { %v235_v50 = vmul.f32 %v225_v46, %v3447_v22  ;;  %v237_v53 = vmul.f32 %v231_v47, %v3447_v22 }
 0x124   :  { %v239_v52 = vadd.f32 1e-05, %v235_v50  ;;  %v241_v54 = vadd.f32 1e-05, %v237_v53 }
 0x126   :  { %3110 = vrsqrt.f32 %v239_v52  ;;  %vm249_vm3 = vweird.f32 %v239_v52  ;;  %vm269_vm10 = vweird.f32 %v241_v54 }
 0x127   :  { %3112 = vrsqrt.f32 %v241_v54 }
 0x129   :  { %v234_v55 = vpop.xlane.xlu1 %233  ;;  %v228_v57 = vpop.xlane.xlu2 %227 }
 0x12a   :  { %v238_v56 = vmul.f32 %v234_v55, %v3447_v22  ;;  %v236_v58 = vmul.f32 %v228_v57, %v3447_v22  ;;  %v2852_v57 = vld [vmem:[%s3311_s3 + $0x4] sm:$0x7] }
 0x12c   :  { %v242_v59 = vadd.f32 1e-05, %v238_v56  ;;  %v3111_v60 = vpop.eup %3110  ;;  %v240_v61 = vadd.f32 1e-05, %v236_v58  ;;  %v127_v56 = vadd.s32 16, %v3502_v51 }
 0x12d   :  { %v244_v62 = vmul.f32 %v3111_v60, %v239_v52  ;;  %v3113_v1 = vpop.eup %3112  ;;  %vm250_vm2 = vweird.f32 %v3111_v60  ;;  %v3511_v58 = vld [vmem:[%s3306_s29 + $0x2] ss:$0 sm:$0xff] }
 0x12e   :  { %3114 = vrsqrt.f32 %v242_v59  ;;  %v264_v9 = vmul.f32 %v3113_v1, %v241_v54  ;;  %vm251_vm4 = vmor %vm249_vm3, %vm250_vm2  ;;  %vm259_vm6 = vweird.f32 %v240_v61  ;;  %vm279_vm8 = vweird.f32 %v242_v59  ;;  %v348_v54 = vld [vmem:[%s3311_s3] sm:$0x7] }
 0x12f   :  { %3116 = vrsqrt.f32 %v240_v61  ;;  %v245_v63 = vmul.f32 %v3111_v60, %v244_v62  ;;  %vm270_vm11 = vweird.f32 %v3113_v1  ;;  %v3520_v62 = vld [vmem:[%s3306_s29 + $0x1] ss:$0 sm:$0xff] }
 0x130   :  { %v265_v16 = vmul.f32 %v3113_v1, %v264_v9  ;;  %vm271_vm13 = vmor %vm269_vm10, %vm270_vm11  ;;  %vm753_vm10 = vcmp.lt.s32.totalorder %v3502_v51, 5  ;;  %vm787_vm11 = vcmp.lt.s32.totalorder %v3502_v51, 6 }
 0x131   :  { %v246_v0 = vmul.f32 0.5, %v245_v63  ;;  %v3522_v63 = vperm.slane %v348_v54, 2 }
 0x132   :  { %v266_v23 = vmul.f32 0.5, %v265_v16  ;;  %v3549_v16 = vperm.slane %v2852_v57, 1 }
 0x133   :  { %v247_v4 = vsub.f32 1.5, %v246_v0  ;;  %v3524_v0 = vperm.slane %v2852_v57, 0 }
 0x134   :  { %v3115_v2 = vpop.eup %3114  ;;  %v267_v32 = vsub.f32 1.5, %v266_v23 }
 0x135   :  { %v3117_v5 = vpop.eup %3116  ;;  %v274_v6 = vmul.f32 %v3115_v2, %v242_v59  ;;  %v248_v8 = vmul.f32 %v3111_v60, %v247_v4  ;;  %vm280_vm9 = vweird.f32 %v3115_v2  ;;  %v3529_v4 = vperm.slane %v2852_v57, 2 }
 0x136   :  { %v254_v10 = vmul.f32 %v3117_v5, %v240_v61  ;;  %vm260_vm5 = vweird.f32 %v3117_v5  ;;  %vm281_vm12 = vmor %vm279_vm8, %vm280_vm9  ;;  %v268_v36 = vmul.f32 %v3113_v1, %v267_v32  ;;  %v3517_v61 = vperm.slane %v348_v54, 0 }
 0x137   :  { %v275_v11 = vmul.f32 %v3115_v2, %v274_v6  ;;  %v252_v15 = vsel %vm251_vm4, %v3111_v60, %v248_v8  ;;  %vm261_vm7 = vmor %vm259_vm6, %vm260_vm5  ;;  %v2869_v60 = vld [vmem:[%s3311_s3 + $0x8] sm:$0x7]  ;;  %vm685_vm5 = vcmp.lt.s32.totalorder %v3502_v51, 3  ;;  %s4812_s3 = sld [smem:[#allocation10_spill]] }
 0x138   :  { %v255_v14 = vmul.f32 %v3117_v5, %v254_v10  ;;  %v283_v20 = vmul.f32 %v252_v15, %v3455_v28  ;;  %v3534_v6 = vperm.slane %v2869_v60, 0  ;;  %v3538_v9 = vperm.slane %v2869_v60, 2 }
 0x139   :  { %v276_v18 = vmul.f32 0.5, %v275_v11  ;;  %v3540_v10 = vperm.slane %v348_v54, 1 }
 0x13a   :  { %v256_v17 = vmul.f32 0.5, %v255_v14  ;;  %v290_v30 = vmul.f32 %v3088_v21, %v283_v20 }
 0x13b   :  { %v277_v25 = vsub.f32 1.5, %v276_v18 }
 0x13c   :  { %v257_v19 = vsub.f32 1.5, %v256_v17  ;;  %v297_v28 = vadd.f32 %v3089_v31, %v290_v30 }
 0x13d   :  { %v278_v34 = vmul.f32 %v3115_v2, %v277_v25 }
 0x13e   :  { %v258_v24 = vmul.f32 %v3117_v5, %v257_v19 }
 0x13f   :  { %v282_v40 = vsel %vm281_vm12, %v3115_v2, %v278_v34  ;;  %v3527_v2 = vand.u32 15, %v127_v56 }
 0x140   :  { %v262_v26 = vsel %vm261_vm7, %v3117_v5, %v258_v24  ;;  %v286_v41 = vmul.f32 %v282_v40, %v3466_v37  ;;  %v3592_v40 = vld [vmem:[%s3321_s14] sm:$0xff]  ;;  %vm719_vm7 = vcmp.lt.s32.totalorder %v3502_v51, 4 }
 0x141   :  { %v284_v29 = vmul.f32 %v262_v26, %v3469_v38  ;;  %v272_v38 = vsel %vm271_vm13, %v3113_v1, %v268_v36  ;;  %vm365_vm1 = vcmp.ge.s32.totalorder %v3527_v2, 1  ;;  %vm399_vm2 = vcmp.ge.s32.totalorder %v3527_v2, 2 }
 0x142   :  { %v285_v42 = vmul.f32 %v272_v38, %v3452_v27  ;;  %v293_v43 = vmul.f32 %v3088_v21, %v286_v41  ;;  %v3500_v27 = vld [vmem:[%s3306_s29] ss:$0 sm:$0xff]  ;;  %s4810_s29 = sld [smem:[#allocation5_spill]] }
 0x143   :  { %v291_v33 = vmul.f32 %v3088_v21, %v284_v29  ;;  %v3571_v29 = vand.u32 15, %v3502_v51 }
 0x144   :  { %v292_v44 = vmul.f32 %v3088_v21, %v285_v42  ;;  %v300_v45 = vadd.f32 %v3089_v31, %v293_v43  ;;  %v3560_v21 = vperm.slane %v2869_v60, 1 }
 0x145   :  { %v298_v35 = vadd.f32 %v3089_v31, %v291_v33  ;;  %vm363_vm3 = vcmp.ge.s32.totalorder %v3571_v29, 1  ;;  %vm397_vm4 = vcmp.ge.s32.totalorder %v3571_v29, 2  ;;  %vm690_vm6 = vcmp.ge.s32.totalorder %v3571_v29, 3 }
 0x146   :  { %v299_v46 = vadd.f32 %v3089_v31, %v292_v44  ;;  %vm724_vm8 = vcmp.ge.s32.totalorder %v3571_v29, 4  ;;  %vm758_vm9 = vcmp.ge.s32.totalorder %v3571_v29, 5  ;;  %vm792_vm12 = vcmp.ge.s32.totalorder %v3571_v29, 6 }
 0x147   :  { %v301_v39 = vpack.c.bf16 %v298_v35, %v297_v28  ;;  %vm826_vm13 = vcmp.ge.s32.totalorder %v3571_v29, 7 }
 0x148   :  { %v302_v47 = vpack.c.bf16 %v300_v45, %v299_v46 }
 0x149   :  { %2835 = vmatmul.msk.bf16.vlgmr.msra.gmra.mxu0 %vm4736_vm0, %v301_v39  ;;  %2850 = vmatmul.msk.bf16.vlgmr.msra.gmra.mxu1 %vm4736_vm0, %v301_v39 }
 0x14a   :  { %2867 = vmatmul.msk.bf16.vlgmr.msra.gmra.mxu2 %vm4736_vm0, %v301_v39  ;;  %v3005_v39 = vld [vmem:[%s3331_s24 + $0x8] sm:$0xff] }
 0x14b   :  { %1101 = vmatpush.bf16.msra.mxu3 %v3005_v39 }
 0x159   :  { %2836 = vmatmul.msk.bf16.gmra.mxu0 %vm4736_vm0, %v302_v47  ;;  %2851 = vmatmul.msk.bf16.gmra.mxu1 %vm4736_vm0, %v302_v47 }
 0x15a   :  { %2868 = vmatmul.msk.bf16.gmra.mxu2 %vm4736_vm0, %v302_v47  ;;  %vm821_vm0 = vcmp.lt.s32.totalorder %v3502_v51, 7 }
 0x1c6   :  { %v338_v48 = vpop.f32.mrf.mxu0  ;;  %v461_v37 = vpop.f32.mrf.mxu1 }
 0x1c7   :  { %v3514_v59 = vadd.f32 %v3500_v27, %v338_v48  ;;  %v3546_v15 = vadd.f32 %v3520_v62, %v461_v37  ;;  %v3004_v48 = vld [vmem:[%s3331_s24] sm:$0xff]  ;;  %s4818_s24 = sld [smem:[#allocation13_spill]] }
 0x1c8   :  { %1102 = vmatpush.bf16.msra.mxu3 %v3004_v48 }
 0x1c9   :  { %v354_v8 = vrot.slane %v3514_v59, 7  ;;  %v3575_v30 = vmul.f32 %v3517_v61, %v3514_v59  ;;  %v388_v34 = vrot.slane %v3514_v59, 6  ;;  %v3583_v28 = vmul.f32 %v3524_v0, %v3546_v15 }
 0x1ca   :  { %v478_v38 = vrot.slane %v3546_v15, 7  ;;  %v499_v41 = vrot.slane %v3546_v15, 6 }
 0x1cd   :  { %v560_v50 = vpop.f32.mrf.mxu2 }
 0x1ce   :  { %v340_v52 = vpop.f32.mrf.mxu0  ;;  %v463_v53 = vpop.f32.mrf.mxu1  ;;  %v3532_v5 = vadd.f32 %v3511_v58, %v560_v50 }
 0x1cf   :  { %v3506_v55 = vadd.f32 %v3500_v27, %v340_v52  ;;  %v3543_v11 = vadd.f32 %v3520_v62, %v463_v53  ;;  %v3625_v53 = vperm.slane %v3592_v40, 0 }
 0x1d0   :  { %v4734_v24 = vrot.slane %v3532_v5, 7  ;;  %v4733_v37 = vrot.slane %v3532_v5, 6 }
 0x1d1   :  { %v355_v1 = vrot.slane %v3506_v55, 7  ;;  %v389_v25 = vrot.slane %v3506_v55, 6  ;;  %v4732_v31 = vrot.slane %v3543_v11, 7  ;;  %v4731_v32 = vrot.slane %v3543_v11, 6 }
 0x1d2   :  { %v351_v44 = vmul.f32 %v3517_v61, %v3506_v55 }
 0x1d3   :  { %v361_v20 = vsel %vm358_vm14, %v354_v8, %v355_v1  ;;  %v395_v45 = vsel %vm392_vm15, %v388_v34, %v389_v25  ;;  %v484_v49 = vsel %vm358_vm14, %v478_v38, %v4732_v31  ;;  %v505_v50 = vsel %vm392_vm15, %v499_v41, %v4731_v32 }
 0x1d4   :  { %v381_v35 = vmul.f32 %v3540_v10, %v361_v20 }
 0x1d5   :  { %v562_v14 = vpop.f32.mrf.mxu2 }
 0x1d6   :  { %v3552_v17 = vadd.f32 %v3511_v58, %v562_v14  ;;  %v343_v18 = vpop.f32.mrf.mxu0  ;;  %v3554_v19 = vpop.f32.mrf.mxu1  ;;  %v385_v54 = vadd.f32 %v381_v35, %v351_v44  ;;  %v415_v14 = vmul.f32 %v3522_v63, %v395_v45  ;;  %v492_v35 = vmul.f32 %v3549_v16, %v484_v49  ;;  %v3657_v49 = vld [vmem:[%s3316_s8] ss:$0 sm:$0xff] }
 0x1d7   :  { %v3563_v23 = vadd.f32 %v3500_v27, %v343_v18  ;;  %v475_v18 = vmul.f32 %v3524_v0, %v3543_v11  ;;  %v513_v44 = vmul.f32 %v3529_v4, %v505_v50 }
 0x1d8   :  { %v578_v26 = vrot.slane %v3552_v17, 7  ;;  %v599_v42 = vrot.slane %v3552_v17, 6  ;;  %v574_v55 = vmul.f32 %v3534_v6, %v3552_v17  ;;  %v419_v31 = vadd.f32 %v415_v14, %v385_v54 }
 0x1d9   :  { %v356_v33 = vrot.slane %v3563_v23, 7  ;;  %v390_v47 = vrot.slane %v3563_v23, 6  ;;  %v352_v50 = vmul.f32 %v3517_v61, %v3563_v23 }
 0x1da   :  { %v583_v36 = vsel %vm358_vm14, %v4734_v24, %v578_v26  ;;  %v604_v17 = vsel %vm392_vm15, %v4733_v37, %v599_v42  ;;  %v427_v24 = vadd.f32 %v3657_v49, %v419_v31 }
 0x1db   :  { %v360_v43 = vsel %vm358_vm14, %v355_v1, %v356_v33  ;;  %v591_v46 = vmul.f32 %v3560_v21, %v583_v36  ;;  %v3636_v1 = vmul.f32 %v3534_v6, %v3532_v5  ;;  %v394_v39 = vsel %vm392_vm15, %v389_v25, %v390_v47 }
 0x1dc   :  { %v377_v56 = vsel %vm365_vm1, %v360_v43, 0.0 }
 0x1dd   :  { %v565_v52 = vpop.f32.mrf.mxu2  ;;  %v595_v36 = vadd.f32 %v591_v46, %v574_v55  ;;  %v382_v45 = vmul.f32 %v3540_v10, %v377_v56  ;;  %v612_v46 = vmul.f32 %v3538_v9, %v604_v17  ;;  %v411_v55 = vsel %vm399_vm2, %v394_v39, 0.0 }
 0x1de   :  { %v3632_v57 = vadd.f32 %v3511_v58, %v565_v52  ;;  %v345_v60 = vpop.f32.mrf.mxu0  ;;  %v468_v20 = vpop.f32.mrf.mxu1  ;;  %v496_v56 = vadd.f32 %v492_v35, %v475_v18 }
 0x1df   :  { %v346_v32 = vadd.f32 %v3500_v27, %v345_v60  ;;  %v3665_v48 = vadd.f32 %v3520_v62, %v468_v20  ;;  %v616_v60 = vadd.f32 %v612_v46, %v595_v36  ;;  %v386_v20 = vadd.f32 %v382_v45, %v352_v50 }
 0x1e0   :  { %v4735_v43 = vrot.slane %v3632_v57, 7  ;;  %v600_v52 = vrot.slane %v3632_v57, 6  ;;  %v575_v14 = vmul.f32 %v3534_v6, %v3632_v57 }
 0x1e1   :  { %v357_v37 = vrot.slane %v346_v32, 7  ;;  %v4738_v18 = vrot.slane %v3665_v48, 7  ;;  %v4737_v46 = vrot.slane %v3665_v48, 6 }
 0x1e2   :  { %v582_v25 = vsel %vm358_vm14, %v578_v26, %v4735_v43  ;;  %v603_v54 = vsel %vm392_vm15, %v599_v42, %v600_v52  ;;  %v3678_v26 = vld [vmem:[%s3316_s8 + $0x2] ss:$0 sm:$0xff]  ;;  %v416_v43 = vmul.f32 %v3522_v63, %v411_v55 }
 0x1e3   :  { %v587_v27 = vsel %vm365_vm1, %v582_v25, 0.0  ;;  %v608_v39 = vsel %vm399_vm2, %v603_v54, 0.0  ;;  %v391_v25 = vrot.slane %v346_v32, 6  ;;  %v359_v36 = vsel %vm358_vm14, %v356_v33, %v357_v37 }
 0x1e4   :  { %v592_v17 = vmul.f32 %v3560_v21, %v587_v27  ;;  %v362_v45 = vsel %vm358_vm14, %v357_v37, %v354_v8  ;;  %v625_v50 = vadd.f32 %v3678_v26, %v616_v60  ;;  %v613_v55 = vmul.f32 %v3538_v9, %v608_v39 }
 0x1e5   :  { %v567_v35 = vpop.f32.mrf.mxu2  ;;  %v396_v31 = vsel %vm392_vm15, %v391_v25, %v388_v34  ;;  %v375_v27 = vsel %vm363_vm3, %v362_v45, 0.0  ;;  %v383_v33 = vmul.f32 %v3540_v10, %v359_v36  ;;  %v420_v54 = vadd.f32 %v416_v43, %v386_v20 }
 0x1e6   :  { %v596_v42 = vadd.f32 %v592_v17, %v575_v14  ;;  %v353_v14 = vmul.f32 %v3517_v61, %v346_v32  ;;  %v380_v8 = vmul.f32 %v3540_v10, %v375_v27  ;;  %v568_v59 = vadd.f32 %v3511_v58, %v567_v35 }
 0x1e7   :  { %v393_v34 = vsel %vm392_vm15, %v390_v47, %v391_v25  ;;  %v409_v60 = vsel %vm397_vm4, %v396_v31, 0.0  ;;  %v485_v61 = vsel %vm358_vm14, %v4738_v18, %v478_v38  ;;  %v506_v32 = vsel %vm392_vm15, %v4737_v46, %v499_v41 }
 0x1e8   :  { %v617_v37 = vadd.f32 %v613_v55, %v596_v42  ;;  %v384_v10 = vadd.f32 %v380_v8, %v3575_v30  ;;  %v387_v58 = vadd.f32 %v383_v33, %v353_v14  ;;  %v486_v23 = vsel %vm363_vm3, %v485_v61, 0.0 }
 0x1e9   :  { %v517_v47 = vadd.f32 %v513_v44, %v496_v56  ;;  %v3732_v43 = vadd.f32 %v3520_v62, %v3554_v19  ;;  %v491_v38 = vmul.f32 %v3549_v16, %v486_v23  ;;  %v126_v30 = vadd.s32 8, %v3502_v51  ;;  %v3745_v19 = vld [vmem:[%s3316_s8 + $0x1] ss:$0 sm:$0xff]  ;;  %s4814_s8 = sld [smem:[#allocation11_spill]] }
 0x1ea   :  { %v3736_v17 = vmul.f32 %v625_v50, %v427_v24  ;;  %v414_v20 = vmul.f32 %v3522_v63, %v409_v60  ;;  %v417_v15 = vmul.f32 %v3522_v63, %v393_v34  ;;  %v507_v39 = vsel %vm397_vm4, %v506_v32, 0.0 }
 0x1eb   :  { %v428_v41 = vadd.f32 %v3657_v49, %v420_v54  ;;  %v626_v44 = vadd.f32 %v3678_v26, %v617_v37  ;;  %v580_v56 = vrot.slane %v568_v59, 7  ;;  %v601_v62 = vrot.slane %v568_v59, 6 }
 0x1ec   :  { %v418_v25 = vadd.f32 %v414_v20, %v384_v10  ;;  %v421_v42 = vadd.f32 %v417_v15, %v387_v58  ;;  %v512_v24 = vmul.f32 %v3529_v4, %v507_v39  ;;  %v495_v35 = vadd.f32 %v491_v38, %v3583_v28 }
 0x1ed   :  { %v4769_v36 = vrot.slane %v3632_v57, 7  ;;  %v4770_v45 = vrot.slane %v3532_v5, 7  ;;  %v602_v50 = vsel %vm392_vm15, %v600_v52, %v601_v62  ;;  %v4771_v55 = vrot.slane %v3532_v5, 6 }
 0x1ee   :  { %v576_v27 = vmul.f32 %v3534_v6, %v568_v59  ;;  %v3772_v8 = vand.u32 15, %v126_v30  ;;  %v516_v52 = vadd.f32 %v512_v24, %v495_v35  ;;  %v3775_v5 = vadd.f32 %v3745_v19, %v517_v47 }
 0x1ef   :  { %v581_v63 = vsel %vm358_vm14, %v4769_v36, %v580_v56  ;;  %v584_v31 = vsel %vm358_vm14, %v580_v56, %v4770_v45  ;;  %v605_v28 = vsel %vm392_vm15, %v601_v62, %v4771_v55  ;;  %v3777_v37 = vmul.f32 %v626_v44, %v428_v41 }
 0x1f0   :  { %v585_v33 = vsel %vm363_vm3, %v584_v31, 0.0  ;;  %v593_v54 = vmul.f32 %v3560_v21, %v581_v63  ;;  %v606_v14 = vsel %vm397_vm4, %v605_v28, 0.0  ;;  %v429_v6 = vadd.f32 %v3657_v49, %v421_v42 }
 0x1f1   :  { %v590_v57 = vmul.f32 %v3560_v21, %v585_v33  ;;  %v614_v34 = vmul.f32 %v3538_v9, %v602_v50  ;;  %v426_v60 = vadd.f32 %v3657_v49, %v418_v25  ;;  %v611_v10 = vmul.f32 %v3538_v9, %v606_v14 }
 0x1f2   :  { %v597_v59 = vadd.f32 %v593_v54, %v576_v27  ;;  %v636_v21 = vmul.f32 %v3625_v53, %v3736_v17  ;;  %v640_v23 = vrot.slane %v3736_v17, 7  ;;  %v3788_v32 = vperm.slane %v3592_v40, 1 }
 0x1f3   :  { %v594_v61 = vadd.f32 %v590_v57, %v3636_v1  ;;  %v4749_v47 = vrot.slane %v3736_v17, 6  ;;  %v3792_v30 = vadd.f32 %v3745_v19, %v516_v52  ;;  %v3795_v49 = vperm.slane %v3592_v40, 2 }
 0x1f4   :  { %v618_v58 = vadd.f32 %v614_v34, %v597_v59  ;;  %v4747_v9 = vrot.slane %v3736_v17, 5  ;;  %v3802_v20 = vperm.slane %v3592_v40, 3  ;;  %v4740_v39 = vrot.slane %v3736_v17, 4 }
 0x1f5   :  { %v615_v38 = vadd.f32 %v611_v10, %v594_v61  ;;  %v3811_v44 = vperm.slane %v3592_v40, 4  ;;  %v4739_v56 = vrot.slane %v3736_v17, 3  ;;  %v4743_v25 = vrot.slane %v3736_v17, 2 }
 0x1f6   :  { %v627_v1 = vadd.f32 %v3678_v26, %v618_v58  ;;  %v3823_v42 = vperm.slane %v3592_v40, 6  ;;  %v4742_v36 = vrot.slane %v3736_v17, 1  ;;  %v3829_v63 = vperm.slane %v3592_v40, 7 }
 0x1f7   :  { %v624_v15 = vadd.f32 %v3678_v26, %v615_v38  ;;  %v3819_v26 = vperm.slane %v3592_v40, 5 }
 0x1f8   :  { %v3808_v41 = vmul.f32 %v627_v1, %v429_v6 }
 0x1f9   :  { %v3815_v62 = vmul.f32 %v624_v15, %v426_v60 }
 0x1fa   :  { %v642_v24 = vrot.slane %v3808_v41, 7  ;;  %v663_v35 = vrot.slane %v3808_v41, 6  ;;  %v4748_v55 = vrot.slane %v3808_v41, 5  ;;  %v4741_v33 = vrot.slane %v3808_v41, 4 }
 0x1fb   :  { %v639_v45 = vrot.slane %v3815_v62, 7  ;;  %v660_v31 = vrot.slane %v3815_v62, 6  ;;  %v681_v50 = vrot.slane %v3815_v62, 5  ;;  %v635_v28 = vmul.f32 %v3625_v53, %v3815_v62 }
 0x1fc   :  { %v715_v27 = vrot.slane %v3815_v62, 4  ;;  %v749_v54 = vrot.slane %v3815_v62, 3  ;;  %v4745_v60 = vrot.slane %v3808_v41, 3  ;;  %v783_v38 = vrot.slane %v3815_v62, 2 }
 0x1fd   :  { %v645_v40 = vsel %vm358_vm14, %v639_v45, %v640_v23  ;;  %v646_v14 = vsel %vm358_vm14, %v642_v24, %v639_v45  ;;  %v666_v57 = vsel %vm392_vm15, %v660_v31, %v4749_v47  ;;  %v667_v52 = vsel %vm392_vm15, %v663_v35, %v660_v31 }
 0x1fe   :  { %v647_v6 = vsel %vm363_vm3, %v646_v14, 0.0  ;;  %v653_v59 = vmul.f32 %v3788_v32, %v645_v40  ;;  %v668_v34 = vsel %vm397_vm4, %v667_v52, 0.0  ;;  %v688_v10 = vsel %vm685_vm5, %v681_v50, %v4747_v9 }
 0x1ff   :  { %v652_v61 = vmul.f32 %v3788_v32, %v647_v6  ;;  %v689_v58 = vsel %vm685_vm5, %v4748_v55, %v681_v50  ;;  %v674_v15 = vmul.f32 %v3795_v49, %v666_v57  ;;  %v722_v31 = vsel %vm719_vm7, %v715_v27, %v4740_v39  ;;  %v633_v39 = vld [vmem:[%s3321_s14 + $0x8] sm:$0xff]  ;;  %s4816_s14 = sld [smem:[#allocation15_spill]] }
 0x200   :  { %v657_v1 = vadd.f32 %v653_v59, %v636_v21  ;;  %v702_v45 = vsel %vm690_vm6, %v689_v58, 0.0  ;;  %v673_v6 = vmul.f32 %v3795_v49, %v668_v34  ;;  %v708_v46 = vmul.f32 %v3802_v20, %v688_v10 }
 0x201   :  { %v656_v40 = vadd.f32 %v652_v61, %v635_v28  ;;  %v723_v21 = vsel %vm719_vm7, %v4741_v33, %v715_v27  ;;  %v756_v59 = vsel %vm753_vm10, %v749_v54, %v4739_v56  ;;  %v757_v28 = vsel %vm753_vm10, %v4745_v60, %v749_v54 }
 0x202   :  { %v678_v50 = vadd.f32 %v674_v15, %v657_v1  ;;  %v736_v57 = vsel %vm724_vm8, %v723_v21, 0.0  ;;  %v707_v61 = vmul.f32 %v3802_v20, %v702_v45  ;;  %v742_v10 = vmul.f32 %v3811_v44, %v722_v31 }
 0x203   :  { %v677_v34 = vadd.f32 %v673_v6, %v656_v40  ;;  %v770_v27 = vsel %vm758_vm9, %v757_v28, 0.0  ;;  %v741_v15 = vmul.f32 %v3811_v44, %v736_v57  ;;  %v776_v18 = vmul.f32 %v3819_v26, %v756_v59 }
 0x204   :  { %v712_v1 = vadd.f32 %v708_v46, %v678_v50  ;;  %v4744_v56 = vrot.slane %v3808_v41, 2  ;;  %v790_v54 = vsel %vm787_vm11, %v783_v38, %v4743_v25  ;;  %v817_v45 = vrot.slane %v3815_v62, 1 }
 0x205   :  { %v711_v33 = vadd.f32 %v707_v61, %v677_v34  ;;  %v4746_v31 = vrot.slane %v3808_v41, 1  ;;  %v775_v46 = vmul.f32 %v3819_v26, %v770_v27  ;;  %vm877_vm3 = vcmp.ge.s32.totalorder %v3772_v8, 9 }
 0x206   :  { %v746_v40 = vadd.f32 %v742_v10, %v712_v1  ;;  %v791_v6 = vsel %vm787_vm11, %v4744_v56, %v783_v38  ;;  %v824_v59 = vsel %vm821_vm0, %v817_v45, %v4742_v36  ;;  %v810_v10 = vmul.f32 %v3823_v42, %v790_v54 }
 0x207   :  { %v745_v50 = vadd.f32 %v741_v15, %v711_v33  ;;  %v804_v57 = vsel %vm792_vm12, %v791_v6, 0.0  ;;  %v825_v34 = vsel %vm821_vm0, %v4746_v31, %v817_v45  ;;  %v3932_v33 = vperm.slane %v633_v39, 0 }
 0x208   :  { %v780_v61 = vadd.f32 %v776_v18, %v746_v40  ;;  %v838_v38 = vsel %vm826_vm13, %v825_v34, 0.0  ;;  %v809_v1 = vmul.f32 %v3823_v42, %v804_v57  ;;  %v844_v36 = vmul.f32 %v3829_v63, %v824_v59 }
 0x209   :  { %v779_v27 = vadd.f32 %v775_v46, %v745_v50  ;;  %v843_v15 = vmul.f32 %v3829_v63, %v838_v38  ;;  %v889_v56 = vsel %vm877_vm3, %v646_v14, 0.0  ;;  %v3937_v60 = vperm.slane %v633_v39, 1 }
 0x20a   :  { %v814_v25 = vadd.f32 %v810_v10, %v780_v61  ;;  %vm902_vm4 = vcmp.ge.s32.totalorder %v3772_v8, 10  ;;  %v3941_v54 = vmul.f32 0.0, %v3932_v33  ;;  %v869_v29 = vmul.f32 %v3932_v33, %v3815_v62 }
 0x20b   :  { %v813_v18 = vadd.f32 %v809_v1, %v779_v27  ;;  %vm927_vm6 = vcmp.ge.s32.totalorder %v3772_v8, 11  ;;  %v3947_v40 = vmul.f32 0.0, %v3937_v60  ;;  %v914_v46 = vsel %vm902_vm4, %v667_v52, 0.0 }
 0x20c   :  { %v848_v45 = vadd.f32 %v844_v36, %v814_v25  ;;  %v3949_v50 = vperm.slane %v633_v39, 2  ;;  %v894_v57 = vmul.f32 %v3937_v60, %v889_v56  ;;  %v939_v59 = vsel %vm927_vm6, %v689_v58, 0.0 }
 0x20d   :  { %v847_v14 = vadd.f32 %v843_v15, %v813_v18  ;;  %v3952_v61 = vperm.slane %v633_v39, 3  ;;  %vm952_vm8 = vcmp.ge.s32.totalorder %v3772_v8, 12  ;;  %v3955_v38 = vperm.slane %v633_v39, 4 }
 0x20e   :  { %v873_v10 = vadd.f32 %v869_v29, %v848_v45  ;;  %vm977_vm9 = vcmp.ge.s32.totalorder %v3772_v8, 13  ;;  %v3960_v36 = vmul.f32 0.0, %v3949_v50  ;;  %v919_v52 = vmul.f32 %v3949_v50, %v914_v46 }
 0x20f   :  { %v872_v25 = vadd.f32 %v3941_v54, %v847_v14  ;;  %v3964_v56 = vmul.f32 0.0, %v3952_v61  ;;  %v944_v27 = vmul.f32 %v3952_v61, %v939_v59  ;;  %v964_v1 = vsel %vm952_vm8, %v723_v21, 0.0 }
 0x210   :  { %v898_v58 = vadd.f32 %v894_v57, %v873_v10  ;;  %v3968_v15 = vmul.f32 0.0, %v3955_v38  ;;  %v989_v29 = vsel %vm977_vm9, %v757_v28, 0.0  ;;  %v3971_v45 = vperm.slane %v633_v39, 5  ;;  %v3978_v57 = vld [vmem:[%s3326_s19] ss:$0 sm:$0xff]  ;;  %s3262_s19 = smov 120  }
 0x211   :  { %v897_v18 = vadd.f32 %v3947_v40, %v872_v25  ;;  %vm1002_vm12 = vcmp.ge.s32.totalorder %v3772_v8, 14  ;;  %v3974_v46 = vperm.slane %v633_v39, 6  ;;  %vm1027_vm13 = vcmp.ge.s32.totalorder %v3772_v8, 15 }
 0x212   :  { %v923_v14 = vadd.f32 %v919_v52, %v898_v58  ;;  %v1014_v31 = vsel %vm1002_vm12, %v791_v6, 0.0  ;;  %v969_v59 = vmul.f32 %v3955_v38, %v964_v1  ;;  %v3983_v10 = vmul.f32 0.0, %v3971_v45 }
 0x213   :  { %v922_v21 = vadd.f32 %v3960_v36, %v897_v18  ;;  %v3985_v28 = vperm.slane %v633_v39, 7  ;;  %v994_v9 = vmul.f32 %v3971_v45, %v989_v29  ;;  %v3989_v6 = vmul.f32 0.0, %v3974_v46 }
 0x214   :  { %v948_v25 = vadd.f32 %v944_v27, %v923_v14  ;;  %v1039_v52 = vsel %vm1027_vm13, %v825_v34, 0.0  ;;  %v1019_v58 = vmul.f32 %v3974_v46, %v1014_v31  ;;  %v1055_v39 = vmul.f32 %v3978_v57, %v3815_v62 }
 0x215   :  { %v947_v8 = vadd.f32 %v3964_v56, %v922_v21  ;;  %v3994_v18 = vmul.f32 0.0, %v3985_v28  ;;  %v1044_v1 = vmul.f32 %v3985_v28, %v1039_v52  ;;  %v1056_v27 = vmul.f32 %v3978_v57, %v3736_v17 }
 0x216   :  { %v973_v55 = vadd.f32 %v969_v59, %v948_v25  ;;  %v128_v29 = vadd.s32 24, %v3502_v51  ;;  %v637_v14 = vmul.f32 %v3625_v53, %v3777_v37  ;;  %v638_v31 = vmul.f32 %v3625_v53, %v3808_v41 }
 0x217   :  { %v972_v34 = vadd.f32 %v3968_v15, %v947_v8  ;;  %v641_v21 = vrot.slane %v3777_v37, 7  ;;  %v662_v62 = vrot.slane %v3777_v37, 6  ;;  %v683_v25 = vrot.slane %v3777_v37, 5 }
 0x218   :  { %v998_v52 = vadd.f32 %v994_v9, %v973_v55  ;;  %v4008_v59 = vand.u32 15, %v128_v29  ;;  %vm692_vm3 = vcmp.ge.s32.totalorder %v3527_v2, 3  ;;  %vm760_vm4 = vcmp.ge.s32.totalorder %v3527_v2, 5 }
 0x219   :  { %v997_v47 = vadd.f32 %v3983_v10, %v972_v34  ;;  %v643_v8 = vsel %vm358_vm14, %v641_v21, %v642_v24  ;;  %v4021_v53 = vsel %vm358_vm14, %v640_v23, %v641_v21  ;;  %v664_v24 = vsel %vm392_vm15, %v662_v62, %v663_v35 }
 0x21a   :  { %v1023_v9 = vadd.f32 %v1019_v58, %v998_v52  ;;  %v649_v55 = vsel %vm365_vm1, %v4021_v53, 0.0  ;;  %v655_v29 = vmul.f32 %v3788_v32, %v643_v8  ;;  %v4772_v23 = vrot.slane %v3736_v17, 6 }
 0x21b   :  { %v1022_v34 = vadd.f32 %v3989_v6, %v997_v47  ;;  %v654_v12 = vmul.f32 %v3788_v32, %v649_v55  ;;  %v676_v21 = vmul.f32 %v3795_v49, %v664_v24  ;;  %v4773_v35 = vrot.slane %v3808_v41, 5 }
 0x21c   :  { %v4038_v58 = vsel %vm392_vm15, %v4772_v23, %v662_v62  ;;  %v1048_v52 = vadd.f32 %v1044_v1, %v1023_v9  ;;  %v659_v3 = vadd.f32 %v655_v29, %v638_v31  ;;  %v4774_v62 = vrot.slane %v3736_v17, 5 }
 0x21d   :  { %v670_v8 = vsel %vm399_vm2, %v4038_v58, 0.0  ;;  %v686_v47 = vsel %vm685_vm5, %v683_v25, %v4773_v35  ;;  %v1047_v32 = vadd.f32 %v3994_v18, %v1022_v34  ;;  %v658_v55 = vadd.f32 %v654_v12, %v637_v14 }
 0x21e   :  { %v675_v22 = vmul.f32 %v3795_v49, %v670_v8  ;;  %v4054_v1 = vsel %vm685_vm5, %v4774_v62, %v683_v25  ;;  %v1060_v31 = vadd.f32 %v1056_v27, %v1048_v52  ;;  %v680_v9 = vadd.f32 %v676_v21, %v659_v3 }
 0x21f   :  { %v704_v29 = vsel %vm692_vm3, %v4054_v1, 0.0  ;;  %v710_v24 = vmul.f32 %v3802_v20, %v686_v47  ;;  %v1059_v23 = vadd.f32 %v1055_v39, %v1047_v32  ;;  %v717_v49 = vrot.slane %v3777_v37, 4 }
 0x220   :  { %v679_v35 = vadd.f32 %v675_v22, %v658_v55  ;;  %v709_v12 = vmul.f32 %v3802_v20, %v704_v29  ;;  %v1064_v14 = vmul.f32 %v1060_v31, %v3775_v5  ;;  %vm726_vm5 = vcmp.ge.s32.totalorder %v3527_v2, 4 }
 0x221   :  { %v714_v34 = vadd.f32 %v710_v24, %v680_v9  ;;  %v751_v27 = vrot.slane %v3777_v37, 3  ;;  %v1063_v3 = vmul.f32 %v1059_v23, %v3792_v30  ;;  %v4775_v21 = vrot.slane %v3808_v41, 4 }
 0x222   :  { %v713_v25 = vadd.f32 %v709_v12, %v679_v35  ;;  %v4776_v22 = vrot.slane %v3736_v17, 4  ;;  %v4777_v8 = vrot.slane %v3808_v41, 3  ;;  %v4778_v30 = vrot.slane %v3736_v17, 3 }
 0x223   :  { %v720_v39 = vsel %vm719_vm7, %v717_v49, %v4775_v21  ;;  %v1072_v55 = vpack.c.bf16 %v1064_v14, %v1063_v3  ;;  %v785_v24 = vrot.slane %v3777_v37, 2  ;;  %vm4779_vm6 = vcmask 261120  }
 0x224   :  { %v721_v20 = vsel %vm719_vm7, %v4776_v22, %v717_v49  ;;  %v744_v5 = vmul.f32 %v3811_v44, %v720_v39  ;;  %v754_v47 = vsel %vm753_vm10, %v751_v27, %v4777_v8  ;;  %v755_v32 = vsel %vm753_vm10, %v4778_v30, %v751_v27 }
 0x225   :  { %v738_v52 = vsel %vm726_vm5, %v721_v20, 0.0  ;;  %v778_v31 = vmul.f32 %v3819_v26, %v754_v47  ;;  %v772_v29 = vsel %vm760_vm4, %v755_v32, 0.0  ;;  %vm794_vm7 = vcmp.ge.s32.totalorder %v3527_v2, 6  ;;  %2879 = vmatmul.msk.bf16.vlgmr.msra.gmra.mxu3 %vm4779_vm6, %v1072_v55 }
 0x226   :  { %v743_v62 = vmul.f32 %v3811_v44, %v738_v52  ;;  %v748_v9 = vadd.f32 %v744_v5, %v714_v34  ;;  %v777_v35 = vmul.f32 %v3819_v26, %v772_v29  ;;  %v819_v12 = vrot.slane %v3777_v37, 1 }
 0x227   :  { %v4780_v44 = vrot.slane %v3808_v41, 2  ;;  %v4781_v34 = vrot.slane %v3736_v17, 2  ;;  %vm828_vm10 = vcmp.ge.s32.totalorder %v3527_v2, 7  ;;  %v4782_v26 = vrot.slane %v3808_v41, 1 }
 0x228   :  { %v747_v23 = vadd.f32 %v743_v62, %v713_v25  ;;  %v782_v49 = vadd.f32 %v778_v31, %v748_v9  ;;  %v480_v22 = vrot.slane %v3732_v43, 7  ;;  %v4783_v5 = vrot.slane %v3736_v17, 1 }
 0x229   :  { %v788_v14 = vsel %vm787_vm11, %v785_v24, %v4780_v44  ;;  %v789_v27 = vsel %vm787_vm11, %v4781_v34, %v785_v24  ;;  %v822_v39 = vsel %vm821_vm0, %v819_v12, %v4782_v26  ;;  %vm879_vm11 = vcmp.ge.s32.totalorder %v4008_v59, 9 }
 0x22a   :  { %v781_v3 = vadd.f32 %v777_v35, %v747_v23  ;;  %v806_v21 = vsel %vm794_vm7, %v789_v27, 0.0  ;;  %v812_v25 = vmul.f32 %v3823_v42, %v788_v14  ;;  %v823_v8 = vsel %vm821_vm0, %v4783_v5, %v819_v12 }
 0x22b   :  { %v811_v52 = vmul.f32 %v3823_v42, %v806_v21  ;;  %v840_v30 = vsel %vm828_vm10, %v823_v8, 0.0  ;;  %v846_v55 = vmul.f32 %v3829_v63, %v822_v39  ;;  %vm904_vm8 = vcmp.ge.s32.totalorder %v4008_v59, 10 }
 0x22c   :  { %v816_v47 = vadd.f32 %v812_v25, %v782_v49  ;;  %v845_v31 = vmul.f32 %v3829_v63, %v840_v30  ;;  %v891_v9 = vsel %vm879_vm11, %v4021_v53, 0.0  ;;  %v871_v17 = vmul.f32 %v3932_v33, %v3777_v37 }
 0x22d   :  { %v815_v62 = vadd.f32 %v811_v52, %v781_v3  ;;  %vm929_vm9 = vcmp.ge.s32.totalorder %v4008_v59, 11  ;;  %v4784_v42 = vrot.slane %v3543_v11, 7  ;;  %v916_v35 = vsel %vm904_vm8, %v4038_v58, 0.0 }
 0x22e   :  { %v850_v29 = vadd.f32 %v846_v55, %v816_v47  ;;  %v896_v49 = vmul.f32 %v3937_v60, %v891_v9  ;;  %vm954_vm0 = vcmp.ge.s32.totalorder %v4008_v59, 12  ;;  %v501_v63 = vrot.slane %v3732_v43, 6 }
 0x22f   :  { %v483_v24 = vsel %vm358_vm14, %v4784_v42, %v480_v22  ;;  %v849_v23 = vadd.f32 %v845_v31, %v815_v62  ;;  %v4785_v53 = vrot.slane %v3665_v48, 7  ;;  %v941_v14 = vsel %vm929_vm9, %v4054_v1, 0.0 }
 0x230   :  { %v875_v12 = vadd.f32 %v871_v17, %v850_v29  ;;  %v488_v34 = vsel %vm365_vm1, %v483_v24, 0.0  ;;  %v921_v3 = vmul.f32 %v3949_v50, %v916_v35  ;;  %vm979_vm12 = vcmp.ge.s32.totalorder %v4008_v59, 13 }
 0x231   :  { %v482_v33 = vsel %vm358_vm14, %v480_v22, %v4785_v53  ;;  %v874_v44 = vadd.f32 %v3941_v54, %v849_v23  ;;  %v966_v21 = vsel %vm954_vm0, %v721_v20, 0.0  ;;  %v946_v39 = vmul.f32 %v3952_v61, %v941_v14 }
 0x232   :  { %v900_v58 = vadd.f32 %v896_v49, %v875_v12  ;;  %v494_v25 = vmul.f32 %v3549_v16, %v482_v33  ;;  %vm1004_vm14 = vcmp.ge.s32.totalorder %v4008_v59, 14  ;;  %v493_v54 = vmul.f32 %v3549_v16, %v488_v34  ;;  %v4791_v33 = vld [vmem:[#allocation19_spill] sm:$0xff] }
 0x233   :  { %v899_v60 = vadd.f32 %v3947_v40, %v874_v44  ;;  %v4786_v1 = vrot.slane %v3543_v11, 6  ;;  %v991_v52 = vsel %vm979_vm12, %v755_v32, 0.0  ;;  %v477_v40 = vmul.f32 %v3524_v0, %v3665_v48 }
 0x234   :  { %v925_v26 = vadd.f32 %v921_v3, %v900_v58  ;;  %v971_v5 = vmul.f32 %v3955_v38, %v966_v21  ;;  %vm1029_vm1 = vcmp.ge.s32.totalorder %v4008_v59, 15  ;;  %v476_v61 = vmul.f32 %v3524_v0, %v3732_v43 }
 0x235   :  { %v504_v22 = vsel %vm392_vm15, %v4786_v1, %v501_v63  ;;  %v924_v50 = vadd.f32 %v3960_v36, %v899_v60  ;;  %v4787_v16 = vrot.slane %v3665_v48, 6  ;;  %v1016_v36 = vsel %vm1004_vm14, %v789_v27, 0.0 }
 0x236   :  { %v950_v20 = vadd.f32 %v946_v39, %v925_v26  ;;  %v509_v32 = vsel %vm399_vm2, %v504_v22, 0.0  ;;  %v498_v30 = vadd.f32 %v494_v25, %v477_v40  ;;  %v996_v38 = vmul.f32 %v3971_v45, %v991_v52  ;;  %vm4789_vm2 = vmmov %vm4779_vm6  ;;  %v3007_v25 = vld [vmem:[%s3351_s20 + $0x8] sm:$0xff] }
 0x237   :  { %v503_v11 = vsel %vm392_vm15, %v501_v63, %v4787_v16  ;;  %v949_v47 = vadd.f32 %v3964_v56, %v924_v50  ;;  %v497_v62 = vadd.f32 %v493_v54, %v476_v61  ;;  %v1041_v31 = vsel %vm1029_vm1, %v823_v8, 0.0  ;;  %vm4788_vm15 = vmmov %vm4779_vm6  ;;  %1256 = vmatpush.bf16.msrb.mxu0 %v3007_v25  ;;  %v3006_v54 = vld [vmem:[%s3351_s20] sm:$0xff] }
 0x238   :  { %v975_v55 = vadd.f32 %v971_v5, %v950_v20  ;;  %v515_v0 = vmul.f32 %v3529_v4, %v503_v11  ;;  %v1021_v51 = vmul.f32 %v3974_v46, %v1016_v36  ;;  %v514_v43 = vmul.f32 %v3529_v4, %v509_v32  ;;  %vm4790_vm13 = vmmov %vm4789_vm2 }
 0x239   :  { %v974_v59 = vadd.f32 %v3968_v15, %v949_v47  ;;  %v1046_v9 = vmul.f32 %v3985_v28, %v1041_v31  ;;  %v1058_v15 = vmul.f32 %v3978_v57, %v3808_v41  ;;  %v1057_v46 = vmul.f32 %v3978_v57, %v3777_v37  ;;  %vm4792_vm3 = vmmov %vm4789_vm2 }
 0x23a   :  { %v1000_v48 = vadd.f32 %v996_v38, %v975_v55  ;;  %v519_v27 = vadd.f32 %v515_v0, %v498_v30  ;;  %v518_v29 = vadd.f32 %v514_v43, %v497_v62  ;;  %vm4793_vm5 = vmmov %vm4789_vm2  ;;  %v4206_v43 = vld [vmem:[%s4794_s0] ss:$0 sm:$0xff]  ;;  %vm1343_vm0 = vcmask 523264  }
 0x23b   :  { %v999_v56 = vadd.f32 %v3983_v10, %v974_v59  ;;  %1257 = vmatpush.bf16.msrb.mxu0 %v3006_v54  ;;  %v4202_v59 = vld [vmem:[%s3341_s6] ss:$0 sm:$0xff]  ;;  %vm4797_vm9 = vmmov %vm4789_vm2  ;;  %s3264_s6 = smov 104  }
 0x23c   :  { %v1025_v2 = vadd.f32 %v1021_v51, %v1000_v48  ;;  %v528_v4 = vadd.f32 %v3745_v19, %v519_v27  ;;  %v527_v42 = vadd.f32 %v3745_v19, %v518_v29  ;;  %v4213_v29 = vld [vmem:[%s4795_s5] ss:$0 sm:$0xff]  ;;  %vm4799_vm12 = vmmov %vm4789_vm2 }
 0x23d   :  { %v1024_v45 = vadd.f32 %v3989_v6, %v999_v56  ;;  %v4177_v6 = vld [vmem:[%s3336_s30] ss:$0 sm:$0xff]  ;;  %vm4800_vm14 = vmmov %vm4789_vm2  ;;  %s4820_s30 = sld [smem:[#allocation16_spill]] }
 0x23e   :  { %v1050_v17 = vadd.f32 %v1046_v9, %v1025_v2  ;;  %vm4802_vm1 = vmmov %vm4789_vm2 }
 0x23f   :  { %v1049_v8 = vadd.f32 %v3994_v18, %v1024_v45 }
 0x240   :  { %v1062_v10 = vadd.f32 %v1058_v15, %v1050_v17  ;;  %v3011_v17 = vld [vmem:[%s4796_s9 + $0x18] sm:$0xff] }
 0x241   :  { %v1061_v24 = vadd.f32 %v1057_v46, %v1049_v8  ;;  %1354 = vmatpush.bf16.msrb.mxu1 %v3011_v17  ;;  %v3010_v8 = vld [vmem:[%s4796_s9 + $0x10] sm:$0xff] }
 0x242   :  { %v1066_v23 = vmul.f32 %v1062_v10, %v528_v4  ;;  %v3009_v10 = vld [vmem:[%s4796_s9 + $0x8] sm:$0xff] }
 0x243   :  { %v1065_v28 = vmul.f32 %v1061_v24, %v527_v42 }
 0x245   :  { %v1073_v35 = vpack.c.bf16 %v1066_v23, %v1065_v28  ;;  %1355 = vmatpush.bf16.msrb.mxu1 %v3010_v8 }
 0x247   :  { %2880 = vmatmul.msk.bf16.gmra.mxu3 %vm4788_vm15, %v1073_v35  ;;  %v3008_v35 = vld [vmem:[%s4796_s9] sm:$0xff]  ;;  %vm4803_vm15 = vmmov %vm4802_vm1 }
 0x249   :  { %1356 = vmatpush.bf16.msrb.mxu1 %v3009_v10 }
 0x24d   :  { %1357 = vmatpush.bf16.msrb.mxu1 %v3008_v35  ;;  %v1524_v35 = vld [vmem:[%s4810_s29] sm:$0xff] }
 0x2a8   :  { %v1104_v12 = vpop.f32.mrf.mxu3 }
 0x2a9   :  { %v1105_v41 = vadd.f32 %v4177_v6, %v1104_v12 }
 0x2ab   :  { %v4181_v18 = vadd.f32 %v1105_v41, %v3431_v7 }
 0x2ad   :  { %v1120_v37 = vsel %vm4789_vm2, %v4181_v18, 0.0  ;;  %vm4806_vm2 = vmmov %vm4802_vm1 }
 0x2ae   :  { %1121 = vadd.xlane.f32.xlu2 %v1120_v37 }
 0x2b0   :  { %v1106_v57 = vpop.f32.mrf.mxu3 }
 0x2b1   :  { %v1107_v19 = vadd.f32 %v4177_v6, %v1106_v57 }
 0x2b3   :  { %v4187_v49 = vadd.f32 %v1107_v19, %v3441_v13 }
 0x2b5   :  { %v1123_v63 = vsel %vm4790_vm13, %v4187_v49, 0.0  ;;  %vm4808_vm13 = vmmov %vm4802_vm1 }
 0x2b6   :  { %1124 = vadd.xlane.f32.xlu0 %v1123_v63 }
 0x321   :  { %v1122_v53 = vpop.xlane.xlu2 %1121 }
 0x322   :  { %v1132_v7 = vmul.f32 %v1122_v53, %v4791_v33 }
 0x324   :  { %v1136_v44 = vsub.f32 %v4181_v18, %v1132_v7 }
 0x326   :  { %v1140_v14 = vmul.f32 %v1136_v44, %v1136_v44 }
 0x328   :  { %v1144_v34 = vsel %vm4792_vm3, %v1140_v14, 0.0  ;;  %vm4809_vm3 = vmmov %vm4802_vm1 }
 0x329   :  { %v1125_v58 = vpop.xlane.xlu0 %1124  ;;  %1145 = vadd.xlane.f32.xlu1 %v1144_v34 }
 0x32a   :  { %v1133_v3 = vmul.f32 %v1125_v58, %v4791_v33 }
 0x32c   :  { %v1137_v13 = vsub.f32 %v4187_v49, %v1133_v3 }
 0x32e   :  { %v1141_v60 = vmul.f32 %v1137_v13, %v1137_v13 }
 0x330   :  { %v1147_v21 = vsel %vm4793_vm5, %v1141_v60, 0.0  ;;  %vm4811_vm5 = vmmov %vm4802_vm1 }
 0x331   :  { %1148 = vadd.xlane.f32.xlu2 %v1147_v21  ;;  %v4223_v21 = vld [vmem:[%s4798_s17] ss:$0 sm:$0xff] }
 0x39c   :  { %v1146_v26 = vpop.xlane.xlu1 %1145 }
 0x39d   :  { %v1156_v39 = vmul.f32 %v1146_v26, %v4791_v33 }
 0x39f   :  { %v1160_v1 = vadd.f32 1e-05, %v1156_v39 }
 0x3a1   :  { %3118 = vrsqrt.f32 %v1160_v1  ;;  %vm1170_vm7 = vweird.f32 %v1160_v1 }
 0x3a4   :  { %v1149_v22 = vpop.xlane.xlu2 %1148 }
 0x3a5   :  { %v1157_v50 = vmul.f32 %v1149_v22, %v4791_v33 }
 0x3a7   :  { %v3119_v52 = vpop.eup %3118  ;;  %v1161_v40 = vadd.f32 1e-05, %v1157_v50  ;;  %v1109_v50 = vpop.f32.mrf.mxu3 }
 0x3a8   :  { %v1165_v20 = vmul.f32 %v3119_v52, %v1160_v1  ;;  %vm1171_vm4 = vweird.f32 %v3119_v52 }
 0x3a9   :  { %3120 = vrsqrt.f32 %v1161_v40  ;;  %vm1172_vm6 = vmor %vm1170_vm7, %vm1171_vm4  ;;  %vm1180_vm11 = vweird.f32 %v1161_v40 }
 0x3aa   :  { %v1166_v5 = vmul.f32 %v3119_v52, %v1165_v20  ;;  %vm4813_vm4 = vmmov %vm4802_vm1 }
 0x3ac   :  { %v1167_v61 = vmul.f32 0.5, %v1166_v5  ;;  %v4801_v5 = vld [vmem:[#allocation17_spill] sm:$0xff] }
 0x3ae   :  { %v1168_v16 = vsub.f32 1.5, %v1167_v61 }
 0x3af   :  { %v3121_v11 = vpop.eup %3120 }
 0x3b0   :  { %v1169_v47 = vmul.f32 %v3119_v52, %v1168_v16  ;;  %v1175_v36 = vmul.f32 %v3121_v11, %v1161_v40  ;;  %vm1181_vm10 = vweird.f32 %v3121_v11  ;;  %v1110_v40 = vadd.f32 %v4177_v6, %v1109_v50  ;;  %v4287_v50 = vld [vmem:[%s4812_s3] ss:$0 sm:$0xff] }
 0x3b1   :  { %vm1182_vm8 = vmor %vm1180_vm11, %vm1181_vm10 }
 0x3b2   :  { %v1176_v32 = vmul.f32 %v3121_v11, %v1175_v36  ;;  %v1173_v30 = vsel %vm1172_vm6, %v3119_v52, %v1169_v47 }
 0x3b3   :  { %v1204_v62 = vmul.f32 %v1173_v30, %v1136_v44 }
 0x3b4   :  { %v1177_v55 = vmul.f32 0.5, %v1176_v32 }
 0x3b5   :  { %v1211_v51 = vmul.f32 %v4202_v59, %v1204_v62  ;;  %v4804_v62 = vld [vmem:[#allocation18_spill] sm:$0xff] }
 0x3b6   :  { %v1178_v38 = vsub.f32 1.5, %v1177_v55 }
 0x3b7   :  { %v1218_v27 = vadd.f32 %v4206_v43, %v1211_v51 }
 0x3b8   :  { %v1179_v31 = vmul.f32 %v3121_v11, %v1178_v38 }
 0x3ba   :  { %v1183_v0 = vsel %vm1182_vm8, %v3121_v11, %v1179_v31 }
 0x3bb   :  { %v1205_v48 = vmul.f32 %v1183_v0, %v1137_v13 }
 0x3bd   :  { %v1212_v56 = vmul.f32 %v4202_v59, %v1205_v48 }
 0x3bf   :  { %v1219_v2 = vadd.f32 %v4206_v43, %v1212_v56 }
 0x3c1   :  { %v1227_v9 = vpack.c.bf16 %v1219_v2, %v1218_v27 }
 0x3c3   :  { %2889 = vmatmul.msk.bf16.vlgmr.msrb.gmra.mxu0 %vm4797_vm9, %v1227_v9 }
 0x440   :  { %v1259_v45 = vpop.f32.mrf.mxu0 }
 0x441   :  { %v1260_v15 = vadd.f32 %v4213_v29, %v1259_v45 }
 0x443   :  { %v1269_v46 = vmul.f32 %v1260_v15, %v1260_v15 }
 0x445   :  { %v1273_v4 = vmul.f32 %v1269_v46, %v1260_v15  ;;  %v3015_v46 = vld [vmem:[%s4805_s21 + $0x8] sm:$0xff] }
 0x446   :  { %1562 = vmatpush.bf16.msrb.mxu3 %v3015_v46 }
 0x447   :  { %v1277_v42 = vmul.f32 0.044715, %v1273_v4  ;;  %v3013_v4 = vld [vmem:[%s4807_s25 + $0x8] sm:$0xff] }
 0x448   :  { %v1261_v24 = vpop.f32.mrf.mxu0  ;;  %1511 = vmatpush.bf16.msrb.mxu2 %v3013_v4 }
 0x449   :  { %v1281_v23 = vadd.f32 %v1277_v42, %v1260_v15  ;;  %v1262_v28 = vadd.f32 %v4213_v29, %v1261_v24  ;;  %v3014_v24 = vld [vmem:[%s4805_s21] sm:$0xff] }
 0x44a   :  { %1563 = vmatpush.bf16.msrb.mxu3 %v3014_v24 }
 0x44b   :  { %v1285_v12 = vmul.f32 0.7978846, %v1281_v23  ;;  %v1270_v41 = vmul.f32 %v1262_v28, %v1262_v28 }
 0x44d   :  { %v1274_v37 = vmul.f32 %v1270_v41, %v1262_v28  ;;  %3122 = vtanh.f32 %v1285_v12  ;;  %v1525_v12 = vld [vmem:[%s4810_s29 + $0x8] sm:$0xff]  ;;  %v3012_v41 = vld [vmem:[%s4807_s25] sm:$0xff] }
 0x44e   :  { %1512 = vmatpush.bf16.msrb.mxu2 %v3012_v41 }
 0x44f   :  { %v1278_v57 = vmul.f32 0.044715, %v1274_v37 }
 0x451   :  { %v1282_v19 = vadd.f32 %v1278_v57, %v1262_v28 }
 0x453   :  { %v1286_v63 = vmul.f32 0.7978846, %v1282_v19  ;;  %v3123_v53 = vpop.eup %3122 }
 0x454   :  { %v1293_v7 = vadd.f32 1.0, %v3123_v53  ;;  %v4278_v53 = vpack.c.bf16 %v1525_v12, %v1524_v35 }
 0x455   :  { %3124 = vtanh.f32 %v1286_v63 }
 0x456   :  { %v1297_v14 = vmul.f32 0.5, %v1293_v7  ;;  %2927 = vmatmul.msk.bf16.vlgmr.msrb.gmra.mxu3 %vm4813_vm4, %v4278_v53  ;;  %vm1614_vm4 = vcmask 64512  }
 0x458   :  { %v1301_v3 = vmul.f32 %v1297_v14, %v1260_v15 }
 0x45b   :  { %v3125_v44 = vpop.eup %3124 }
 0x45c   :  { %v1294_v34 = vadd.f32 1.0, %v3125_v44 }
 0x45e   :  { %v1298_v58 = vmul.f32 0.5, %v1294_v34 }
 0x460   :  { %v1302_v13 = vmul.f32 %v1298_v58, %v1262_v28 }
 0x462   :  { %v1314_v60 = vpack.c.bf16 %v1302_v13, %v1301_v3 }
 0x464   :  { %2907 = vmatmul.msk.bf16.vlgmr.msrb.gmra.mxu1 %vm1343_vm0, %v1314_v60 }
 0x4e1   :  { %v1359_v25 = vpop.f32.mrf.mxu1 }
 0x4e2   :  { %v1360_v26 = vadd.f32 %v4223_v21, %v1359_v25 }
 0x4e4   :  { %v4227_v39 = vadd.f32 %v1360_v26, %v4181_v18  ;;  %v4239_v18 = vadd.f32 %v1110_v40, %v4801_v5 }
 0x4e6   :  { %v1375_v54 = vsel %vm4799_vm12, %v4227_v39, 0.0  ;;  %v1126_v61 = vsel %vm4802_vm1, %v4239_v18, 0.0  ;;  %vm4815_vm12 = vmmov %vm4802_vm1 }
 0x4e7   :  { %1376 = vadd.xlane.f32.xlu0 %v1375_v54 }
 0x4e9   :  { %v1361_v1 = vpop.f32.mrf.mxu1 }
 0x4ea   :  { %v1362_v22 = vadd.f32 %v4223_v21, %v1361_v1 }
 0x4ec   :  { %v4233_v52 = vadd.f32 %v1362_v22, %v4187_v49  ;;  %v1111_v49 = vpop.f32.mrf.mxu3 }
 0x4ed   :  { %v1112_v32 = vadd.f32 %v4177_v6, %v1111_v49 }
 0x4ee   :  { %v1378_v20 = vsel %vm4800_vm14, %v4233_v52, 0.0  ;;  %vm4817_vm14 = vmmov %vm4802_vm1 }
 0x4ef   :  { %1379 = vadd.xlane.f32.xlu1 %v1378_v20  ;;  %v4253_v31 = vadd.f32 %v1112_v32, %v4804_v62 }
 0x4f1   :  { %v1129_v56 = vsel %vm4808_vm13, %v4253_v31, 0.0 }
 0x4f7   :  { %1127 = vadd.xlane.f32.xlu1 %v1126_v61 }
 0x55a   :  { %v1377_v16 = vpop.xlane.xlu0 %1376 }
 0x55b   :  { %v1387_v11 = vmul.f32 %v1377_v16, %v4791_v33  ;;  %v4291_v16 = vld [vmem:[%s4814_s8] ss:$0 sm:$0xff] }
 0x55d   :  { %v4245_v47 = vsub.f32 %v4227_v39, %v1387_v11 }
 0x55f   :  { %v1395_v36 = vmul.f32 %v4245_v47, %v4245_v47 }
 0x561   :  { %v1399_v30 = vsel %vm4803_vm15, %v1395_v36, 0.0 }
 0x562   :  { %v1380_v55 = vpop.xlane.xlu1 %1379  ;;  %1400 = vadd.xlane.f32.xlu2 %v1399_v30 }
 0x563   :  { %v1388_v38 = vmul.f32 %v1380_v55, %v4791_v33 }
 0x565   :  { %v1392_v0 = vsub.f32 %v4233_v52, %v1388_v38 }
 0x567   :  { %v1396_v48 = vmul.f32 %v1392_v0, %v1392_v0 }
 0x569   :  { %v1402_v51 = vsel %vm4806_vm2, %v1396_v48, 0.0  ;;  %v1527_v48 = vld [vmem:[%s4810_s29 + $0x18] sm:$0xff] }
 0x56a   :  { %v1128_v6 = vpop.xlane.xlu1 %1127  ;;  %1403 = vadd.xlane.f32.xlu0 %v1402_v51  ;;  %1130 = vadd.xlane.f32.xlu2 %v1129_v56 }
 0x56b   :  { %v1134_v27 = vmul.f32 %v1128_v6, %v4791_v33 }
 0x56d   :  { %v4261_v2 = vsub.f32 %v4239_v18, %v1134_v27 }
 0x56f   :  { %v1142_v9 = vmul.f32 %v4261_v2, %v4261_v2 }
 0x571   :  { %v1150_v45 = vsel %vm4809_vm3, %v1142_v9, 0.0 }
 0x572   :  { %1151 = vadd.xlane.f32.xlu0 %v1150_v45 }
 0x5d5   :  { %v1401_v17 = vpop.xlane.xlu2 %1400 }
 0x5d6   :  { %v1411_v15 = vmul.f32 %v1401_v17, %v4791_v33 }
 0x5d8   :  { %v1415_v8 = vadd.f32 1e-05, %v1411_v15 }
 0x5da   :  { %3126 = vrsqrt.f32 %v1415_v8  ;;  %vm1425_vm6 = vweird.f32 %v1415_v8 }
 0x5dd   :  { %v1131_v10 = vpop.xlane.xlu2 %1130  ;;  %v1404_v42 = vpop.xlane.xlu0 %1403 }
 0x5de   :  { %v1135_v23 = vmul.f32 %v1131_v10, %v4791_v33  ;;  %v1412_v28 = vmul.f32 %v1404_v42, %v4791_v33  ;;  %v4306_v10 = vld [vmem:[%s4816_s14] ss:$0 sm:$0xff] }
 0x5e0   :  { %v3127_v37 = vpop.eup %3126  ;;  %v4276_v57 = vsub.f32 %v4253_v31, %v1135_v23  ;;  %v1416_v19 = vadd.f32 1e-05, %v1412_v28  ;;  %v1565_v23 = vpop.f32.mrf.mxu3 }
 0x5e1   :  { %v1420_v63 = vmul.f32 %v3127_v37, %v1415_v8  ;;  %vm1426_vm7 = vweird.f32 %v3127_v37  ;;  %v4309_v28 = vadd.f32 %v4306_v10, %v1565_v23 }
 0x5e2   :  { %3128 = vrsqrt.f32 %v1416_v19  ;;  %v1143_v7 = vmul.f32 %v4276_v57, %v4276_v57  ;;  %vm1427_vm10 = vmor %vm1425_vm6, %vm1426_vm7  ;;  %vm1435_vm8 = vweird.f32 %v1416_v19  ;;  %vm1652_vm6 = vcmask 130048  }
 0x5e3   :  { %v1421_v44 = vmul.f32 %v3127_v37, %v1420_v63  ;;  %1736 = vrot.lane.b32.xlu0 %v4309_v28, %s3262_s19  ;;  %vm4819_vm7 = vmmov %vm4815_vm12 }
 0x5e4   :  { %v1153_v14 = vsel %vm4811_vm5, %v1143_v7, 0.0 }
 0x5e5   :  { %v1422_v34 = vmul.f32 0.5, %v1421_v44  ;;  %1154 = vadd.xlane.f32.xlu1 %v1153_v14  ;;  %v1152_v32 = vpop.xlane.xlu0 %1151 }
 0x5e6   :  { %v1158_v30 = vmul.f32 %v1152_v32, %v4791_v33 }
 0x5e7   :  { %v1423_v58 = vsub.f32 1.5, %v1422_v34 }
 0x5e8   :  { %v3129_v3 = vpop.eup %3128  ;;  %v1162_v55 = vadd.f32 1e-05, %v1158_v30  ;;  %v1567_v7 = vpop.f32.mrf.mxu3 }
 0x5e9   :  { %v1424_v13 = vmul.f32 %v3127_v37, %v1423_v58  ;;  %v1430_v60 = vmul.f32 %v3129_v3, %v1416_v19  ;;  %vm1436_vm11 = vweird.f32 %v3129_v3  ;;  %v4318_v14 = vadd.f32 %v4306_v10, %v1567_v7 }
 0x5ea   :  { %vm1437_vm9 = vmor %vm1435_vm8, %vm1436_vm11  ;;  %3130 = vrsqrt.f32 %v1162_v55  ;;  %vm1190_vm15 = vweird.f32 %v1162_v55 }
 0x5eb   :  { %v1431_v25 = vmul.f32 %v3129_v3, %v1430_v60  ;;  %v1428_v26 = vsel %vm1427_vm10, %v3127_v37, %v1424_v13  ;;  %2939 = vmatpush.xpose.msk.msra.mxu1 %vm1614_vm4, %v4318_v14  ;;  %3018 = vmatpush.xpose.msk.msra.mxu3 %vm1614_vm4, %v4318_v14 }
 0x5ec   :  { %v1459_v22 = vmul.f32 %v1428_v26, %v4245_v47  ;;  %1738 = vrot.lane.b32.xlu2 %v4318_v14, %s3262_s19 }
 0x5ed   :  { %v1432_v54 = vmul.f32 0.5, %v1431_v25 }
 0x5ee   :  { %v1466_v61 = vmul.f32 %v4287_v50, %v1459_v22 }
 0x5ef   :  { %v1433_v1 = vsub.f32 1.5, %v1432_v54  ;;  %2940 = vmatpush.xpose.msk.msra.mxu1 %vm1614_vm4, %v4309_v28  ;;  %3019 = vmatpush.xpose.msk.msra.mxu3 %vm1614_vm4, %v4309_v28 }
 0x5f0   :  { %v1473_v49 = vadd.f32 %v4291_v16, %v1466_v61  ;;  %v3131_v38 = vpop.eup %3130 }
 0x5f1   :  { %v1434_v40 = vmul.f32 %v3129_v3, %v1433_v1  ;;  %v1185_v62 = vmul.f32 %v3131_v38, %v1162_v55  ;;  %vm1191_vm1 = vweird.f32 %v3131_v38 }
 0x5f2   :  { %vm1192_vm2 = vmor %vm1190_vm15, %vm1191_vm1 }
 0x5f3   :  { %v1438_v20 = vsel %vm1437_vm9, %v3129_v3, %v1434_v40  ;;  %v1186_v51 = vmul.f32 %v3131_v38, %v1185_v62 }
 0x5f4   :  { %v1460_v5 = vmul.f32 %v1438_v20, %v1392_v0  ;;  %v1526_v0 = vld [vmem:[%s4810_s29 + $0x10] sm:$0xff] }
 0x5f5   :  { %v4300_v6 = vpack.c.bf16 %v1527_v48, %v1526_v0  ;;  %v1187_v45 = vmul.f32 0.5, %v1186_v51 }
 0x5f6   :  { %v1467_v11 = vmul.f32 %v4287_v50, %v1460_v5 }
 0x5f7   :  { %2928 = vmatmul.msk.bf16.gmra.mxu3 %vm4817_vm14, %v4300_v6  ;;  %v1188_v17 = vsub.f32 1.5, %v1187_v45 }
 0x5f8   :  { %v1474_v36 = vadd.f32 %v4291_v16, %v1467_v11 }
 0x5f9   :  { %v1189_v8 = vmul.f32 %v3131_v38, %v1188_v17 }
 0x5fa   :  { %v1482_v47 = vpack.c.bf16 %v1474_v36, %v1473_v49 }
 0x5fb   :  { %v1193_v42 = vsel %vm1192_vm2, %v3131_v38, %v1189_v8 }
 0x5fc   :  { %2917 = vmatmul.msk.bf16.vlgmr.msrb.gmra.mxu2 %vm4815_vm12, %v1482_v47  ;;  %v1206_v12 = vmul.f32 %v1193_v42, %v4261_v2  ;;  %v3016_v42 = vld [vmem:[%s4820_s30] sm:$0xff] }
 0x5fe   :  { %v1213_v63 = vmul.f32 %v4202_v59, %v1206_v12 }
 0x600   :  { %v1220_v2 = vadd.f32 %v4206_v43, %v1213_v63 }
 0x646   :  { %v1739_v60 = vpop.permute.xlu2 %1738 }
 0x647   :  { %2945 = vmatpush.xpose.msk.msrb.mxu3 %vm1614_vm4, %v1739_v60 }
 0x655   :  { %v1737_v25 = vpop.permute.xlu0 %1736 }
 0x656   :  { %2946 = vmatpush.xpose.msk.msrb.mxu3 %vm1614_vm4, %v1737_v25 }
 0x658   :  { %v1155_v56 = vpop.xlane.xlu1 %1154 }
 0x659   :  { %v1159_v27 = vmul.f32 %v1155_v56, %v4791_v33 }
 0x65b   :  { %v1163_v9 = vadd.f32 1e-05, %v1159_v27 }
 0x65d   :  { %3132 = vrsqrt.f32 %v1163_v9  ;;  %vm1200_vm3 = vweird.f32 %v1163_v9 }
 0x663   :  { %v3133_v15 = vpop.eup %3132 }
 0x664   :  { %v1195_v46 = vmul.f32 %v3133_v15, %v1163_v9  ;;  %vm1201_vm13 = vweird.f32 %v3133_v15 }
 0x665   :  { %vm1202_vm5 = vmor %vm1200_vm3, %vm1201_vm13 }
 0x666   :  { %v1196_v4 = vmul.f32 %v3133_v15, %v1195_v46 }
 0x668   :  { %v1197_v24 = vmul.f32 0.5, %v1196_v4 }
 0x66a   :  { %v1198_v35 = vsub.f32 1.5, %v1197_v24 }
 0x66c   :  { %v1199_v41 = vmul.f32 %v3133_v15, %v1198_v35 }
 0x66e   :  { %v1203_v37 = vsel %vm1202_vm5, %v3133_v15, %v1199_v41  ;;  %v3017_v15 = vld [vmem:[%s4820_s30 + $0x8] sm:$0xff] }
 0x66f   :  { %v1207_v19 = vmul.f32 %v1203_v37, %v4276_v57  ;;  %1601 = vmatpush.bf16.msra.mxu0 %v3017_v15 }
 0x671   :  { %v1214_v44 = vmul.f32 %v4202_v59, %v1207_v19  ;;  %v4334_v59 = vld [vmem:[%s4818_s24] ss:$0 sm:$0xff] }
 0x673   :  { %v1221_v34 = vadd.f32 %v4206_v43, %v1214_v44  ;;  %1602 = vmatpush.bf16.msra.mxu0 %v3016_v42 }
 0x675   :  { %v1228_v57 = vpack.c.bf16 %v1221_v34, %v1220_v2 }
 0x677   :  { %2890 = vmatmul.msk.bf16.gmra.mxu0 %vm4819_vm7, %v1228_v57 }
 0x67a   :  { %v4357_v17 = vpop.f32.mrf.mxu3 }
 0x67f   :  { %v1514_v43 = vpop.f32.mrf.mxu2 }
 0x680   :  { %v4337_v58 = vadd.f32 %v4334_v59, %v1514_v43 }
 0x682   :  { %1732 = vrot.lane.b32.xlu1 %v4337_v58, %s3262_s19  ;;  %v4360_v8 = vpop.f32.mrf.mxu3 }
 0x687   :  { %v1516_v3 = vpop.f32.mrf.mxu2 }
 0x688   :  { %v4342_v13 = vadd.f32 %v4334_v59, %v1516_v3 }
 0x68a   :  { %1734 = vrot.lane.b32.xlu2 %v4342_v13, %s3262_s19  ;;  %2942 = vmatmul.msk.f32.vlgmr.msra.gmra.mxu3 %vm1614_vm4, %v4342_v13 }
 0x6e4   :  { %v1735_v5 = vpop.permute.xlu2 %1734 }
 0x6f4   :  { %v1733_v26 = vpop.permute.xlu1 %1732  ;;  %v1264_v54 = vpop.f32.mrf.mxu0 }
 0x6f5   :  { %v1265_v1 = vadd.f32 %v4213_v29, %v1264_v54  ;;  %2947 = vmatmul.msk.f32.vlgmr.msrb.gmra.mxu3 %vm1614_vm4, %v1733_v26 }
 0x6f7   :  { %v1271_v22 = vmul.f32 %v1265_v1, %v1265_v1 }
 0x6f9   :  { %v1275_v40 = vmul.f32 %v1271_v22, %v1265_v1 }
 0x6fb   :  { %v1279_v20 = vmul.f32 0.044715, %v1275_v40 }
 0x6fc   :  { %v1266_v61 = vpop.f32.mrf.mxu0 }
 0x6fd   :  { %v1283_v11 = vadd.f32 %v1279_v20, %v1265_v1  ;;  %v1267_v49 = vadd.f32 %v4213_v29, %v1266_v61  ;;  %2948 = vmatmul.msk.f32.gmra.mxu3 %vm1614_vm4, %v1735_v5 }
 0x6ff   :  { %v1287_v36 = vmul.f32 0.7978846, %v1283_v11  ;;  %v1272_v47 = vmul.f32 %v1267_v49, %v1267_v49 }
 0x701   :  { %v1276_v32 = vmul.f32 %v1272_v47, %v1267_v49  ;;  %3134 = vtanh.f32 %v1287_v36 }
 0x703   :  { %v1280_v30 = vmul.f32 0.044715, %v1276_v32 }
 0x705   :  { %v1284_v55 = vadd.f32 %v1280_v30, %v1267_v49 }
 0x707   :  { %v1288_v38 = vmul.f32 0.7978846, %v1284_v55  ;;  %v3135_v62 = vpop.eup %3134 }
 0x708   :  { %v1295_v0 = vadd.f32 1.0, %v3135_v62 }
 0x709   :  { %3136 = vtanh.f32 %v1288_v38 }
 0x70a   :  { %v1299_v56 = vmul.f32 0.5, %v1295_v0 }
 0x70c   :  { %v1303_v9 = vmul.f32 %v1299_v56, %v1265_v1 }
 0x70d   :  { %v1647_v46 = vpop.f32.mrf.mxu3 }
 0x70e   :  { %v1651_v47 = vmul.f32 0.35355338, %v1647_v46 }
 0x70f   :  { %v3137_v48 = vpop.eup %3136 }
 0x710   :  { %v1296_v51 = vadd.f32 1.0, %v3137_v48  ;;  %v1656_v32 = vsel %vm1652_vm6, %v1651_v47, -inf }
 0x712   :  { %v1300_v27 = vmul.f32 0.5, %v1296_v51 }
 0x714   :  { %v1304_v29 = vmul.f32 %v1300_v27, %v1267_v49 }
 0x716   :  { %v1315_v45 = vpack.c.bf16 %v1304_v29, %v1303_v9 }
 0x718   :  { %2908 = vmatmul.msk.bf16.gmra.mxu1 %vm1343_vm0, %v1315_v45  ;;  %vm4821_vm0 = vmmov %vm4819_vm7 }
 0x719   :  { %2937 = vmatmul.msk.bf16.vlgmr.msra.gmra.mxu0 %vm4821_vm0, %v4278_v53  ;;  %vm4822_vm10 = vmmov %vm4821_vm0 }
 0x71a   :  { %vm4823_vm11 = vmmov %vm4821_vm0 }
 0x71b   :  { %vm4824_vm8 = vmmov %vm4821_vm0 }
 0x71c   :  { %vm4825_vm1 = vmmov %vm4821_vm0 }
 0x71d   :  { %vm4826_vm3 = vmmov %vm4821_vm0  ;;  %vm1864_vm0 = vcmask 1043456  }
 0x728   :  { %2941 = vmatmul.msk.f32.vlgmr.msra.gmra.mxu1 %vm1614_vm4, %v4337_v58 }
 0x729   :  { %2938 = vmatmul.msk.bf16.gmra.mxu0 %vm4822_vm10, %v4300_v6  ;;  %v4375_v6 = vld [vmem:[%s3406_s13] ss:$0 sm:$0xff]  ;;  %s3263_s13 = smov 112  }
 0x778   :  { %v1765_v4 = vpop.f32.mrf.mxu3 }
 0x779   :  { %v1771_v24 = vmul.f32 0.35355338, %v1765_v4 }
 0x77b   :  { %v1773_v23 = vsel %vm1652_vm6, %v1771_v24, -inf }
 0x77c   :  { %1774 = vmax.xlane.f32.xlu0 %v1773_v23 }
 0x780   :  { %v1768_v35 = vpop.f32.mrf.mxu3 }
 0x781   :  { %v1772_v12 = vmul.f32 0.35355338, %v1768_v35 }
 0x783   :  { %v1776_v41 = vsel %vm1652_vm6, %v1772_v12, -inf }
 0x784   :  { %1777 = vmax.xlane.f32.xlu2 %v1776_v41 }
 0x795   :  { %v1364_v19 = vpop.f32.mrf.mxu1 }
 0x796   :  { %v1604_v43 = vpop.f32.mrf.mxu0  ;;  %v1365_v3 = vadd.f32 %v4223_v21, %v1364_v19 }
 0x797   :  { %v1605_v26 = vadd.f32 %v4375_v6, %v1604_v43 }
 0x798   :  { %v4378_v25 = vadd.f32 %v1365_v3, %v4239_v18 }
 0x79a   :  { %v1381_v40 = vsel %vm4823_vm11, %v4378_v25, 0.0 }
 0x79d   :  { %v1366_v57 = vpop.f32.mrf.mxu1 }
 0x79e   :  { %v1606_v1 = vpop.f32.mrf.mxu0  ;;  %v1367_v22 = vadd.f32 %v4223_v21, %v1366_v57 }
 0x79f   :  { %v1607_v5 = vadd.f32 %v4375_v6, %v1606_v1 }
 0x7a0   :  { %v4392_v11 = vadd.f32 %v1367_v22, %v4253_v31 }
 0x7a1   :  { %v4389_v18 = vpack.i.bf16 %v1605_v26, %v1607_v5  ;;  %1721 = vmatpush.msra.mxu2 %v1607_v5 }
 0x7a2   :  { %v1384_v36 = vsel %vm4824_vm8, %v4392_v11, 0.0 }
 0x7a3   :  { %3059 = vrot.lane.b32.xlu2 %v4389_v18, %s3262_s19  ;;  %1722 = vmatpush.msra.mxu2 %v1605_v26 }
 0x7a5   :  { %v1644_v61 = vpop.f32.mrf.mxu1 }
 0x7a6   :  { %v1650_v49 = vmul.f32 0.35355338, %v1644_v61 }
 0x7a8   :  { %v1653_v21 = vsel %vm1652_vm6, %v1650_v49, -inf }
 0x7ef   :  { %v1775_v37 = vpop.xlane.xlu0 %1774 }
 0x7f0   :  { %v1779_v63 = vsub.f32 %v1771_v24, %v1775_v37 }
 0x7f2   :  { %v1781_v7 = vmul.f32 1.442695, %v1779_v63 }
 0x7f4   :  { %3138 = vpow2.f32 %v1781_v7 }
 0x7f7   :  { %v1778_v44 = vpop.xlane.xlu2 %1777 }
 0x7f8   :  { %v1780_v2 = vsub.f32 %v1772_v12, %v1778_v44 }
 0x7fa   :  { %v4369_v34 = vpop.eup %3138  ;;  %v1783_v53 = vmul.f32 1.442695, %v1780_v2 }
 0x7fb   :  { %v1785_v60 = vsel %vm1652_vm6, %v4369_v34, 0.0 }
 0x7fc   :  { %3140 = vpow2.f32 %v1783_v53  ;;  %1786 = vadd.xlane.f32.xlu1 %v1785_v60 }
 0x7ff   :  { %v3060_v30 = vpop.permute.xlu2 %3059 }
 0x800   :  { %v3062_v55 = vunpack.i.h.bf16 %v3060_v30  ;;  %v3061_v31 = vunpack.i.l.bf16 %v3060_v30 }
 0x802   :  { %v4381_v54 = vpop.eup %3140  ;;  %1849 = vmatpush.msrb.mxu1 %v3061_v31 }
 0x803   :  { %v1788_v20 = vsel %vm1652_vm6, %v4381_v54, 0.0 }
 0x804   :  { %1382 = vadd.xlane.f32.xlu1 %v1381_v40  ;;  %1789 = vadd.xlane.f32.xlu0 %v1788_v20 }
 0x805   :  { %1850 = vmatpush.msrb.mxu1 %v3062_v55 }
 0x80c   :  { %1654 = vmax.xlane.f32.xlu1 %v1653_v21  ;;  %1385 = vadd.xlane.f32.xlu0 %v1384_v36 }
 0x814   :  { %1657 = vmax.xlane.f32.xlu0 %v1656_v32 }
 0x86f   :  { %v1787_v38 = vpop.xlane.xlu1 %1786 }
 0x870   :  { %3142 = vrcp.f32 %v1787_v38  ;;  %v1802_v9 = vand.u32 2147483648, %v1787_v38  ;;  %v1800_v15 = vand.u32 2147483647, %v1787_v38  ;;  %vm1796_vm12 = vweird.f32 %v1787_v38 }
 0x872   :  { %v1803_v24 = vor.u32 1.1754944e-38, %v1802_v9  ;;  %vm1801_vm15 = vcmp.eq.f32.partialorder %v1800_v15, 8.507059e+37  ;;  %v2951_v9 = vld [vmem:[%s3411_s12 + $0x4] sm:$0xf] }
 0x873   :  { %v4438_v15 = vsel %vm1864_vm0, %v2951_v9, 0 }
 0x874   :  { %1875 = vmatpush.bf16.msrb.mxu2 %v4438_v15 }
 0x876   :  { %v3143_v62 = vpop.eup %3142 }
 0x877   :  { %v1792_v0 = vmul.f32 %v3143_v62, %v1787_v38  ;;  %v1383_v48 = vpop.xlane.xlu1 %1382  ;;  %v1790_v51 = vpop.xlane.xlu0 %1789  ;;  %vm1797_vm9 = vweird.f32 %v3143_v62 }
 0x878   :  { %v1389_v56 = vmul.f32 %v1383_v48, %v4791_v33  ;;  %3144 = vrcp.f32 %v1790_v51  ;;  %vm1798_vm14 = vmor %vm1796_vm12, %vm1797_vm9  ;;  %v1817_v57 = vand.u32 2147483648, %v1790_v51  ;;  %v1815_v60 = vand.u32 2147483647, %v1790_v51 }
 0x879   :  { %v1793_v27 = vsub.f32 1.0, %v1792_v0  ;;  %vm1811_vm13 = vweird.f32 %v1790_v51 }
 0x87a   :  { %v4402_v29 = vsub.f32 %v4378_v25, %v1389_v56  ;;  %v1818_v22 = vor.u32 1.1754944e-38, %v1817_v57  ;;  %vm1816_vm7 = vcmp.eq.f32.partialorder %v1815_v60, 8.507059e+37 }
 0x87b   :  { %v1794_v45 = vmul.f32 %v3143_v62, %v1793_v27 }
 0x87c   :  { %v1397_v46 = vmul.f32 %v4402_v29, %v4402_v29 }
 0x87d   :  { %v1795_v4 = vadd.f32 %v3143_v62, %v1794_v45 }
 0x87e   :  { %v3145_v42 = vpop.eup %3144  ;;  %v1405_v23 = vsel %vm4825_vm1, %v1397_v46, 0.0 }
 0x87f   :  { %v1799_v35 = vsel %vm1798_vm14, %v3143_v62, %v1795_v4  ;;  %v1807_v12 = vmul.f32 %v3145_v42, %v1790_v51  ;;  %1406 = vadd.xlane.f32.xlu1 %v1405_v23  ;;  %v1655_v41 = vpop.xlane.xlu1 %1654  ;;  %v1386_v37 = vpop.xlane.xlu0 %1385  ;;  %vm1812_vm2 = vweird.f32 %v3145_v42 }
 0x880   :  { %v1804_v19 = vsel %vm1801_vm15, %v1803_v24, %v1799_v35  ;;  %v1659_v63 = vsub.f32 %v1650_v49, %v1655_v41  ;;  %v1390_v7 = vmul.f32 %v1386_v37, %v4791_v33  ;;  %vm1813_vm5 = vmor %vm1811_vm13, %vm1812_vm2 }
 0x881   :  { %v1808_v44 = vsub.f32 1.0, %v1807_v12  ;;  %v1805_v2 = vmul.f32 %v4369_v34, %v1804_v19 }
 0x882   :  { %v1661_v53 = vmul.f32 1.442695, %v1659_v63  ;;  %v4410_v43 = vsub.f32 %v4392_v11, %v1390_v7 }
 0x883   :  { %v1809_v3 = vmul.f32 %v3145_v42, %v1808_v44  ;;  %2949 = vmatmul.msk.f32.vlgmr.msrb.gmra.mxu1 %vm1652_vm6, %v1805_v2 }
 0x884   :  { %3146 = vpow2.f32 %v1661_v53  ;;  %v1398_v26 = vmul.f32 %v4410_v43, %v4410_v43 }
 0x885   :  { %v1810_v1 = vadd.f32 %v3145_v42, %v1809_v3 }
 0x886   :  { %v1408_v40 = vsel %vm4826_vm3, %v1398_v26, 0.0 }
 0x887   :  { %1409 = vadd.xlane.f32.xlu0 %v1408_v40  ;;  %v1658_v34 = vpop.xlane.xlu0 %1657  ;;  %v1814_v20 = vsel %vm1813_vm5, %v3145_v42, %v1810_v1 }
 0x888   :  { %v1660_v5 = vsub.f32 %v1651_v47, %v1658_v34  ;;  %v1819_v61 = vsel %vm1816_vm7, %v1818_v22, %v1814_v20 }
 0x889   :  { %v1820_v49 = vmul.f32 %v4381_v54, %v1819_v61 }
 0x88a   :  { %v4417_v21 = vpop.eup %3146  ;;  %v1663_v36 = vmul.f32 1.442695, %v1660_v5 }
 0x88b   :  { %2950 = vmatmul.msk.f32.gmra.mxu1 %vm1652_vm6, %v1820_v49  ;;  %v1665_v32 = vsel %vm1652_vm6, %v4417_v21, 0.0 }
 0x88c   :  { %3148 = vpow2.f32 %v1663_v36  ;;  %1666 = vadd.xlane.f32.xlu2 %v1665_v32 }
 0x892   :  { %v4422_v30 = vpop.eup %3148 }
 0x893   :  { %v1668_v55 = vsel %vm1652_vm6, %v4422_v30, 0.0 }
 0x894   :  { %1669 = vadd.xlane.f32.xlu1 %v1668_v55 }
 0x89b   :  { %1908 = vrot.lane.b32.xlu0 %v4318_v14, %s3263_s13 }
 0x8a3   :  { %1902 = vrot.lane.b32.xlu0 %v4337_v58, %s3263_s13 }
 0x8ab   :  { %1904 = vrot.lane.b32.xlu0 %v4342_v13, %s3263_s13 }
 0x8ad   :  { %1906 = vrot.lane.b32.xlu1 %v4309_v28, %s3263_s13 }
 0x8f2   :  { %v1407_v54 = vpop.xlane.xlu1 %1406 }
 0x8f3   :  { %v1413_v47 = vmul.f32 %v1407_v54, %v4791_v33 }
 0x8f5   :  { %v1417_v31 = vadd.f32 1e-05, %v1413_v47 }
 0x8f7   :  { %3150 = vrsqrt.f32 %v1417_v31  ;;  %vm1445_vm11 = vweird.f32 %v1417_v31 }
 0x8fa   :  { %v1410_v38 = vpop.xlane.xlu0 %1409 }
 0x8fb   :  { %v1414_v62 = vmul.f32 %v1410_v38, %v4791_v33 }
 0x8fd   :  { %v3151_v0 = vpop.eup %3150  ;;  %v1418_v48 = vadd.f32 1e-05, %v1414_v62 }
 0x8fe   :  { %v1440_v51 = vmul.f32 %v3151_v0, %v1417_v31  ;;  %vm1446_vm10 = vweird.f32 %v3151_v0 }
 0x8ff   :  { %3152 = vrsqrt.f32 %v1418_v48  ;;  %v1667_v4 = vpop.xlane.xlu2 %1666  ;;  %vm1447_vm8 = vmor %vm1445_vm11, %vm1446_vm10  ;;  %vm1455_vm12 = vweird.f32 %v1418_v48 }
 0x900   :  { %v1441_v56 = vmul.f32 %v3151_v0, %v1440_v51  ;;  %3154 = vrcp.f32 %v1667_v4  ;;  %vm1676_vm2 = vweird.f32 %v1667_v4  ;;  %v1680_v61 = vand.u32 2147483647, %v1667_v4 }
 0x902   :  { %v1442_v27 = vmul.f32 0.5, %v1441_v56  ;;  %vm1681_vm3 = vcmp.eq.f32.partialorder %v1680_v61, 8.507059e+37 }
 0x904   :  { %v1443_v45 = vsub.f32 1.5, %v1442_v27 }
 0x905   :  { %v3153_v46 = vpop.eup %3152 }
 0x906   :  { %v1444_v42 = vmul.f32 %v3151_v0, %v1443_v45  ;;  %v1450_v24 = vmul.f32 %v3153_v46, %v1418_v48  ;;  %vm1456_vm9 = vweird.f32 %v3153_v46  ;;  %v3155_v63 = vpop.eup %3154 }
 0x907   :  { %v1670_v37 = vpop.xlane.xlu1 %1669  ;;  %vm1457_vm14 = vmor %vm1455_vm12, %vm1456_vm9  ;;  %v1672_v57 = vmul.f32 %v3155_v63, %v1667_v4  ;;  %vm1677_vm15 = vweird.f32 %v3155_v63 }
 0x908   :  { %v1451_v33 = vmul.f32 %v3153_v46, %v1450_v24  ;;  %v1448_v23 = vsel %vm1447_vm8, %v3151_v0, %v1444_v42  ;;  %3156 = vrcp.f32 %v1670_v37  ;;  %vm1678_vm13 = vmor %vm1676_vm2, %vm1677_vm15  ;;  %v1697_v47 = vand.u32 2147483648, %v1670_v37  ;;  %v1852_v0 = vpop.f32.mrf.mxu1  ;;  %v4476_v42 = vpop.f32.mrf.mxu0  ;;  %v1731_v24 = vld [vmem:[%s3411_s12] sm:$0xf] }
 0x909   :  { %v1461_v41 = vmul.f32 %v1448_v23, %v4402_v29  ;;  %v1673_v60 = vsub.f32 1.0, %v1672_v57  ;;  %vm1691_vm7 = vweird.f32 %v1670_v37  ;;  %v1695_v38 = vand.u32 2147483647, %v1670_v37 }
 0x90a   :  { %v1452_v35 = vmul.f32 0.5, %v1451_v33  ;;  %v1698_v48 = vor.u32 1.1754944e-38, %v1697_v47 }
 0x90b   :  { %v1468_v53 = vmul.f32 %v4287_v50, %v1461_v41  ;;  %v1674_v40 = vmul.f32 %v3155_v63, %v1673_v60  ;;  %vm1696_vm11 = vcmp.eq.f32.partialorder %v1695_v38, 8.507059e+37 }
 0x90c   :  { %v1453_v12 = vsub.f32 1.5, %v1452_v35 }
 0x90d   :  { %v1909_v19 = vpop.permute.xlu0 %1908  ;;  %v1475_v29 = vadd.f32 %v4291_v16, %v1468_v53  ;;  %v1675_v20 = vadd.f32 %v3155_v63, %v1674_v40 }
 0x90e   :  { %v1454_v7 = vmul.f32 %v3153_v46, %v1453_v12  ;;  %2954 = vmatpush.xpose.msk.msrb.mxu0 %vm1614_vm4, %v1909_v19  ;;  %v3157_v1 = vpop.eup %3156 }
 0x90f   :  { %v1687_v34 = vmul.f32 %v3157_v1, %v1670_v37  ;;  %vm1692_vm5 = vweird.f32 %v3157_v1 }
 0x910   :  { %v1458_v44 = vsel %vm1457_vm14, %v3153_v46, %v1454_v7  ;;  %vm1693_vm10 = vmor %vm1691_vm7, %vm1692_vm5  ;;  %v1855_v27 = vpop.f32.mrf.mxu1  ;;  %v4465_v46 = vadd.f32 %v4306_v10, %v4360_v8  ;;  %v4479_v33 = vpop.f32.mrf.mxu0  ;;  %v4482_v8 = vsel %vm1864_vm0, %v1731_v24, 0 }
 0x911   :  { %v1462_v2 = vmul.f32 %v1458_v44, %v4410_v43  ;;  %v1688_v5 = vsub.f32 1.0, %v1687_v34  ;;  %v1682_v43 = vand.u32 2147483648, %v1667_v4  ;;  %v1858_v9 = vpack.c.bf16 %v1855_v27, %v1852_v0  ;;  %1895 = vmatpush.bf16.msra.mxu3 %v4482_v8 }
 0x913   :  { %v1469_v3 = vmul.f32 %v4287_v50, %v1462_v2  ;;  %v1679_v50 = vsel %vm1678_vm13, %v3155_v63, %v1675_v20  ;;  %v1689_v36 = vmul.f32 %v3157_v1, %v1688_v5  ;;  %v1683_v32 = vor.u32 1.1754944e-38, %v1682_v43 }
 0x915   :  { %v1476_v26 = vadd.f32 %v4291_v16, %v1469_v3  ;;  %v1903_v16 = vpop.permute.xlu0 %1902  ;;  %v1684_v55 = vsel %vm1681_vm3, %v1683_v32, %v1679_v50  ;;  %v1690_v54 = vadd.f32 %v3157_v1, %v1689_v36 }
 0x916   :  { %v1685_v31 = vmul.f32 %v4417_v21, %v1684_v55  ;;  %v2960_v21 = vld [vmem:[%s3411_s12 + $0x8] sm:$0xf] }
 0x917   :  { %v1483_v22 = vpack.c.bf16 %v1476_v26, %v1475_v29  ;;  %v1694_v62 = vsel %vm1693_vm10, %v3157_v1, %v1690_v54  ;;  %v4459_v45 = vsel %vm1864_vm0, %v2960_v21, 0 }
 0x918   :  { %v1699_v51 = vsel %vm1696_vm11, %v1698_v48, %v1694_v62 }
 0x919   :  { %2918 = vmatmul.msk.bf16.gmra.mxu2 %vm4825_vm1, %v1483_v22  ;;  %v1700_v56 = vmul.f32 %v4422_v30, %v1699_v51  ;;  %v4472_v30 = vadd.f32 %v4306_v10, %v4357_v17 }
 0x91d   :  { %v1905_v4 = vpop.permute.xlu0 %1904 }
 0x91f   :  { %v1907_v49 = vpop.permute.xlu1 %1906 }
 0x920   :  { %2955 = vmatpush.xpose.msk.msrb.mxu0 %vm1614_vm4, %v1907_v49 }
 0x923   :  { %2956 = vmatmul.msk.f32.vlgmr.msrb.gmra.mxu0 %vm1614_vm4, %v1903_v16 }
 0x929   :  { %2943 = vmatmul.msk.f32.vlgmr.msra.gmra.mxu2 %vm1652_vm6, %v1685_v31 }
 0x92a   :  { %3020 = vmatpush.xpose.msk.msra.mxu2 %vm1614_vm4, %v1909_v19 }
 0x92e   :  { %3021 = vmatpush.xpose.msk.msra.mxu2 %vm1614_vm4, %v1907_v49 }
 0x931   :  { %2944 = vmatmul.msk.f32.gmra.mxu2 %vm1652_vm6, %v1700_v56 }
 0x939   :  { %2952 = vmatmul.msk.bf16.vlgmr.msrb.gmra.mxu2 %vm1614_vm4, %v1858_v9 }
 0x93a   :  { %2042 = vmatpush.bf16.msrb.mxu2 %v4459_v45 }
 0x949   :  { %2957 = vmatmul.msk.f32.vlgmr.msra.gmra.mxu2 %vm1614_vm4, %v1905_v4  ;;  %v4512_v4 = vadd.f32 %v4375_v6, %v4479_v33 }
 0x94a   :  { %2970 = vmatpush.xpose.msk.msra.mxu2 %vm1614_vm4, %v4465_v46 }
 0x94e   :  { %2971 = vmatpush.xpose.msk.msra.mxu2 %vm1614_vm4, %v4472_v30 }
 0x99c   :  { %v4485_v23 = vpop.f32.mrf.mxu2 }
 0x9a0   :  { %v1935_v35 = vpop.f32.mrf.mxu0 }
 0x9a1   :  { %v1941_v12 = vmul.f32 0.35355338, %v1935_v35 }
 0x9a3   :  { %v1943_v10 = vsel %vm1652_vm6, %v1941_v12, -inf }
 0x9a4   :  { %v4488_v17 = vpop.f32.mrf.mxu2  ;;  %1944 = vmax.xlane.f32.xlu1 %v1943_v10  ;;  %v4518_v10 = vadd.f32 %v4375_v6, %v4476_v42  ;;  %v4529_v6 = vadd.f32 %v4334_v59, %v4485_v23 }
 0x9a5   :  { %v4536_v42 = vadd.f32 %v4334_v59, %v4488_v17 }
 0x9ac   :  { %v1724_v41 = vpop.f32.mrf.mxu2 }
 0x9b4   :  { %v1727_v37 = vpop.f32.mrf.mxu2 }
 0x9b5   :  { %v1730_v19 = vpack.c.bf16 %v1727_v37, %v1724_v41 }
 0x9b7   :  { %2953 = vmatmul.msk.bf16.vlgmr.msra.gmra.mxu3 %vm1614_vm4, %v1730_v19 }
 0x9bc   :  { %v4491_v63 = vpop.f32.mrf.mxu2 }
 0x9bd   :  { %2057 = vrot.lane.b32.xlu1 %v4318_v14, %s3264_s6 }
 0x9c4   :  { %v4495_v7 = vpop.f32.mrf.mxu2 }
 0x9cc   :  { %v1938_v44 = vpop.f32.mrf.mxu2 }
 0x9cd   :  { %v1942_v2 = vmul.f32 0.35355338, %v1938_v44 }
 0x9cf   :  { %v1946_v57 = vsel %vm1652_vm6, %v1942_v2, -inf }
 0x9d0   :  { %1947 = vmax.xlane.f32.xlu0 %v1946_v57 }
 0x9e4   :  { %2051 = vrot.lane.b32.xlu0 %v4337_v58, %s3264_s6 }
 0xa17   :  { %v1945_v53 = vpop.xlane.xlu1 %1944 }
 0xa18   :  { %v1949_v3 = vsub.f32 %v1941_v12, %v1945_v53 }
 0xa1a   :  { %v1951_v60 = vmul.f32 1.442695, %v1949_v3 }
 0xa1c   :  { %3158 = vpow2.f32 %v1951_v60 }
 0xa22   :  { %v3159_v29 = vpop.eup %3158 }
 0xa23   :  { %v1955_v26 = vsel %vm1652_vm6, %v3159_v29, 0.0 }
 0xa24   :  { %1956 = vadd.xlane.f32.xlu2 %v1955_v26 }
 0xa2f   :  { %v2058_v1 = vpop.permute.xlu1 %2057 }
 0xa30   :  { %2962 = vmatpush.xpose.msk.msrb.mxu3 %vm1614_vm4, %v2058_v1 }
 0xa43   :  { %v1948_v14 = vpop.xlane.xlu0 %1947 }
 0xa44   :  { %v1950_v22 = vsub.f32 %v1942_v2, %v1948_v14 }
 0xa46   :  { %v1953_v40 = vmul.f32 1.442695, %v1950_v22 }
 0xa48   :  { %3160 = vpow2.f32 %v1953_v40 }
 0xa4e   :  { %v3161_v34 = vpop.eup %3160 }
 0xa4f   :  { %v1958_v20 = vsel %vm1652_vm6, %v3161_v34, 0.0 }
 0xa50   :  { %1959 = vadd.xlane.f32.xlu2 %v1958_v20 }
 0xa56   :  { %v2052_v41 = vpop.permute.xlu0 %2051 }
 0xa68   :  { %3064 = vrot.lane.b32.xlu2 %v4389_v18, %s3263_s13 }
 0xa70   :  { %2055 = vrot.lane.b32.xlu2 %v4309_v28, %s3264_s6 }
 0xa78   :  { %2053 = vrot.lane.b32.xlu2 %v4342_v13, %s3264_s6 }
 0xa97   :  { %v1957_v58 = vpop.xlane.xlu2 %1956 }
 0xa98   :  { %3162 = vrcp.f32 %v1957_v58  ;;  %v1972_v32 = vand.u32 2147483648, %v1957_v58  ;;  %vm1966_vm9 = vweird.f32 %v1957_v58  ;;  %v1970_v16 = vand.u32 2147483647, %v1957_v58 }
 0xa9a   :  { %v1973_v28 = vor.u32 1.1754944e-38, %v1972_v32  ;;  %vm1971_vm14 = vcmp.eq.f32.partialorder %v1970_v16, 8.507059e+37 }
 0xa9e   :  { %v3163_v5 = vpop.eup %3162 }
 0xa9f   :  { %v1962_v43 = vmul.f32 %v3163_v5, %v1957_v58  ;;  %vm1967_vm8 = vweird.f32 %v3163_v5 }
 0xaa0   :  { %vm1968_vm12 = vmor %vm1966_vm9, %vm1967_vm8 }
 0xaa1   :  { %v1963_v61 = vsub.f32 1.0, %v1962_v43 }
 0xaa3   :  { %v1964_v49 = vmul.f32 %v3163_v5, %v1963_v61 }
 0xaa5   :  { %v1965_v36 = vadd.f32 %v3163_v5, %v1964_v49 }
 0xaa7   :  { %v1969_v55 = vsel %vm1968_vm12, %v3163_v5, %v1965_v36 }
 0xaa8   :  { %v1974_v31 = vsel %vm1971_vm14, %v1973_v28, %v1969_v55 }
 0xaa9   :  { %v1975_v56 = vmul.f32 %v3159_v29, %v1974_v31 }
 0xac3   :  { %v1960_v50 = vpop.xlane.xlu2 %1959 }
 0xac4   :  { %3164 = vrcp.f32 %v1960_v50  ;;  %v1987_v0 = vand.u32 2147483648, %v1960_v50  ;;  %v1985_v27 = vand.u32 2147483647, %v1960_v50  ;;  %vm1981_vm15 = vweird.f32 %v1960_v50 }
 0xac6   :  { %v1988_v9 = vor.u32 1.1754944e-38, %v1987_v0  ;;  %vm1986_vm13 = vcmp.eq.f32.partialorder %v1985_v27, 8.507059e+37 }
 0xaca   :  { %v3165_v54 = vpop.eup %3164 }
 0xacb   :  { %v1977_v47 = vmul.f32 %v3165_v54, %v1960_v50  ;;  %v3065_v13 = vpop.permute.xlu2 %3064  ;;  %vm1982_vm1 = vweird.f32 %v3165_v54 }
 0xacc   :  { %v3066_v38 = vunpack.i.l.bf16 %v3065_v13  ;;  %v3067_v48 = vunpack.i.h.bf16 %v3065_v13  ;;  %vm1983_vm2 = vmor %vm1981_vm15, %vm1982_vm1 }
 0xacd   :  { %v1978_v62 = vsub.f32 1.0, %v1977_v47 }
 0xace   :  { %2017 = vmatpush.msra.mxu1 %v3066_v38 }
 0xacf   :  { %v1979_v51 = vmul.f32 %v3165_v54, %v1978_v62 }
 0xad0   :  { %2018 = vmatpush.msra.mxu1 %v3067_v48 }
 0xad1   :  { %2958 = vmatmul.msk.f32.vlgmr.msra.gmra.mxu1 %vm1652_vm6, %v1975_v56  ;;  %v1980_v21 = vadd.f32 %v3165_v54, %v1979_v51 }
 0xad3   :  { %v2056_v24 = vpop.permute.xlu2 %2055  ;;  %v1984_v35 = vsel %vm1983_vm2, %v3165_v54, %v1980_v21 }
 0xad4   :  { %2963 = vmatpush.xpose.msk.msrb.mxu3 %vm1614_vm4, %v2056_v24  ;;  %v1989_v12 = vsel %vm1986_vm13, %v1988_v9, %v1984_v35 }
 0xad5   :  { %v1990_v37 = vmul.f32 %v3161_v34, %v1989_v12 }
 0xad7   :  { %2964 = vmatmul.msk.f32.vlgmr.msrb.gmra.mxu3 %vm1614_vm4, %v2052_v41 }
 0xad8   :  { %2305 = vmatpush.msra.mxu3 %v4512_v4 }
 0xad9   :  { %2959 = vmatmul.msk.f32.gmra.mxu1 %vm1652_vm6, %v1990_v37 }
 0xada   :  { %2306 = vmatpush.msra.mxu3 %v4518_v10 }
 0xadb   :  { %v2054_v33 = vpop.permute.xlu2 %2053 }
 0xadc   :  { %2469 = vmatpush.bf16.msrb.mxu3 %v4482_v8  ;;  %v1897_v8 = vpop.f32.mrf.mxu3 }
 0xadd   :  { %v1898_v57 = vadd.f32 %v1897_v8, %v4491_v63 }
 0xadf   :  { %2965 = vmatmul.msk.f32.gmra.mxu3 %vm1614_vm4, %v2054_v33 }
 0xb4e   :  { %v2020_v19 = vpop.f32.mrf.mxu1 }
 0xb56   :  { %v2023_v44 = vpop.f32.mrf.mxu1 }
 0xb57   :  { %v2026_v2 = vpack.c.bf16 %v2023_v44, %v2020_v19 }
 0xb59   :  { %2961 = vmatmul.msk.bf16.vlgmr.msrb.gmra.mxu2 %vm1614_vm4, %v2026_v2 }
 0xb5a   :  { %2452 = vmatpush.bf16.msrb.mxu2 %v4438_v15 }
 0xb69   :  { %2972 = vmatmul.msk.f32.vlgmr.msra.gmra.mxu2 %vm1614_vm4, %v4529_v6 }
 0xb6a   :  { %2611 = vmatpush.bf16.msra.mxu2 %v4459_v45  ;;  %v4546_v45 = vpop.f32.mrf.mxu3 }
 0xb71   :  { %2973 = vmatmul.msk.f32.gmra.mxu2 %vm1614_vm4, %v4536_v42 }
 0xb72   :  { %v2084_v1 = vpop.f32.mrf.mxu3 }
 0xb73   :  { %v2090_v14 = vmul.f32 0.35355338, %v2084_v1 }
 0xb75   :  { %v2092_v63 = vsel %vm1652_vm6, %v2090_v14, -inf }
 0xb7a   :  { %v2087_v49 = vpop.f32.mrf.mxu3 }
 0xb7b   :  { %v2091_v50 = vmul.f32 0.35355338, %v2087_v49 }
 0xb7d   :  { %v2095_v28 = vsel %vm1652_vm6, %v2091_v50, -inf }
 0xbdc   :  { %v2044_v15 = vpop.f32.mrf.mxu2 }
 0xbdd   :  { %v4541_v53 = vadd.f32 %v2044_v15, %v1898_v57 }
 0xbe4   :  { %v4543_v23 = vpop.f32.mrf.mxu2 }
 0xbec   :  { %v2229_v3 = vpop.f32.mrf.mxu2 }
 0xbed   :  { %v2235_v60 = vmul.f32 0.35355338, %v2229_v3 }
 0xbef   :  { %v2237_v29 = vsel %vm1652_vm6, %v2235_v60, -inf }
 0xbf0   :  { %2238 = vmax.xlane.f32.xlu2 %v2237_v29 }
 0xbf4   :  { %v2232_v59 = vpop.f32.mrf.mxu2 }
 0xbf5   :  { %v2236_v17 = vmul.f32 0.35355338, %v2232_v59 }
 0xbf7   :  { %v2240_v26 = vsel %vm1652_vm6, %v2236_v17, -inf }
 0xbf8   :  { %2241 = vmax.xlane.f32.xlu1 %v2240_v26 }
 0xc00   :  { %2093 = vmax.xlane.f32.xlu1 %v2092_v63 }
 0xc63   :  { %v2239_v22 = vpop.xlane.xlu2 %2238 }
 0xc64   :  { %v2243_v40 = vsub.f32 %v2235_v60, %v2239_v22 }
 0xc66   :  { %v2245_v34 = vmul.f32 1.442695, %v2243_v40 }
 0xc68   :  { %3166 = vpow2.f32 %v2245_v34 }
 0xc6b   :  { %v2242_v20 = vpop.xlane.xlu1 %2241 }
 0xc6c   :  { %v2244_v58 = vsub.f32 %v2236_v17, %v2242_v20 }
 0xc6e   :  { %v3167_v5 = vpop.eup %3166  ;;  %v2247_v43 = vmul.f32 1.442695, %v2244_v58 }
 0xc6f   :  { %v2249_v61 = vsel %vm1652_vm6, %v3167_v5, 0.0 }
 0xc70   :  { %3168 = vpow2.f32 %v2247_v43  ;;  %2250 = vadd.xlane.f32.xlu0 %v2249_v61 }
 0xc73   :  { %v2094_v36 = vpop.xlane.xlu1 %2093 }
 0xc74   :  { %v2098_v32 = vsub.f32 %v2090_v14, %v2094_v36 }
 0xc76   :  { %v4551_v16 = vpop.eup %3168  ;;  %v2100_v55 = vmul.f32 1.442695, %v2098_v32 }
 0xc77   :  { %v2252_v54 = vsel %vm1652_vm6, %v4551_v16, 0.0 }
 0xc78   :  { %3170 = vpow2.f32 %v2100_v55  ;;  %2253 = vadd.xlane.f32.xlu2 %v2252_v54  ;;  %2096 = vmax.xlane.f32.xlu0 %v2095_v28 }
 0xc7e   :  { %v4556_v47 = vpop.eup %3170 }
 0xc7f   :  { %v2104_v13 = vsel %vm1652_vm6, %v4556_v47, 0.0 }
 0xc80   :  { %2105 = vadd.xlane.f32.xlu2 %v2104_v13 }
 0xc8c   :  { %3069 = vrot.lane.b32.xlu0 %v4389_v18, %s3264_s6 }
 0xc94   :  { %2315 = vrot.lane.b32.xlu0 %v4529_v6, %s3262_s19 }
 0xc98   :  { %2321 = vrot.lane.b32.xlu2 %v4465_v46, %s3262_s19 }
 0xc9c   :  { %2482 = vrot.lane.b32.xlu0 %v4465_v46, %s3263_s13 }
 0xca0   :  { %2317 = vrot.lane.b32.xlu2 %v4536_v42, %s3262_s19 }
 0xca4   :  { %2624 = vrot.lane.b32.xlu0 %v4472_v30, %s3264_s6 }
 0xca8   :  { %2480 = vrot.lane.b32.xlu2 %v4472_v30, %s3263_s13 }
 0xcac   :  { %2478 = vrot.lane.b32.xlu0 %v4536_v42, %s3263_s13 }
 0xcb0   :  { %2620 = vrot.lane.b32.xlu2 %v4529_v6, %s3264_s6 }
 0xce3   :  { %v2251_v18 = vpop.xlane.xlu0 %2250 }
 0xce4   :  { %3172 = vrcp.f32 %v2251_v18  ;;  %v2266_v56 = vand.u32 2147483648, %v2251_v18  ;;  %v2264_v9 = vand.u32 2147483647, %v2251_v18  ;;  %vm2260_vm5 = vweird.f32 %v2251_v18 }
 0xce6   :  { %v2267_v12 = vor.u32 1.1754944e-38, %v2266_v56  ;;  %vm2265_vm10 = vcmp.eq.f32.partialorder %v2264_v9, 8.507059e+37 }
 0xcea   :  { %v3173_v31 = vpop.eup %3172 }
 0xceb   :  { %v2256_v38 = vmul.f32 %v3173_v31, %v2251_v18  ;;  %v2254_v62 = vpop.xlane.xlu2 %2253  ;;  %v2097_v0 = vpop.xlane.xlu0 %2096  ;;  %vm2261_vm3 = vweird.f32 %v3173_v31 }
 0xcec   :  { %3174 = vrcp.f32 %v2254_v62  ;;  %v2099_v48 = vsub.f32 %v2091_v50, %v2097_v0  ;;  %vm2262_vm7 = vmor %vm2260_vm5, %vm2261_vm3  ;;  %v2281_v57 = vand.u32 2147483648, %v2254_v62  ;;  %v2279_v60 = vand.u32 2147483647, %v2254_v62 }
 0xced   :  { %v2257_v51 = vsub.f32 1.0, %v2256_v38  ;;  %vm2275_vm8 = vweird.f32 %v2254_v62 }
 0xcee   :  { %v2102_v27 = vmul.f32 1.442695, %v2099_v48  ;;  %v2282_v17 = vor.u32 1.1754944e-38, %v2281_v57  ;;  %vm2280_vm12 = vcmp.eq.f32.partialorder %v2279_v60, 8.507059e+37 }
 0xcef   :  { %v2258_v21 = vmul.f32 %v3173_v31, %v2257_v51 }
 0xcf0   :  { %3176 = vpow2.f32 %v2102_v27 }
 0xcf1   :  { %v2259_v24 = vadd.f32 %v3173_v31, %v2258_v21 }
 0xcf2   :  { %v3175_v35 = vpop.eup %3174 }
 0xcf3   :  { %v2263_v41 = vsel %vm2262_vm7, %v3173_v31, %v2259_v24  ;;  %v2271_v37 = vmul.f32 %v3175_v35, %v2254_v62  ;;  %v2106_v33 = vpop.xlane.xlu2 %2105  ;;  %vm2276_vm11 = vweird.f32 %v3175_v35 }
 0xcf4   :  { %v2268_v19 = vsel %vm2265_vm10, %v2267_v12, %v2263_v41  ;;  %3178 = vrcp.f32 %v2106_v33  ;;  %vm2277_vm9 = vmor %vm2275_vm8, %vm2276_vm11  ;;  %v2121_v40 = vand.u32 2147483648, %v2106_v33  ;;  %v2119_v58 = vand.u32 2147483647, %v2106_v33 }
 0xcf5   :  { %v2272_v44 = vsub.f32 1.0, %v2271_v37  ;;  %v2269_v2 = vmul.f32 %v3167_v5, %v2268_v19  ;;  %vm2115_vm1 = vweird.f32 %v2106_v33  ;;  %v2968_v19 = vld [vmem:[%s3411_s12 + $0xc] sm:$0xf]  ;;  %s3265_s12 = smov [#allocation2]  }
 0xcf6   :  { %v4578_v8 = vpop.eup %3176  ;;  %v2122_v49 = vor.u32 1.1754944e-38, %v2121_v40  ;;  %vm2120_vm2 = vcmp.eq.f32.partialorder %v2119_v58, 8.507059e+37  ;;  %s2784_s20 = sshll.u32 %s3265_s12, 4  ;;  %s2785_s20 = int_to_ptr.vmem [resolvable:$true] %s2784_s20 }
 0xcf7   :  { %v2273_v15 = vmul.f32 %v3175_v35, %v2272_v44  ;;  %2974 = vmatmul.msk.f32.vlgmr.msra.gmra.mxu3 %vm1652_vm6, %v2269_v2  ;;  %v2107_v3 = vsel %vm1652_vm6, %v4578_v8, 0.0  ;;  %v4612_v44 = vsel %vm1864_vm0, %v2968_v19, 0  ;;  %vm4827_vm0 = vcmask 261120  }
 0xcf8   :  { %2108 = vadd.xlane.f32.xlu1 %v2107_v3  ;;  %2191 = vmatpush.bf16.msrb.mxu1 %v4612_v44  ;;  %vm4828_vm10 = vmmov %vm4827_vm0 }
 0xcf9   :  { %v2274_v29 = vadd.f32 %v3175_v35, %v2273_v15 }
 0xcfa   :  { %v3179_v59 = vpop.eup %3178 }
 0xcfb   :  { %v2111_v26 = vmul.f32 %v3179_v59, %v2106_v33  ;;  %v2278_v1 = vsel %vm2277_vm9, %v3175_v35, %v2274_v29  ;;  %vm2116_vm14 = vweird.f32 %v3179_v59  ;;  %v2322_v36 = vpop.permute.xlu2 %2321 }
 0xcfc   :  { %v2283_v14 = vsel %vm2280_vm12, %v2282_v17, %v2278_v1  ;;  %vm2117_vm15 = vmor %vm2115_vm1, %vm2116_vm14 }
 0xcfd   :  { %v2112_v63 = vsub.f32 1.0, %v2111_v26  ;;  %v2284_v22 = vmul.f32 %v4551_v16, %v2283_v14 }
 0xcfe   :  { %v3070_v34 = vpop.permute.xlu0 %3069 }
 0xcff   :  { %v2113_v20 = vmul.f32 %v3179_v59, %v2112_v63  ;;  %v3071_v5 = vunpack.i.l.bf16 %v3070_v34  ;;  %2975 = vmatmul.msk.f32.gmra.mxu3 %vm1652_vm6, %v2284_v22  ;;  %v3072_v61 = vunpack.i.h.bf16 %v3070_v34 }
 0xd01   :  { %v2114_v43 = vadd.f32 %v3179_v59, %v2113_v20  ;;  %2166 = vmatpush.msra.mxu0 %v3071_v5 }
 0xd03   :  { %v2118_v50 = vsel %vm2117_vm15, %v3179_v59, %v2114_v43  ;;  %2167 = vmatpush.msra.mxu0 %v3072_v61  ;;  %v2318_v48 = vpop.permute.xlu2 %2317 }
 0xd04   :  { %v2123_v32 = vsel %vm2120_vm2, %v2122_v49, %v2118_v50 }
 0xd05   :  { %2976 = vmatpush.xpose.msk.msrb.mxu0 %vm1614_vm4, %v2322_v36  ;;  %v2124_v16 = vmul.f32 %v4556_v47, %v2123_v32  ;;  %v4627_v32 = vld [vmem:[%s3416_s27] ss:$0 sm:$0xff]  ;;  %s2786_s27 = sshll.u32 %s3421_s4, 4  ;;  %s2787_s27 = int_to_ptr.hbm [resolvable:$true] %s2786_s27 }
 0xd06   :  { %v2316_v38 = vpop.permute.xlu0 %2315  ;;  %s3218_s7 = sshra.s32 %s2787_s27, 4  ;;  %s3219_s7 = int_to_ptr.hbm [resolvable:$true] %s3218_s7 }
 0xd07   :  { %2966 = vmatmul.msk.f32.vlgmr.msra.gmra.mxu0 %vm1652_vm6, %v2124_v16  ;;  %s3220_s10 = scalar_lea.hbm %s3219_s7, 32  ;;  %p3223_p1 = scmp.lt.s32.totalorder %s3219_s7, %s3421_s4 }
 0xd08   :  { %p3221_p0 = scmp.ne.s32.totalorder %s3219_s7, %s3220_s10  ;;  %p3224_p2 = scmp.lt.s32.totalorder %s3222_s11, %s3220_s10 }
 0xd0a   :  { %p3225_p3 = por %p3224_p2, %p3223_p1 }
 0xd0b   :  { %v2481_v9 = vpop.permute.xlu2 %2480 }
 0xd0c   :  { %p3226_p4 = pnand %p3225_p3, %p3221_p0 }
 0xd0e   :  { %v2483_v21 = vpop.permute.xlu0 %2482 }
 0xd11   :  { %2319 = vrot.lane.b32.xlu1 %v4472_v30, %s3262_s19 }
 0xd13   :  { %v2621_v41 = vpop.permute.xlu2 %2620 }
 0xd16   :  { %v2625_v35 = vpop.permute.xlu0 %2624 }
 0xd19   :  { %2626 = vrot.lane.b32.xlu1 %v4465_v46, %s3264_s6 }
 0xd1e   :  { %v2479_v33 = vpop.permute.xlu0 %2478 }
 0xd21   :  { %2476 = vrot.lane.b32.xlu1 %v4529_v6, %s3263_s13 }
 0xd29   :  { %2622 = vrot.lane.b32.xlu1 %v4536_v42, %s3264_s6 }
 0xd6b   :  { %v2109_v55 = vpop.xlane.xlu1 %2108 }
 0xd6c   :  { %3180 = vrcp.f32 %v2109_v55  ;;  %v2136_v47 = vand.u32 2147483648, %v2109_v55  ;;  %v2134_v31 = vand.u32 2147483647, %v2109_v55  ;;  %vm2130_vm3 = vweird.f32 %v2109_v55 }
 0xd6e   :  { %v2137_v62 = vor.u32 1.1754944e-38, %v2136_v47  ;;  %vm2135_vm7 = vcmp.eq.f32.partialorder %v2134_v31, 8.507059e+37  ;;  %v1900_v47 = vadd.f32 %v4546_v45, %v4495_v7 }
 0xd70   :  { %v2050_v31 = vadd.f32 %v4543_v23, %v1900_v47 }
 0xd72   :  { %v3181_v54 = vpop.eup %3180 }
 0xd73   :  { %v2126_v28 = vmul.f32 %v3181_v54, %v2109_v55  ;;  %vm2131_vm13 = vweird.f32 %v3181_v54 }
 0xd74   :  { %vm2132_vm5 = vmor %vm2130_vm3, %vm2131_vm13 }
 0xd75   :  { %v2127_v13 = vsub.f32 1.0, %v2126_v28 }
 0xd77   :  { %v2128_v18 = vmul.f32 %v3181_v54, %v2127_v13 }
 0xd79   :  { %v2129_v30 = vadd.f32 %v3181_v54, %v2128_v18 }
 0xd7a   :  { %v2308_v46 = vpop.f32.mrf.mxu3 }
 0xd7b   :  { %v2133_v0 = vsel %vm2132_vm5, %v3181_v54, %v2129_v30 }
 0xd7c   :  { %v2138_v6 = vsel %vm2135_vm7, %v2137_v62, %v2133_v0 }
 0xd7d   :  { %v2139_v42 = vmul.f32 %v4578_v8, %v2138_v6 }
 0xd7f   :  { %2967 = vmatmul.msk.f32.gmra.mxu0 %vm1652_vm6, %v2139_v42 }
 0xd82   :  { %v2311_v51 = vpop.f32.mrf.mxu3 }
 0xd83   :  { %v2314_v56 = vpack.c.bf16 %v2311_v51, %v2308_v46  ;;  %v2320_v27 = vpop.permute.xlu1 %2319 }
 0xd84   :  { %2977 = vmatpush.xpose.msk.msrb.mxu0 %vm1614_vm4, %v2320_v27  ;;  %v2169_v2 = vpop.f32.mrf.mxu0 }
 0xd85   :  { %2983 = vmatmul.msk.bf16.vlgmr.msrb.gmra.mxu3 %vm1614_vm4, %v2314_v56 }
 0xd87   :  { %2978 = vmatmul.msk.f32.vlgmr.msrb.gmra.mxu0 %vm1614_vm4, %v2316_v38 }
 0xd88   :  { %2984 = vmatpush.xpose.msk.msra.mxu0 %vm1614_vm4, %v2483_v21 }
 0xd8b   :  { %v2627_v24 = vpop.permute.xlu1 %2626 }
 0xd8c   :  { %2985 = vmatpush.xpose.msk.msra.mxu0 %vm1614_vm4, %v2481_v9  ;;  %2991 = vmatpush.xpose.msk.msra.mxu3 %vm1614_vm4, %v2627_v24 }
 0xd8f   :  { %2979 = vmatmul.msk.f32.gmra.mxu0 %vm1614_vm4, %v2318_v48 }
 0xd90   :  { %2992 = vmatpush.xpose.msk.msra.mxu3 %vm1614_vm4, %v2625_v35 }
 0xd93   :  { %v2477_v12 = vpop.permute.xlu1 %2476 }
 0xd95   :  { %2993 = vmatmul.msk.f32.vlgmr.msra.gmra.mxu3 %vm1614_vm4, %v2621_v41 }
 0xd97   :  { %2986 = vmatmul.msk.f32.vlgmr.msra.gmra.mxu0 %vm1614_vm4, %v2477_v12 }
 0xd9b   :  { %v2623_v37 = vpop.permute.xlu1 %2622 }
 0xd9d   :  { %2994 = vmatmul.msk.f32.gmra.mxu3 %vm1614_vm4, %v2623_v37 }
 0xd9f   :  { %2987 = vmatmul.msk.f32.gmra.mxu0 %vm1614_vm4, %v2479_v33 }
 0xdfc   :  { %v2172_v8 = vpop.f32.mrf.mxu0 }
 0xdfd   :  { %v2175_v57 = vpack.c.bf16 %v2172_v8, %v2169_v2  ;;  %v3073_v8 = vpack.i.bf16 %v4518_v10, %v4512_v4 }
 0xdff   :  { %2969 = vmatmul.msk.bf16.vlgmr.msrb.gmra.mxu1 %vm1614_vm4, %v2175_v57 }
 0xe04   :  { %v2348_v15 = vpop.f32.mrf.mxu0 }
 0xe05   :  { %v2354_v3 = vmul.f32 0.35355338, %v2348_v15 }
 0xe07   :  { %v2356_v60 = vsel %vm1652_vm6, %v2354_v3, -inf }
 0xe08   :  { %v4617_v29 = vpop.f32.mrf.mxu3  ;;  %2357 = vmax.xlane.f32.xlu2 %v2356_v60 }
 0xe0c   :  { %v2351_v59 = vpop.f32.mrf.mxu0 }
 0xe0d   :  { %v2355_v17 = vmul.f32 0.35355338, %v2351_v59 }
 0xe0f   :  { %v2359_v26 = vsel %vm1652_vm6, %v2355_v17, -inf }
 0xe10   :  { %v4620_v1 = vpop.f32.mrf.mxu3  ;;  %2360 = vmax.xlane.f32.xlu0 %v2359_v26 }
 0xe14   :  { %v2509_v14 = vpop.f32.mrf.mxu0 }
 0xe15   :  { %v2515_v63 = vmul.f32 0.35355338, %v2509_v14 }
 0xe17   :  { %v2517_v22 = vsel %vm1652_vm6, %v2515_v63, -inf }
 0xe18   :  { %v2653_v40 = vpop.f32.mrf.mxu3  ;;  %2518 = vmax.xlane.f32.xlu1 %v2517_v22 }
 0xe19   :  { %v2659_v34 = vmul.f32 0.35355338, %v2653_v40 }
 0xe1b   :  { %v2661_v20 = vsel %vm1652_vm6, %v2659_v34, -inf }
 0xe1c   :  { %v2512_v58 = vpop.f32.mrf.mxu0  ;;  %2662 = vmax.xlane.f32.xlu0 %v2661_v20 }
 0xe1d   :  { %v2516_v5 = vmul.f32 0.35355338, %v2512_v58 }
 0xe1f   :  { %v2520_v43 = vsel %vm1652_vm6, %v2516_v5, -inf }
 0xe20   :  { %v2656_v61 = vpop.f32.mrf.mxu3  ;;  %2521 = vmax.xlane.f32.xlu2 %v2520_v43 }
 0xe21   :  { %v2660_v49 = vmul.f32 0.35355338, %v2656_v61 }
 0xe23   :  { %v2664_v50 = vsel %vm1652_vm6, %v2660_v49, -inf }
 0xe24   :  { %2665 = vmax.xlane.f32.xlu1 %v2664_v50 }
 0xe7b   :  { %v2358_v36 = vpop.xlane.xlu2 %2357 }
 0xe7c   :  { %v2362_v16 = vsub.f32 %v2354_v3, %v2358_v36  ;;  %v2193_v55 = vpop.f32.mrf.mxu1 }
 0xe7d   :  { %v2198_v54 = vadd.f32 %v2193_v55, %v4541_v53 }
 0xe7e   :  { %v2364_v28 = vmul.f32 1.442695, %v2362_v16 }
 0xe7f   :  { %v2768_v13 = vadd.f32 %v4627_v32, %v2198_v54 }
 0xe80   :  { %3182 = vpow2.f32 %v2364_v28 }
 0xe81   :  { %v2772_v18 = vadd.f32 %v2768_v13, %v4227_v39 }
 0xe83   :  { %2776 = vst.msk [vmem:[#allocation2] sm:$0xff] %vm4827_vm0, %v2772_v18  ;;  %v2361_v30 = vpop.xlane.xlu0 %2360 }
 0xe84   :  { %v2363_v38 = vsub.f32 %v2355_v17, %v2361_v30  ;;  %v2195_v62 = vpop.f32.mrf.mxu1 }
 0xe85   :  { %v2199_v46 = vadd.f32 %v2195_v62, %v2050_v31 }
 0xe86   :  { %v4636_v0 = vpop.eup %3182  ;;  %v2366_v53 = vmul.f32 1.442695, %v2363_v38 }
 0xe87   :  { %v2769_v6 = vadd.f32 %v4627_v32, %v2199_v46  ;;  %v2368_v42 = vsel %vm1652_vm6, %v4636_v0, 0.0 }
 0xe88   :  { %3184 = vpow2.f32 %v2366_v53  ;;  %2369 = vadd.xlane.f32.xlu2 %v2368_v42 }
 0xe89   :  { %v2773_v39 = vadd.f32 %v2769_v6, %v4233_v52 }
 0xe8b   :  { %2777 = vst.msk [vmem:[#allocation2 + $0x8] sm:$0xff] %vm4828_vm10, %v2773_v39  ;;  %v2519_v7 = vpop.xlane.xlu1 %2518 }
 0xe8c   :  { %v2523_v23 = vsub.f32 %v2515_v63, %v2519_v7 }
 0xe8e   :  { %v4643_v45 = vpop.eup %3184  ;;  %v2525_v48 = vmul.f32 1.442695, %v2523_v23 }
 0xe8f   :  { %v2663_v51 = vpop.xlane.xlu0 %2662  ;;  %v2371_v56 = vsel %vm1652_vm6, %v4643_v45, 0.0 }
 0xe90   :  { %3186 = vpow2.f32 %v2525_v48  ;;  %v2667_v27 = vsub.f32 %v2659_v34, %v2663_v51  ;;  %2372 = vadd.xlane.f32.xlu0 %v2371_v56 }
 0xe92   :  { %v2669_v21 = vmul.f32 1.442695, %v2667_v27 }
 0xe93   :  { %v2522_v9 = vpop.xlane.xlu2 %2521 }
 0xe94   :  { %v2524_v24 = vsub.f32 %v2516_v5, %v2522_v9  ;;  %3188 = vpow2.f32 %v2669_v21 }
 0xe96   :  { %v4647_v35 = vpop.eup %3186  ;;  %v2527_v52 = vmul.f32 1.442695, %v2524_v24 }
 0xe97   :  { %v2666_v12 = vpop.xlane.xlu1 %2665  ;;  %v2529_v41 = vsel %vm1652_vm6, %v4647_v35, 0.0 }
 0xe98   :  { %3190 = vpow2.f32 %v2527_v52  ;;  %v2668_v37 = vsub.f32 %v2660_v49, %v2666_v12  ;;  %2530 = vadd.xlane.f32.xlu1 %v2529_v41 }
 0xe9a   :  { %v2671_v33 = vmul.f32 1.442695, %v2668_v37  ;;  %v4651_v19 = vpop.eup %3188 }
 0xe9b   :  { %v2673_v15 = vsel %vm1652_vm6, %v4651_v19, 0.0 }
 0xe9c   :  { %3192 = vpow2.f32 %v2671_v33 }
 0xe9e   :  { %v4653_v2 = vpop.eup %3190 }
 0xe9f   :  { %v2532_v57 = vsel %vm1652_vm6, %v4653_v2, 0.0 }
 0xea0   :  { %3074 = vrot.lane.b32.xlu2 %v3073_v8, %s3262_s19  ;;  %2533 = vadd.xlane.f32.xlu0 %v2532_v57 }
 0xea1   :  { %2674 = vadd.xlane.f32.xlu1 %v2673_v15 }
 0xea2   :  { %v4662_v3 = vpop.eup %3192 }
 0xea3   :  { %v2676_v60 = vsel %vm1652_vm6, %v4662_v3, 0.0 }
 0xea8   :  { %2677 = vadd.xlane.f32.xlu0 %v2676_v60 }
 0xeba   :  { %3079 = vrot.lane.b32.xlu1 %v3073_v8, %s3263_s13 }
 0xebc   :  { %3084 = vrot.lane.b32.xlu0 %v3073_v8, %s3264_s6 }
 0xefb   :  { %v2370_v4 = vpop.xlane.xlu2 %2369 }
 0xefc   :  { %3194 = vrcp.f32 %v2370_v4  ;;  %v2385_v22 = vand.u32 2147483648, %v2370_v4  ;;  %v2383_v20 = vand.u32 2147483647, %v2370_v4  ;;  %vm2379_vm8 = vweird.f32 %v2370_v4 }
 0xefe   :  { %v2386_v43 = vor.u32 1.1754944e-38, %v2385_v22  ;;  %vm2384_vm12 = vcmp.eq.f32.partialorder %v2383_v20, 8.507059e+37 }
 0xf02   :  { %v3195_v10 = vpop.eup %3194 }
 0xf03   :  { %v2375_v59 = vmul.f32 %v3195_v10, %v2370_v4  ;;  %v3075_v17 = vpop.permute.xlu2 %3074  ;;  %v2373_v26 = vpop.xlane.xlu0 %2372  ;;  %vm2380_vm11 = vweird.f32 %v3195_v10 }
 0xf04   :  { %v3076_v14 = vunpack.i.l.bf16 %v3075_v17  ;;  %3196 = vrcp.f32 %v2373_v26  ;;  %v3077_v40 = vunpack.i.h.bf16 %v3075_v17  ;;  %vm2381_vm9 = vmor %vm2379_vm8, %vm2380_vm11  ;;  %v2400_v54 = vand.u32 2147483648, %v2373_v26 }
 0xf05   :  { %v2376_v63 = vsub.f32 1.0, %v2375_v59  ;;  %v2398_v13 = vand.u32 2147483647, %v2373_v26  ;;  %vm2394_vm1 = vweird.f32 %v2373_v26 }
 0xf06   :  { %2432 = vmatpush.msra.mxu1 %v3076_v14  ;;  %v2401_v18 = vor.u32 1.1754944e-38, %v2400_v54 }
 0xf07   :  { %v2377_v34 = vmul.f32 %v3195_v10, %v2376_v63  ;;  %vm2399_vm2 = vcmp.eq.f32.partialorder %v2398_v13, 8.507059e+37 }
 0xf08   :  { %2433 = vmatpush.msra.mxu1 %v3077_v40 }
 0xf09   :  { %v2378_v58 = vadd.f32 %v3195_v10, %v2377_v34 }
 0xf0a   :  { %v3197_v5 = vpop.eup %3196 }
 0xf0b   :  { %v2382_v61 = vsel %vm2381_vm9, %v3195_v10, %v2378_v58  ;;  %v2390_v49 = vmul.f32 %v3197_v5, %v2373_v26  ;;  %v2531_v50 = vpop.xlane.xlu1 %2530  ;;  %vm2395_vm14 = vweird.f32 %v3197_v5 }
 0xf0c   :  { %v2387_v36 = vsel %vm2384_vm12, %v2386_v43, %v2382_v61  ;;  %3198 = vrcp.f32 %v2531_v50  ;;  %vm2396_vm15 = vmor %vm2394_vm1, %vm2395_vm14  ;;  %vm2540_vm3 = vweird.f32 %v2531_v50  ;;  %v2546_v52 = vand.u32 2147483648, %v2531_v50 }
 0xf0d   :  { %v2391_v16 = vsub.f32 1.0, %v2390_v49  ;;  %v2388_v55 = vmul.f32 %v4636_v0, %v2387_v36  ;;  %v2544_v12 = vand.u32 2147483647, %v2531_v50 }
 0xf0e   :  { %v2547_v60 = vor.u32 1.1754944e-38, %v2546_v52 }
 0xf0f   :  { %v2392_v28 = vmul.f32 %v3197_v5, %v2391_v16  ;;  %2980 = vmatmul.msk.f32.vlgmr.msra.gmra.mxu1 %vm1652_vm6, %v2388_v55  ;;  %vm2545_vm11 = vcmp.eq.f32.partialorder %v2544_v12, 8.507059e+37 }
 0xf11   :  { %v2393_v47 = vadd.f32 %v3197_v5, %v2392_v28 }
 0xf12   :  { %v3199_v0 = vpop.eup %3198 }
 0xf13   :  { %v4670_v31 = vpop.xlane.xlu0 %2533  ;;  %v2397_v30 = vsel %vm2396_vm15, %v3197_v5, %v2393_v47  ;;  %v2536_v53 = vmul.f32 %v3199_v0, %v2531_v50  ;;  %vm2541_vm13 = vweird.f32 %v3199_v0 }
 0xf14   :  { %v2675_v38 = vpop.xlane.xlu1 %2674  ;;  %v2402_v62 = vsel %vm2399_vm2, %v2401_v18, %v2397_v30  ;;  %vm2542_vm7 = vmor %vm2540_vm3, %vm2541_vm13  ;;  %vm2555_vm9 = vweird.f32 %v4670_v31  ;;  %v2561_v34 = vand.u32 2147483648, %v4670_v31  ;;  %v2559_v43 = vand.u32 2147483647, %v4670_v31 }
 0xf15   :  { %3200 = vrcp.f32 %v2675_v38  ;;  %v2403_v46 = vmul.f32 %v4643_v45, %v2402_v62  ;;  %v2537_v7 = vsub.f32 1.0, %v2536_v53  ;;  %v2690_v33 = vand.u32 2147483648, %v2675_v38 }
 0xf16   :  { %3202 = vrcp.f32 %v4670_v31  ;;  %vm2684_vm0 = vweird.f32 %v2675_v38  ;;  %v2688_v57 = vand.u32 2147483647, %v2675_v38  ;;  %v2562_v55 = vor.u32 1.1754944e-38, %v2561_v34 }
 0xf17   :  { %2981 = vmatmul.msk.f32.gmra.mxu1 %vm1652_vm6, %v2403_v46  ;;  %v2538_v56 = vmul.f32 %v3199_v0, %v2537_v7  ;;  %v2691_v26 = vor.u32 1.1754944e-38, %v2690_v33  ;;  %vm2560_vm13 = vcmp.eq.f32.partialorder %v2559_v43, 8.507059e+37 }
 0xf18   :  { %vm2689_vm8 = vcmp.eq.f32.partialorder %v2688_v57, 8.507059e+37 }
 0xf19   :  { %v2539_v9 = vadd.f32 %v3199_v0, %v2538_v56 }
 0xf1b   :  { %v3201_v6 = vpop.eup %3200  ;;  %v4675_v42 = vpop.xlane.xlu0 %2677  ;;  %v2543_v8 = vsel %vm2542_vm7, %v3199_v0, %v2539_v9 }
 0xf1c   :  { %v2680_v39 = vmul.f32 %v3201_v6, %v2675_v38  ;;  %3204 = vrcp.f32 %v4675_v42  ;;  %v4678_v23 = vpop.eup %3202  ;;  %vm2685_vm5 = vweird.f32 %v3201_v6  ;;  %v2548_v17 = vsel %vm2545_vm11, %v2547_v60, %v2543_v8 }
 0xf1d   :  { %v2551_v45 = vmul.f32 %v4678_v23, %v4670_v31  ;;  %vm2686_vm10 = vmor %vm2684_vm0, %vm2685_vm5  ;;  %vm2556_vm12 = vweird.f32 %v4678_v23  ;;  %v2549_v5 = vmul.f32 %v4647_v35, %v2548_v17  ;;  %v2705_v49 = vand.u32 2147483648, %v4675_v42 }
 0xf1e   :  { %v2681_v48 = vsub.f32 1.0, %v2680_v39  ;;  %vm2557_vm1 = vmor %vm2555_vm9, %vm2556_vm12  ;;  %vm2699_vm15 = vweird.f32 %v4675_v42  ;;  %v2703_v16 = vand.u32 2147483647, %v4675_v42 }
 0xf1f   :  { %v2552_v24 = vsub.f32 1.0, %v2551_v45  ;;  %v2706_v28 = vor.u32 1.1754944e-38, %v2705_v49 }
 0xf20   :  { %v2682_v27 = vmul.f32 %v3201_v6, %v2681_v48  ;;  %vm2704_vm3 = vcmp.eq.f32.partialorder %v2703_v16, 8.507059e+37 }
 0xf21   :  { %v2553_v15 = vmul.f32 %v4678_v23, %v2552_v24 }
 0xf22   :  { %v4680_v51 = vpop.eup %3204  ;;  %v2683_v41 = vadd.f32 %v3201_v6, %v2682_v27 }
 0xf23   :  { %v2695_v21 = vmul.f32 %v4680_v51, %v4675_v42  ;;  %v2554_v22 = vadd.f32 %v4678_v23, %v2553_v15  ;;  %vm2700_vm14 = vweird.f32 %v4680_v51 }
 0xf24   :  { %v2687_v4 = vsel %vm2686_vm10, %v3201_v6, %v2683_v41  ;;  %vm2701_vm2 = vmor %vm2699_vm15, %vm2700_vm14 }
 0xf25   :  { %v2696_v37 = vsub.f32 1.0, %v2695_v21  ;;  %v2692_v40 = vsel %vm2689_vm8, %v2691_v26, %v2687_v4  ;;  %v2558_v36 = vsel %vm2557_vm1, %v4678_v23, %v2554_v22 }
 0xf26   :  { %v2693_v35 = vmul.f32 %v4651_v19, %v2692_v40  ;;  %v2563_v13 = vsel %vm2560_vm13, %v2562_v55, %v2558_v36 }
 0xf27   :  { %v2697_v10 = vmul.f32 %v4680_v51, %v2696_v37  ;;  %v2564_v19 = vmul.f32 %v4653_v2, %v2563_v13 }
 0xf29   :  { %v2698_v61 = vadd.f32 %v4680_v51, %v2697_v10 }
 0xf2b   :  { %v2702_v54 = vsel %vm2701_vm2, %v4680_v51, %v2698_v61 }
 0xf2c   :  { %v3080_v59 = vpop.permute.xlu1 %3079  ;;  %v2707_v47 = vsel %vm2704_vm3, %v2706_v28, %v2702_v54 }
 0xf2d   :  { %v3081_v14 = vunpack.i.l.bf16 %v3080_v59  ;;  %v3082_v20 = vunpack.i.h.bf16 %v3080_v59  ;;  %v2708_v18 = vmul.f32 %v4662_v3, %v2707_v47 }
 0xf2e   :  { %v3085_v63 = vpop.permute.xlu0 %3084 }
 0xf2f   :  { %v3086_v58 = vunpack.i.l.bf16 %v3085_v63  ;;  %2591 = vmatpush.msrb.mxu1 %v3081_v14  ;;  %v3087_v50 = vunpack.i.h.bf16 %v3085_v63 }
 0xf31   :  { %2592 = vmatpush.msrb.mxu1 %v3082_v20  ;;  %2735 = vmatpush.msrb.mxu0 %v3086_v58 }
 0xf32   :  { %2988 = vmatmul.msk.f32.vlgmr.msrb.gmra.mxu1 %vm1652_vm6, %v2549_v5 }
 0xf33   :  { %2736 = vmatpush.msrb.mxu0 %v3087_v50  ;;  %2755 = vmatpush.bf16.msra.mxu1 %v4612_v44 }
 0xf34   :  { %2995 = vmatmul.msk.f32.vlgmr.msrb.gmra.mxu0 %vm1652_vm6, %v2693_v35 }
 0xf3a   :  { %2989 = vmatmul.msk.f32.gmra.mxu1 %vm1652_vm6, %v2564_v19 }
 0xf3c   :  { %2996 = vmatmul.msk.f32.gmra.mxu0 %vm1652_vm6, %v2708_v18  ;;  %vm4829_vm6 = vcmask 261120  }
 0xf8c   :  { %v2435_v31 = vpop.f32.mrf.mxu1 }
 0xf94   :  { %v2438_v30 = vpop.f32.mrf.mxu1 }
 0xf95   :  { %v2441_v44 = vpack.c.bf16 %v2438_v30, %v2435_v31 }
 0xf97   :  { %2982 = vmatmul.msk.bf16.vlgmr.msrb.gmra.mxu2 %vm1614_vm4, %v2441_v44 }
 0xfaf   :  { %v2594_v38 = vpop.f32.mrf.mxu1 }
 0xfb1   :  { %v2738_v62 = vpop.f32.mrf.mxu0 }
 0xfb7   :  { %v2597_v46 = vpop.f32.mrf.mxu1 }
 0xfb8   :  { %v2600_v0 = vpack.c.bf16 %v2597_v46, %v2594_v38 }
 0xfb9   :  { %v2741_v53 = vpop.f32.mrf.mxu0 }
 0xfba   :  { %2990 = vmatmul.msk.bf16.vlgmr.msra.gmra.mxu2 %vm1614_vm4, %v2600_v0  ;;  %v2744_v6 = vpack.c.bf16 %v2741_v53, %v2738_v62 }
 0xfbc   :  { %2997 = vmatmul.msk.bf16.vlgmr.msra.gmra.mxu1 %vm1614_vm4, %v2744_v6  ;;  %vm4830_vm4 = vmmov %vm4829_vm6 }
0x101a   :  { %v2454_v2 = vpop.f32.mrf.mxu2 }
0x101b   :  { %v2472_v3 = vadd.f32 %v4617_v29, %v2454_v2 }
0x1022   :  { %v2456_v42 = vpop.f32.mrf.mxu2 }
0x1023   :  { %v2474_v56 = vadd.f32 %v4620_v1, %v2456_v42 }
0x1039   :  { %v2757_v39 = vpop.f32.mrf.mxu1 }
0x103d   :  { %v2613_v7 = vpop.f32.mrf.mxu2 }
0x103e   :  { %v2618_v23 = vadd.f32 %v2613_v7, %v2472_v3 }
0x1040   :  { %v2762_v48 = vadd.f32 %v2757_v39, %v2618_v23 }
0x1041   :  { %v2759_v9 = vpop.f32.mrf.mxu1 }
0x1042   :  { %v2770_v51 = vadd.f32 %v4627_v32, %v2762_v48 }
0x1044   :  { %v2774_v45 = vadd.f32 %v2770_v51, %v4378_v25 }
0x1045   :  { %v2615_v27 = vpop.f32.mrf.mxu2 }
0x1046   :  { %2778 = vst.msk [vmem:[#allocation2 + $0x10] sm:$0xff] %vm4829_vm6, %v2774_v45  ;;  %v2619_v21 = vadd.f32 %v2615_v27, %v2474_v56 }
0x1048   :  { %v2763_v24 = vadd.f32 %v2759_v9, %v2619_v21 }
0x104a   :  { %v2771_v29 = vadd.f32 %v4627_v32, %v2763_v24 }
0x104c   :  { %v2775_v52 = vadd.f32 %v2771_v29, %v4392_v11 }
0x104e   :  { %2779 = vst.msk [vmem:[#allocation2 + $0x18] sm:$0xff] %vm4830_vm4, %v2775_v52 }
0x104f   :  { %3229 = shalt.err (!%p3226_p4)
}
0x1050   :  { %s3266_s15 = smov 128   ;;  %s3267_s16 = smov 8  }
0x1051   :  { %2792 = dma.vmem_to_hbm [thread:$0]  %s2785_s20, 512, %s2787_s27, [#allocation3], %s3266_s15, %s3266_s15, %s3267_s16  }
0x1052   :  { %3230 = dma.done.wait [#allocation3], 512  }
0x1053   :  { %3231 = vsyncadd [#allocation3], 4294966784 }
0x1054   :  { %2797 = vsyncpa [#allocation3], 1 }

</bundles_post_ra>
